<compile_context>
chip_gen: v6e
topology: v6e:2x2x1
jax: 0.10.0
libtpu: 0.0.40
codegen_flags: <defaults>
</compile_context>

<pallas_src>
import functools

import numpy as np

import jax
import jax.numpy as jnp
from jax.experimental import pallas as pl
from jax.experimental.pallas import tpu as pltpu


# ----------------------- Toeplitz (conv-as-matmul) prep ----------------------

@functools.lru_cache(maxsize=None)
def _toeplitz_maps(w_in, c_in, c_out, k, parity):
    """Index/mask maps (numpy, built once) for a block-Toeplitz conv matrix.

    Rows are the input row layout (w, ci); columns are output positions
    ow = 2*pw + parity, ordered (pw, co).  Values index the flat OIHW weight.
    """
    ow = w_in - k + 1
    assert ow % 2 == 0, "conv output width must be even for 2x2 pooling"
    ow_half = ow // 2
    rows, cols = w_in * c_in, ow_half * c_out
    idx = np.zeros((k, rows, cols), np.int32)
    msk = np.zeros((k, rows, cols), bool)
    for dh in range(k):
        for pw in range(ow_half):
            o = 2 * pw + parity
            for dw in range(k):
                w = o + dw
                for ci in range(c_in):
                    r = w * c_in + ci
                    for co in range(c_out):
                        c = pw * c_out + co
                        idx[dh, r, c] = ((co * c_in + ci) * k + dh) * k + dw
                        msk[dh, r, c] = True
    return idx, msk


def _toeplitz(conv_w, w_in, parity):
    """(k, w_in*c_in, (ow/2)*c_out) Toeplitz slab from an OIHW conv weight."""
    c_out, c_in, k, _ = conv_w.shape
    idx, msk = _toeplitz_maps(w_in, c_in, c_out, k, parity)
    return jnp.where(jnp.asarray(msk), conv_w.reshape(-1)[jnp.asarray(idx)], 0.0)


def _conv_weight_slab(conv_w, w_in, pad_rows, pad_cols):
    """(k, pad_rows, 2*pad_cols) fused [even | odd] slab, zero padded to 128 lanes."""
    te = _toeplitz(conv_w, w_in, 0)
    to = _toeplitz(conv_w, w_in, 1)
    k, rows, half = te.shape

    def pad(t):
        return jnp.pad(t, ((0, 0), (0, pad_rows - rows), (0, pad_cols - half)))

    return jnp.concatenate([pad(te), pad(to)], axis=-1)


def _pool_bias(b, reps, pad_cols):
    """Bias per pooled (pw, co) column, zero padded to pad_cols lanes."""
    t = jnp.tile(b, reps)
    return jnp.pad(t, (0, pad_cols - t.shape[0]))[None, :]


# --------------------------------- kernel -----------------------------------

def _conv_pool_block(src_ref, w_ref, b_ref, dst_ref):
    """conv(k=5) + bias + relu + 2x2 maxpool, pool folded into accumulation.

    src_ref rows are per-sample input rows (even count per sample); dst_ref row
    s = (rows_per_sample/2)*b + q holds pooled output row q of sample b.
    Columns: [even output cols | odd output cols], each padded to 128 lanes.
    """
    n_rows = dst_ref.shape[0]
    m = None
    for parity in range(2):          # output-row parity (H half of the pool)
        acc = jnp.zeros((n_rows, 256), jnp.float32)
        for dh in range(5):          # kernel row: strided (stride=2) row slab
            xs = src_ref[pl.ds(parity + dh, n_rows, stride=2), :]
            acc += jnp.dot(xs, w_ref[dh], preferred_element_type=jnp.float32)
        pm = jnp.maximum(acc[:, :128], acc[:, 128:])      # W-direction pool
        m = pm if m is None else jnp.maximum(m, pm)       # H-direction pool
    dst_ref[...] = jnp.maximum(m + b_ref[...], 0.0)       # bias + relu


def _net_kernel(x_ref, w1_ref, b1_ref, w2_ref, b2_ref, f1_ref, fb1_ref,
                f2_ref, fb2_ref, f3_ref, fb3_ref, out_ref, a1_ref, a2_ref):
    bt = out_ref.shape[0]

    # conv1 (3->6) + relu + pool : (32*bt, 96) -> a1 (16*bt-2, 128)
    _conv_pool_block(x_ref, w1_ref, b1_ref, a1_ref)
    # conv2 (6->16) + relu + pool : a1 -> a2 (8*bt-3, 128)
    _conv_pool_block(a1_ref, w2_ref, b2_ref, a2_ref)

    # fc stack 400 -> 120 -> 84 -> 10.  The torch (c,h,w) flatten is matched by
    # the permuted fc1 weight (wrapper); the per-sample 5 rows of a2 are picked
    # up with stride-8 row loads (one matmul per conv2 output row).
    z = jnp.zeros((bt, 120), jnp.float32)
    for h in range(5):
        z += jnp.dot(a2_ref[pl.ds(h, bt, stride=8), :], f1_ref[h],
                     preferred_element_type=jnp.float32)
    z = jnp.maximum(z + fb1_ref[...], 0.0)
    z = jnp.maximum(jnp.dot(z, f2_ref[...],
                            preferred_element_type=jnp.float32) + fb2_ref[...],
                    0.0)
    out_ref[...] = jnp.dot(z, f3_ref[...],
                           preferred_element_type=jnp.float32) + fb3_ref[...]


# ------------------------------- wrapper -------------------------------------

def _const_spec(arr):
    """Whole-array block, resident in VMEM for every grid step."""
    nd = arr.ndim
    return pl.BlockSpec(arr.shape, lambda i, _nd=nd: (0,) * _nd)


def net_forward(x_nchw, p, batch_tile=None):
    n = x_nchw.shape[0]
    assert x_nchw.shape[1:] == (3, 32, 32), x_nchw.shape

    if batch_tile is None:
        # 8..32 samples per grid step; prefer >=2 steps when the batch allows
        # it so both TensorCores get work on v7x.
        batch_tile = max(8, min(32, ((n + 15) // 16) * 8))
    bt = batch_tile
    n_pad = ((n + bt - 1) // bt) * bt

    # Input as batch-major 2-D row slabs: per sample 32 rows of 96 = W*Cin.
    x = jnp.transpose(x_nchw, (0, 2, 3, 1)).reshape(n, 32, 96).astype(jnp.float32)
    if n_pad != n:
        x = jnp.concatenate([x, jnp.zeros((n_pad - n, 32, 96), jnp.float32)], 0)
    x2d = x.reshape(n_pad * 32, 96)

    # Parameter prep (hoisted out of the kernel; tiny gathers / pads).
    w1 = _conv_weight_slab(p['conv1_w'], 32, 96, 128)     # (5, 96, 256)
    w2 = _conv_weight_slab(p['conv2_w'], 14, 128, 128)    # (5, 128, 256)
    b1 = _pool_bias(p['conv1_b'], 14, 128)                # (1, 128)
    b2 = _pool_bias(p['conv2_b'], 5, 128)                 # (1, 128)
    # fc1 rows permuted from torch (c,h,w) flatten order to our (h, w, c) order,
    # rows padded 80 -> 128 to match a2's padded lanes (pad rows are zero).
    f1 = jnp.pad(
        p['fc1_w'].reshape(16, 5, 5, 120).transpose(1, 2, 0, 3).reshape(5, 80, 120),
        ((0, 0), (0, 48), (0, 0)))                        # (5, 128, 120)

    weights = (w1, b1, w2, b2, f1,
               p['fc1_b'][None, :], p['fc2_w'], p['fc2_b'][None, :],
               p['fc3_w'], p['fc3_b'][None, :])

    s1 = 16 * bt - 2     # conv1 pooled rows: 16 per sample (14 valid)
    s2 = 8 * bt - 3      # conv2 pooled rows:  8 per sample (5 valid)

    out = pl.pallas_call(
        _net_kernel,
        out_shape=jax.ShapeDtypeStruct((n_pad, 10), jnp.float32),
        grid=(n_pad // bt,),
        in_specs=[pl.BlockSpec((32 * bt, 96), lambda i: (i, 0))]
                 + [_const_spec(w) for w in weights],
        out_specs=pl.BlockSpec((bt, 10), lambda i: (i, 0)),
        scratch_shapes=[pltpu.VMEM((s1, 128), jnp.float32),   # pool1 output
                        pltpu.VMEM((s2, 128), jnp.float32)],  # pool2 output
        compiler_params=pltpu.CompilerParams(
            dimension_semantics=("parallel",)),
    )(x2d, *weights)
    return out[:n]


# ------------------------------ parameters -----------------------------------

def init_params(key):
    ks = jax.random.split(key, 10)

    def nrm(k, shape, scale=0.1):
        return scale * jax.random.normal(k, shape, jnp.float32)

    return dict(
        conv1_w=nrm(ks[0], (6, 3, 5, 5)),      # OIHW, like torch
        conv1_b=nrm(ks[1], (6,)),
        conv2_w=nrm(ks[2], (16, 6, 5, 5)),
        conv2_b=nrm(ks[3], (16,)),
        fc1_w=nrm(ks[4], (400, 120)),          # stored as (in, out) = torch weight.T
        fc1_b=nrm(ks[5], (120,)),
        fc2_w=nrm(ks[6], (120, 84)),
        fc2_b=nrm(ks[7], (84,)),
        fc3_w=nrm(ks[8], (84, 10)),
        fc3_b=nrm(ks[9], (10,)),
    )


# ------------------------------ pure-JAX reference ---------------------------

def reference_forward(x_nchw, p):
    def conv(x, w, b):
        y = jax.lax.conv_general_dilated(
            x, w, (1, 1), 'VALID', dimension_numbers=('NCHW', 'OIHW', 'NCHW'))
        return jax.nn.relu(y + b[None, :, None, None])

    def pool(x):
        n, c, h, w = x.shape
        return x.reshape(n, c, h // 2, 2, w // 2, 2).max(axis=(3, 5))

    x = pool(conv(x_nchw, p['conv1_w'], p['conv1_b']))
    x = pool(conv(x, p['conv2_w'], p['conv2_b']))
    x = x.reshape(x.shape[0], -1)                      # torch (c, h, w) flatten
    x = jax.nn.relu(x @ p['fc1_w'] + p['fc1_b'])
    x = jax.nn.relu(x @ p['fc2_w'] + p['fc2_b'])
    return x @ p['fc3_w'] + p['fc3_b']


if __name__ == "__main__":
    key = jax.random.PRNGKey(0)
    kx, kp = jax.random.split(key)
    # Input must be 3x32x32 for the 16*5*5 flatten to hold (as in the PyTorch model).
    x = jax.random.normal(kx, (2, 3, 32, 32), jnp.float32)
    params = init_params(kp)

    fwd = jax.jit(net_forward)
    out = jax.block_until_ready(fwd(x, params))
    ref = jax.block_until_ready(reference_forward(x, params))

    assert out.shape == (2, 10), out.shape
    assert jnp.allclose(out, ref, atol=2e-3, rtol=2e-3), (
        f"max abs diff {jnp.max(jnp.abs(out - ref))}")
    print("KERNEL_OK")
</pallas_src>

<mosaic_0001>
module attributes {stable_mosaic.version = 11 : i64} {
  func.func @_net_kernel(%arg0: i32, %arg1: memref<256x96xf32, #tpu.memory_space<vmem>>, %arg2: memref<5x96x256xf32, #tpu.memory_space<vmem>>, %arg3: memref<1x128xf32, #tpu.memory_space<vmem>>, %arg4: memref<5x128x256xf32, #tpu.memory_space<vmem>>, %arg5: memref<1x128xf32, #tpu.memory_space<vmem>>, %arg6: memref<5x128x120xf32, #tpu.memory_space<vmem>>, %arg7: memref<1x120xf32, #tpu.memory_space<vmem>>, %arg8: memref<120x84xf32, #tpu.memory_space<vmem>>, %arg9: memref<1x84xf32, #tpu.memory_space<vmem>>, %arg10: memref<84x10xf32, #tpu.memory_space<vmem>>, %arg11: memref<1x10xf32, #tpu.memory_space<vmem>>, %arg12: memref<8x10xf32, #tpu.memory_space<vmem>>, %arg13: memref<126x128xf32, #tpu.memory_space<vmem>>, %arg14: memref<61x128xf32, #tpu.memory_space<vmem>>) attributes {dimension_semantics = [#tpu.dimension_semantics<parallel>], iteration_bounds = array<i64: 1>, scalar_prefetch = 0 : i64, scratch_operands = 2 : i64, tpu.core_type = #tpu.core_type<tc>, window_params = [{transform_indices = @transform_0, window_bounds = array<i64: 256, 96>}, {pipeline_mode = #tpu.pipeline_mode<synchronous>, transform_indices = @transform_1, window_bounds = array<i64: 5, 96, 256>}, {pipeline_mode = #tpu.pipeline_mode<synchronous>, transform_indices = @transform_2, window_bounds = array<i64: 1, 128>}, {pipeline_mode = #tpu.pipeline_mode<synchronous>, transform_indices = @transform_3, window_bounds = array<i64: 5, 128, 256>}, {pipeline_mode = #tpu.pipeline_mode<synchronous>, transform_indices = @transform_4, window_bounds = array<i64: 1, 128>}, {pipeline_mode = #tpu.pipeline_mode<synchronous>, transform_indices = @transform_5, window_bounds = array<i64: 5, 128, 120>}, {pipeline_mode = #tpu.pipeline_mode<synchronous>, transform_indices = @transform_6, window_bounds = array<i64: 1, 120>}, {pipeline_mode = #tpu.pipeline_mode<synchronous>, transform_indices = @transform_7, window_bounds = array<i64: 120, 84>}, {pipeline_mode = #tpu.pipeline_mode<synchronous>, transform_indices = @transform_8, window_bounds = array<i64: 1, 84>}, {pipeline_mode = #tpu.pipeline_mode<synchronous>, transform_indices = @transform_9, window_bounds = array<i64: 84, 10>}, {pipeline_mode = #tpu.pipeline_mode<synchronous>, transform_indices = @transform_10, window_bounds = array<i64: 1, 10>}, {transform_indices = @transform_11, window_bounds = array<i64: 8, 10>}]} {
    %cst = arith.constant 0.000000e+00 : f32
    %0 = vector.broadcast %cst : f32 to vector<126x256xf32>
    %c0 = arith.constant 0 : index
    %c0_0 = arith.constant 0 : index
    %1 = tpu.strided_load %arg1[%c0, %c0_0] {strides = array<i32: 2, 1>} : memref<256x96xf32, #tpu.memory_space<vmem>>, vector<126x96xf32>
    %c0_1 = arith.constant 0 : index
    %c0_2 = arith.constant 0 : index
    %c0_3 = arith.constant 0 : index
    %2 = vector.load %arg2[%c0_1, %c0_2, %c0_3] : memref<5x96x256xf32, #tpu.memory_space<vmem>>, vector<1x96x256xf32>
    %3 = vector.shape_cast %2 : vector<1x96x256xf32> to vector<96x256xf32>
    %cst_4 = arith.constant dense<0.000000e+00> : vector<126x256xf32>
    %4 = tpu.matmul %1, %3, %cst_4 {dimension_numbers = #tpu.dot_dimension_numbers<[1], [0], [0], [1], [0, 0, 1, 1], [], []>} : vector<126x96xf32>, vector<96x256xf32>, vector<126x256xf32> -> vector<126x256xf32>
    %5 = arith.addf %0, %4 : vector<126x256xf32>
    %c1 = arith.constant 1 : index
    %c0_5 = arith.constant 0 : index
    %6 = tpu.strided_load %arg1[%c1, %c0_5] {strides = array<i32: 2, 1>} : memref<256x96xf32, #tpu.memory_space<vmem>>, vector<126x96xf32>
    %c1_6 = arith.constant 1 : index
    %c0_7 = arith.constant 0 : index
    %c0_8 = arith.constant 0 : index
    %7 = vector.load %arg2[%c1_6, %c0_7, %c0_8] : memref<5x96x256xf32, #tpu.memory_space<vmem>>, vector<1x96x256xf32>
    %8 = vector.shape_cast %7 : vector<1x96x256xf32> to vector<96x256xf32>
    %cst_9 = arith.constant dense<0.000000e+00> : vector<126x256xf32>
    %9 = tpu.matmul %6, %8, %cst_9 {dimension_numbers = #tpu.dot_dimension_numbers<[1], [0], [0], [1], [0, 0, 1, 1], [], []>} : vector<126x96xf32>, vector<96x256xf32>, vector<126x256xf32> -> vector<126x256xf32>
    %10 = arith.addf %5, %9 : vector<126x256xf32>
    %c2 = arith.constant 2 : index
    %c0_10 = arith.constant 0 : index
    %11 = tpu.strided_load %arg1[%c2, %c0_10] {strides = array<i32: 2, 1>} : memref<256x96xf32, #tpu.memory_space<vmem>>, vector<126x96xf32>
    %c2_11 = arith.constant 2 : index
    %c0_12 = arith.constant 0 : index
    %c0_13 = arith.constant 0 : index
    %12 = vector.load %arg2[%c2_11, %c0_12, %c0_13] : memref<5x96x256xf32, #tpu.memory_space<vmem>>, vector<1x96x256xf32>
    %13 = vector.shape_cast %12 : vector<1x96x256xf32> to vector<96x256xf32>
    %cst_14 = arith.constant dense<0.000000e+00> : vector<126x256xf32>
    %14 = tpu.matmul %11, %13, %cst_14 {dimension_numbers = #tpu.dot_dimension_numbers<[1], [0], [0], [1], [0, 0, 1, 1], [], []>} : vector<126x96xf32>, vector<96x256xf32>, vector<126x256xf32> -> vector<126x256xf32>
    %15 = arith.addf %10, %14 : vector<126x256xf32>
    %c3 = arith.constant 3 : index
    %c0_15 = arith.constant 0 : index
    %16 = tpu.strided_load %arg1[%c3, %c0_15] {strides = array<i32: 2, 1>} : memref<256x96xf32, #tpu.memory_space<vmem>>, vector<126x96xf32>
    %c3_16 = arith.constant 3 : index
    %c0_17 = arith.constant 0 : index
    %c0_18 = arith.constant 0 : index
    %17 = vector.load %arg2[%c3_16, %c0_17, %c0_18] : memref<5x96x256xf32, #tpu.memory_space<vmem>>, vector<1x96x256xf32>
    %18 = vector.shape_cast %17 : vector<1x96x256xf32> to vector<96x256xf32>
    %cst_19 = arith.constant dense<0.000000e+00> : vector<126x256xf32>
    %19 = tpu.matmul %16, %18, %cst_19 {dimension_numbers = #tpu.dot_dimension_numbers<[1], [0], [0], [1], [0, 0, 1, 1], [], []>} : vector<126x96xf32>, vector<96x256xf32>, vector<126x256xf32> -> vector<126x256xf32>
    %20 = arith.addf %15, %19 : vector<126x256xf32>
    %c4 = arith.constant 4 : index
    %c0_20 = arith.constant 0 : index
    %21 = tpu.strided_load %arg1[%c4, %c0_20] {strides = array<i32: 2, 1>} : memref<256x96xf32, #tpu.memory_space<vmem>>, vector<126x96xf32>
    %c4_21 = arith.constant 4 : index
    %c0_22 = arith.constant 0 : index
    %c0_23 = arith.constant 0 : index
    %22 = vector.load %arg2[%c4_21, %c0_22, %c0_23] : memref<5x96x256xf32, #tpu.memory_space<vmem>>, vector<1x96x256xf32>
    %23 = vector.shape_cast %22 : vector<1x96x256xf32> to vector<96x256xf32>
    %cst_24 = arith.constant dense<0.000000e+00> : vector<126x256xf32>
    %24 = tpu.matmul %21, %23, %cst_24 {dimension_numbers = #tpu.dot_dimension_numbers<[1], [0], [0], [1], [0, 0, 1, 1], [], []>} : vector<126x96xf32>, vector<96x256xf32>, vector<126x256xf32> -> vector<126x256xf32>
    %25 = arith.addf %20, %24 : vector<126x256xf32>
    %26 = vector.extract_strided_slice %25 {offsets = [0, 0], sizes = [126, 128], strides = [1, 1]} : vector<126x256xf32> to vector<126x128xf32>
    %27 = vector.extract_strided_slice %25 {offsets = [0, 128], sizes = [126, 128], strides = [1, 1]} : vector<126x256xf32> to vector<126x128xf32>
    %28 = arith.maximumf %26, %27 : vector<126x128xf32>
    %cst_25 = arith.constant 0.000000e+00 : f32
    %29 = vector.broadcast %cst_25 : f32 to vector<126x256xf32>
    %c1_26 = arith.constant 1 : index
    %c0_27 = arith.constant 0 : index
    %30 = tpu.strided_load %arg1[%c1_26, %c0_27] {strides = array<i32: 2, 1>} : memref<256x96xf32, #tpu.memory_space<vmem>>, vector<126x96xf32>
    %c0_28 = arith.constant 0 : index
    %c0_29 = arith.constant 0 : index
    %c0_30 = arith.constant 0 : index
    %31 = vector.load %arg2[%c0_28, %c0_29, %c0_30] : memref<5x96x256xf32, #tpu.memory_space<vmem>>, vector<1x96x256xf32>
    %32 = vector.shape_cast %31 : vector<1x96x256xf32> to vector<96x256xf32>
    %cst_31 = arith.constant dense<0.000000e+00> : vector<126x256xf32>
    %33 = tpu.matmul %30, %32, %cst_31 {dimension_numbers = #tpu.dot_dimension_numbers<[1], [0], [0], [1], [0, 0, 1, 1], [], []>} : vector<126x96xf32>, vector<96x256xf32>, vector<126x256xf32> -> vector<126x256xf32>
    %34 = arith.addf %29, %33 : vector<126x256xf32>
    %c2_32 = arith.constant 2 : index
    %c0_33 = arith.constant 0 : index
    %35 = tpu.strided_load %arg1[%c2_32, %c0_33] {strides = array<i32: 2, 1>} : memref<256x96xf32, #tpu.memory_space<vmem>>, vector<126x96xf32>
    %c1_34 = arith.constant 1 : index
    %c0_35 = arith.constant 0 : index
    %c0_36 = arith.constant 0 : index
    %36 = vector.load %arg2[%c1_34, %c0_35, %c0_36] : memref<5x96x256xf32, #tpu.memory_space<vmem>>, vector<1x96x256xf32>
    %37 = vector.shape_cast %36 : vector<1x96x256xf32> to vector<96x256xf32>
    %cst_37 = arith.constant dense<0.000000e+00> : vector<126x256xf32>
    %38 = tpu.matmul %35, %37, %cst_37 {dimension_numbers = #tpu.dot_dimension_numbers<[1], [0], [0], [1], [0, 0, 1, 1], [], []>} : vector<126x96xf32>, vector<96x256xf32>, vector<126x256xf32> -> vector<126x256xf32>
    %39 = arith.addf %34, %38 : vector<126x256xf32>
    %c3_38 = arith.constant 3 : index
    %c0_39 = arith.constant 0 : index
    %40 = tpu.strided_load %arg1[%c3_38, %c0_39] {strides = array<i32: 2, 1>} : memref<256x96xf32, #tpu.memory_space<vmem>>, vector<126x96xf32>
    %c2_40 = arith.constant 2 : index
    %c0_41 = arith.constant 0 : index
    %c0_42 = arith.constant 0 : index
    %41 = vector.load %arg2[%c2_40, %c0_41, %c0_42] : memref<5x96x256xf32, #tpu.memory_space<vmem>>, vector<1x96x256xf32>
    %42 = vector.shape_cast %41 : vector<1x96x256xf32> to vector<96x256xf32>
    %cst_43 = arith.constant dense<0.000000e+00> : vector<126x256xf32>
    %43 = tpu.matmul %40, %42, %cst_43 {dimension_numbers = #tpu.dot_dimension_numbers<[1], [0], [0], [1], [0, 0, 1, 1], [], []>} : vector<126x96xf32>, vector<96x256xf32>, vector<126x256xf32> -> vector<126x256xf32>
    %44 = arith.addf %39, %43 : vector<126x256xf32>
    %c4_44 = arith.constant 4 : index
    %c0_45 = arith.constant 0 : index
    %45 = tpu.strided_load %arg1[%c4_44, %c0_45] {strides = array<i32: 2, 1>} : memref<256x96xf32, #tpu.memory_space<vmem>>, vector<126x96xf32>
    %c3_46 = arith.constant 3 : index
    %c0_47 = arith.constant 0 : index
    %c0_48 = arith.constant 0 : index
    %46 = vector.load %arg2[%c3_46, %c0_47, %c0_48] : memref<5x96x256xf32, #tpu.memory_space<vmem>>, vector<1x96x256xf32>
    %47 = vector.shape_cast %46 : vector<1x96x256xf32> to vector<96x256xf32>
    %cst_49 = arith.constant dense<0.000000e+00> : vector<126x256xf32>
    %48 = tpu.matmul %45, %47, %cst_49 {dimension_numbers = #tpu.dot_dimension_numbers<[1], [0], [0], [1], [0, 0, 1, 1], [], []>} : vector<126x96xf32>, vector<96x256xf32>, vector<126x256xf32> -> vector<126x256xf32>
    %49 = arith.addf %44, %48 : vector<126x256xf32>
    %c5 = arith.constant 5 : index
    %c0_50 = arith.constant 0 : index
    %50 = tpu.strided_load %arg1[%c5, %c0_50] {strides = array<i32: 2, 1>} : memref<256x96xf32, #tpu.memory_space<vmem>>, vector<126x96xf32>
    %c4_51 = arith.constant 4 : index
    %c0_52 = arith.constant 0 : index
    %c0_53 = arith.constant 0 : index
    %51 = vector.load %arg2[%c4_51, %c0_52, %c0_53] : memref<5x96x256xf32, #tpu.memory_space<vmem>>, vector<1x96x256xf32>
    %52 = vector.shape_cast %51 : vector<1x96x256xf32> to vector<96x256xf32>
    %cst_54 = arith.constant dense<0.000000e+00> : vector<126x256xf32>
    %53 = tpu.matmul %50, %52, %cst_54 {dimension_numbers = #tpu.dot_dimension_numbers<[1], [0], [0], [1], [0, 0, 1, 1], [], []>} : vector<126x96xf32>, vector<96x256xf32>, vector<126x256xf32> -> vector<126x256xf32>
    %54 = arith.addf %49, %53 : vector<126x256xf32>
    %55 = vector.extract_strided_slice %54 {offsets = [0, 0], sizes = [126, 128], strides = [1, 1]} : vector<126x256xf32> to vector<126x128xf32>
    %56 = vector.extract_strided_slice %54 {offsets = [0, 128], sizes = [126, 128], strides = [1, 1]} : vector<126x256xf32> to vector<126x128xf32>
    %57 = arith.maximumf %55, %56 : vector<126x128xf32>
    %58 = arith.maximumf %28, %57 : vector<126x128xf32>
    %c0_55 = arith.constant 0 : index
    %c0_56 = arith.constant 0 : index
    %59 = vector.load %arg3[%c0_55, %c0_56] : memref<1x128xf32, #tpu.memory_space<vmem>>, vector<1x128xf32>
    %60 = vector.broadcast %59 : vector<1x128xf32> to vector<126x128xf32>
    %61 = arith.addf %58, %60 : vector<126x128xf32>
    %cst_57 = arith.constant 0.000000e+00 : f32
    %62 = vector.broadcast %cst_57 : f32 to vector<126x128xf32>
    %63 = arith.maximumf %61, %62 : vector<126x128xf32>
    %c0_58 = arith.constant 0 : index
    %c0_59 = arith.constant 0 : index
    %64 = vector.load %arg13[%c0_58, %c0_59] : memref<126x128xf32, #tpu.memory_space<vmem>>, vector<126x128xf32>
    tpu.vector_store %arg13[%c0_58, %c0_59], %63 {strides = array<i32>} : memref<126x128xf32, #tpu.memory_space<vmem>>, vector<126x128xf32>,
    %cst_60 = arith.constant 0.000000e+00 : f32
    %65 = vector.broadcast %cst_60 : f32 to vector<61x256xf32>
    %c0_61 = arith.constant 0 : index
    %c0_62 = arith.constant 0 : index
    %66 = tpu.strided_load %arg13[%c0_61, %c0_62] {strides = array<i32: 2, 1>} : memref<126x128xf32, #tpu.memory_space<vmem>>, vector<61x128xf32>
    %c0_63 = arith.constant 0 : index
    %c0_64 = arith.constant 0 : index
    %c0_65 = arith.constant 0 : index
    %67 = vector.load %arg4[%c0_63, %c0_64, %c0_65] : memref<5x128x256xf32, #tpu.memory_space<vmem>>, vector<1x128x256xf32>
    %68 = vector.shape_cast %67 : vector<1x128x256xf32> to vector<128x256xf32>
    %cst_66 = arith.constant dense<0.000000e+00> : vector<61x256xf32>
    %69 = tpu.matmul %66, %68, %cst_66 {dimension_numbers = #tpu.dot_dimension_numbers<[1], [0], [0], [1], [0, 0, 1, 1], [], []>} : vector<61x128xf32>, vector<128x256xf32>, vector<61x256xf32> -> vector<61x256xf32>
    %70 = arith.addf %65, %69 : vector<61x256xf32>
    %c1_67 = arith.constant 1 : index
    %c0_68 = arith.constant 0 : index
    %71 = tpu.strided_load %arg13[%c1_67, %c0_68] {strides = array<i32: 2, 1>} : memref<126x128xf32, #tpu.memory_space<vmem>>, vector<61x128xf32>
    %c1_69 = arith.constant 1 : index
    %c0_70 = arith.constant 0 : index
    %c0_71 = arith.constant 0 : index
    %72 = vector.load %arg4[%c1_69, %c0_70, %c0_71] : memref<5x128x256xf32, #tpu.memory_space<vmem>>, vector<1x128x256xf32>
    %73 = vector.shape_cast %72 : vector<1x128x256xf32> to vector<128x256xf32>
    %cst_72 = arith.constant dense<0.000000e+00> : vector<61x256xf32>
    %74 = tpu.matmul %71, %73, %cst_72 {dimension_numbers = #tpu.dot_dimension_numbers<[1], [0], [0], [1], [0, 0, 1, 1], [], []>} : vector<61x128xf32>, vector<128x256xf32>, vector<61x256xf32> -> vector<61x256xf32>
    %75 = arith.addf %70, %74 : vector<61x256xf32>
    %c2_73 = arith.constant 2 : index
    %c0_74 = arith.constant 0 : index
    %76 = tpu.strided_load %arg13[%c2_73, %c0_74] {strides = array<i32: 2, 1>} : memref<126x128xf32, #tpu.memory_space<vmem>>, vector<61x128xf32>
    %c2_75 = arith.constant 2 : index
    %c0_76 = arith.constant 0 : index
    %c0_77 = arith.constant 0 : index
    %77 = vector.load %arg4[%c2_75, %c0_76, %c0_77] : memref<5x128x256xf32, #tpu.memory_space<vmem>>, vector<1x128x256xf32>
    %78 = vector.shape_cast %77 : vector<1x128x256xf32> to vector<128x256xf32>
    %cst_78 = arith.constant dense<0.000000e+00> : vector<61x256xf32>
    %79 = tpu.matmul %76, %78, %cst_78 {dimension_numbers = #tpu.dot_dimension_numbers<[1], [0], [0], [1], [0, 0, 1, 1], [], []>} : vector<61x128xf32>, vector<128x256xf32>, vector<61x256xf32> -> vector<61x256xf32>
    %80 = arith.addf %75, %79 : vector<61x256xf32>
    %c3_79 = arith.constant 3 : index
    %c0_80 = arith.constant 0 : index
    %81 = tpu.strided_load %arg13[%c3_79, %c0_80] {strides = array<i32: 2, 1>} : memref<126x128xf32, #tpu.memory_space<vmem>>, vector<61x128xf32>
    %c3_81 = arith.constant 3 : index
    %c0_82 = arith.constant 0 : index
    %c0_83 = arith.constant 0 : index
    %82 = vector.load %arg4[%c3_81, %c0_82, %c0_83] : memref<5x128x256xf32, #tpu.memory_space<vmem>>, vector<1x128x256xf32>
    %83 = vector.shape_cast %82 : vector<1x128x256xf32> to vector<128x256xf32>
    %cst_84 = arith.constant dense<0.000000e+00> : vector<61x256xf32>
    %84 = tpu.matmul %81, %83, %cst_84 {dimension_numbers = #tpu.dot_dimension_numbers<[1], [0], [0], [1], [0, 0, 1, 1], [], []>} : vector<61x128xf32>, vector<128x256xf32>, vector<61x256xf32> -> vector<61x256xf32>
    %85 = arith.addf %80, %84 : vector<61x256xf32>
    %c4_85 = arith.constant 4 : index
    %c0_86 = arith.constant 0 : index
    %86 = tpu.strided_load %arg13[%c4_85, %c0_86] {strides = array<i32: 2, 1>} : memref<126x128xf32, #tpu.memory_space<vmem>>, vector<61x128xf32>
    %c4_87 = arith.constant 4 : index
    %c0_88 = arith.constant 0 : index
    %c0_89 = arith.constant 0 : index
    %87 = vector.load %arg4[%c4_87, %c0_88, %c0_89] : memref<5x128x256xf32, #tpu.memory_space<vmem>>, vector<1x128x256xf32>
    %88 = vector.shape_cast %87 : vector<1x128x256xf32> to vector<128x256xf32>
    %cst_90 = arith.constant dense<0.000000e+00> : vector<61x256xf32>
    %89 = tpu.matmul %86, %88, %cst_90 {dimension_numbers = #tpu.dot_dimension_numbers<[1], [0], [0], [1], [0, 0, 1, 1], [], []>} : vector<61x128xf32>, vector<128x256xf32>, vector<61x256xf32> -> vector<61x256xf32>
    %90 = arith.addf %85, %89 : vector<61x256xf32>
    %91 = vector.extract_strided_slice %90 {offsets = [0, 0], sizes = [61, 128], strides = [1, 1]} : vector<61x256xf32> to vector<61x128xf32>
    %92 = vector.extract_strided_slice %90 {offsets = [0, 128], sizes = [61, 128], strides = [1, 1]} : vector<61x256xf32> to vector<61x128xf32>
    %93 = arith.maximumf %91, %92 : vector<61x128xf32>
    %cst_91 = arith.constant 0.000000e+00 : f32
    %94 = vector.broadcast %cst_91 : f32 to vector<61x256xf32>
    %c1_92 = arith.constant 1 : index
    %c0_93 = arith.constant 0 : index
    %95 = tpu.strided_load %arg13[%c1_92, %c0_93] {strides = array<i32: 2, 1>} : memref<126x128xf32, #tpu.memory_space<vmem>>, vector<61x128xf32>
    %c0_94 = arith.constant 0 : index
    %c0_95 = arith.constant 0 : index
    %c0_96 = arith.constant 0 : index
    %96 = vector.load %arg4[%c0_94, %c0_95, %c0_96] : memref<5x128x256xf32, #tpu.memory_space<vmem>>, vector<1x128x256xf32>
    %97 = vector.shape_cast %96 : vector<1x128x256xf32> to vector<128x256xf32>
    %cst_97 = arith.constant dense<0.000000e+00> : vector<61x256xf32>
    %98 = tpu.matmul %95, %97, %cst_97 {dimension_numbers = #tpu.dot_dimension_numbers<[1], [0], [0], [1], [0, 0, 1, 1], [], []>} : vector<61x128xf32>, vector<128x256xf32>, vector<61x256xf32> -> vector<61x256xf32>
    %99 = arith.addf %94, %98 : vector<61x256xf32>
    %c2_98 = arith.constant 2 : index
    %c0_99 = arith.constant 0 : index
    %100 = tpu.strided_load %arg13[%c2_98, %c0_99] {strides = array<i32: 2, 1>} : memref<126x128xf32, #tpu.memory_space<vmem>>, vector<61x128xf32>
    %c1_100 = arith.constant 1 : index
    %c0_101 = arith.constant 0 : index
    %c0_102 = arith.constant 0 : index
    %101 = vector.load %arg4[%c1_100, %c0_101, %c0_102] : memref<5x128x256xf32, #tpu.memory_space<vmem>>, vector<1x128x256xf32>
    %102 = vector.shape_cast %101 : vector<1x128x256xf32> to vector<128x256xf32>
    %cst_103 = arith.constant dense<0.000000e+00> : vector<61x256xf32>
    %103 = tpu.matmul %100, %102, %cst_103 {dimension_numbers = #tpu.dot_dimension_numbers<[1], [0], [0], [1], [0, 0, 1, 1], [], []>} : vector<61x128xf32>, vector<128x256xf32>, vector<61x256xf32> -> vector<61x256xf32>
    %104 = arith.addf %99, %103 : vector<61x256xf32>
    %c3_104 = arith.constant 3 : index
    %c0_105 = arith.constant 0 : index
    %105 = tpu.strided_load %arg13[%c3_104, %c0_105] {strides = array<i32: 2, 1>} : memref<126x128xf32, #tpu.memory_space<vmem>>, vector<61x128xf32>
    %c2_106 = arith.constant 2 : index
    %c0_107 = arith.constant 0 : index
    %c0_108 = arith.constant 0 : index
    %106 = vector.load %arg4[%c2_106, %c0_107, %c0_108] : memref<5x128x256xf32, #tpu.memory_space<vmem>>, vector<1x128x256xf32>
    %107 = vector.shape_cast %106 : vector<1x128x256xf32> to vector<128x256xf32>
    %cst_109 = arith.constant dense<0.000000e+00> : vector<61x256xf32>
    %108 = tpu.matmul %105, %107, %cst_109 {dimension_numbers = #tpu.dot_dimension_numbers<[1], [0], [0], [1], [0, 0, 1, 1], [], []>} : vector<61x128xf32>, vector<128x256xf32>, vector<61x256xf32> -> vector<61x256xf32>
    %109 = arith.addf %104, %108 : vector<61x256xf32>
    %c4_110 = arith.constant 4 : index
    %c0_111 = arith.constant 0 : index
    %110 = tpu.strided_load %arg13[%c4_110, %c0_111] {strides = array<i32: 2, 1>} : memref<126x128xf32, #tpu.memory_space<vmem>>, vector<61x128xf32>
    %c3_112 = arith.constant 3 : index
    %c0_113 = arith.constant 0 : index
    %c0_114 = arith.constant 0 : index
    %111 = vector.load %arg4[%c3_112, %c0_113, %c0_114] : memref<5x128x256xf32, #tpu.memory_space<vmem>>, vector<1x128x256xf32>
    %112 = vector.shape_cast %111 : vector<1x128x256xf32> to vector<128x256xf32>
    %cst_115 = arith.constant dense<0.000000e+00> : vector<61x256xf32>
    %113 = tpu.matmul %110, %112, %cst_115 {dimension_numbers = #tpu.dot_dimension_numbers<[1], [0], [0], [1], [0, 0, 1, 1], [], []>} : vector<61x128xf32>, vector<128x256xf32>, vector<61x256xf32> -> vector<61x256xf32>
    %114 = arith.addf %109, %113 : vector<61x256xf32>
    %c5_116 = arith.constant 5 : index
    %c0_117 = arith.constant 0 : index
    %115 = tpu.strided_load %arg13[%c5_116, %c0_117] {strides = array<i32: 2, 1>} : memref<126x128xf32, #tpu.memory_space<vmem>>, vector<61x128xf32>
    %c4_118 = arith.constant 4 : index
    %c0_119 = arith.constant 0 : index
    %c0_120 = arith.constant 0 : index
    %116 = vector.load %arg4[%c4_118, %c0_119, %c0_120] : memref<5x128x256xf32, #tpu.memory_space<vmem>>, vector<1x128x256xf32>
    %117 = vector.shape_cast %116 : vector<1x128x256xf32> to vector<128x256xf32>
    %cst_121 = arith.constant dense<0.000000e+00> : vector<61x256xf32>
    %118 = tpu.matmul %115, %117, %cst_121 {dimension_numbers = #tpu.dot_dimension_numbers<[1], [0], [0], [1], [0, 0, 1, 1], [], []>} : vector<61x128xf32>, vector<128x256xf32>, vector<61x256xf32> -> vector<61x256xf32>
    %119 = arith.addf %114, %118 : vector<61x256xf32>
    %120 = vector.extract_strided_slice %119 {offsets = [0, 0], sizes = [61, 128], strides = [1, 1]} : vector<61x256xf32> to vector<61x128xf32>
    %121 = vector.extract_strided_slice %119 {offsets = [0, 128], sizes = [61, 128], strides = [1, 1]} : vector<61x256xf32> to vector<61x128xf32>
    %122 = arith.maximumf %120, %121 : vector<61x128xf32>
    %123 = arith.maximumf %93, %122 : vector<61x128xf32>
    %c0_122 = arith.constant 0 : index
    %c0_123 = arith.constant 0 : index
    %124 = vector.load %arg5[%c0_122, %c0_123] : memref<1x128xf32, #tpu.memory_space<vmem>>, vector<1x128xf32>
    %125 = vector.broadcast %124 : vector<1x128xf32> to vector<61x128xf32>
    %126 = arith.addf %123, %125 : vector<61x128xf32>
    %cst_124 = arith.constant 0.000000e+00 : f32
    %127 = vector.broadcast %cst_124 : f32 to vector<61x128xf32>
    %128 = arith.maximumf %126, %127 : vector<61x128xf32>
    %c0_125 = arith.constant 0 : index
    %c0_126 = arith.constant 0 : index
    %129 = vector.load %arg14[%c0_125, %c0_126] : memref<61x128xf32, #tpu.memory_space<vmem>>, vector<61x128xf32>
    tpu.vector_store %arg14[%c0_125, %c0_126], %128 {strides = array<i32>} : memref<61x128xf32, #tpu.memory_space<vmem>>, vector<61x128xf32>,
    %cst_127 = arith.constant 0.000000e+00 : f32
    %130 = vector.broadcast %cst_127 : f32 to vector<8x120xf32>
    %c0_128 = arith.constant 0 : index
    %c0_129 = arith.constant 0 : index
    %131 = tpu.strided_load %arg14[%c0_128, %c0_129] {strides = array<i32: 8, 1>} : memref<61x128xf32, #tpu.memory_space<vmem>>, vector<8x128xf32>
    %c0_130 = arith.constant 0 : index
    %c0_131 = arith.constant 0 : index
    %c0_132 = arith.constant 0 : index
    %132 = vector.load %arg6[%c0_130, %c0_131, %c0_132] : memref<5x128x120xf32, #tpu.memory_space<vmem>>, vector<1x128x120xf32>
    %133 = vector.shape_cast %132 : vector<1x128x120xf32> to vector<128x120xf32>
    %cst_133 = arith.constant dense<0.000000e+00> : vector<8x120xf32>
    %134 = tpu.matmul %131, %133, %cst_133 {dimension_numbers = #tpu.dot_dimension_numbers<[1], [0], [0], [1], [0, 0, 1, 1], [], []>} : vector<8x128xf32>, vector<128x120xf32>, vector<8x120xf32> -> vector<8x120xf32>
    %135 = arith.addf %130, %134 : vector<8x120xf32>
    %c1_134 = arith.constant 1 : index
    %c0_135 = arith.constant 0 : index
    %136 = tpu.strided_load %arg14[%c1_134, %c0_135] {strides = array<i32: 8, 1>} : memref<61x128xf32, #tpu.memory_space<vmem>>, vector<8x128xf32>
    %c1_136 = arith.constant 1 : index
    %c0_137 = arith.constant 0 : index
    %c0_138 = arith.constant 0 : index
    %137 = vector.load %arg6[%c1_136, %c0_137, %c0_138] : memref<5x128x120xf32, #tpu.memory_space<vmem>>, vector<1x128x120xf32>
    %138 = vector.shape_cast %137 : vector<1x128x120xf32> to vector<128x120xf32>
    %cst_139 = arith.constant dense<0.000000e+00> : vector<8x120xf32>
    %139 = tpu.matmul %136, %138, %cst_139 {dimension_numbers = #tpu.dot_dimension_numbers<[1], [0], [0], [1], [0, 0, 1, 1], [], []>} : vector<8x128xf32>, vector<128x120xf32>, vector<8x120xf32> -> vector<8x120xf32>
    %140 = arith.addf %135, %139 : vector<8x120xf32>
    %c2_140 = arith.constant 2 : index
    %c0_141 = arith.constant 0 : index
    %141 = tpu.strided_load %arg14[%c2_140, %c0_141] {strides = array<i32: 8, 1>} : memref<61x128xf32, #tpu.memory_space<vmem>>, vector<8x128xf32>
    %c2_142 = arith.constant 2 : index
    %c0_143 = arith.constant 0 : index
    %c0_144 = arith.constant 0 : index
    %142 = vector.load %arg6[%c2_142, %c0_143, %c0_144] : memref<5x128x120xf32, #tpu.memory_space<vmem>>, vector<1x128x120xf32>
    %143 = vector.shape_cast %142 : vector<1x128x120xf32> to vector<128x120xf32>
    %cst_145 = arith.constant dense<0.000000e+00> : vector<8x120xf32>
    %144 = tpu.matmul %141, %143, %cst_145 {dimension_numbers = #tpu.dot_dimension_numbers<[1], [0], [0], [1], [0, 0, 1, 1], [], []>} : vector<8x128xf32>, vector<128x120xf32>, vector<8x120xf32> -> vector<8x120xf32>
    %145 = arith.addf %140, %144 : vector<8x120xf32>
    %c3_146 = arith.constant 3 : index
    %c0_147 = arith.constant 0 : index
    %146 = tpu.strided_load %arg14[%c3_146, %c0_147] {strides = array<i32: 8, 1>} : memref<61x128xf32, #tpu.memory_space<vmem>>, vector<8x128xf32>
    %c3_148 = arith.constant 3 : index
    %c0_149 = arith.constant 0 : index
    %c0_150 = arith.constant 0 : index
    %147 = vector.load %arg6[%c3_148, %c0_149, %c0_150] : memref<5x128x120xf32, #tpu.memory_space<vmem>>, vector<1x128x120xf32>
    %148 = vector.shape_cast %147 : vector<1x128x120xf32> to vector<128x120xf32>
    %cst_151 = arith.constant dense<0.000000e+00> : vector<8x120xf32>
    %149 = tpu.matmul %146, %148, %cst_151 {dimension_numbers = #tpu.dot_dimension_numbers<[1], [0], [0], [1], [0, 0, 1, 1], [], []>} : vector<8x128xf32>, vector<128x120xf32>, vector<8x120xf32> -> vector<8x120xf32>
    %150 = arith.addf %145, %149 : vector<8x120xf32>
    %c4_152 = arith.constant 4 : index
    %c0_153 = arith.constant 0 : index
    %151 = tpu.strided_load %arg14[%c4_152, %c0_153] {strides = array<i32: 8, 1>} : memref<61x128xf32, #tpu.memory_space<vmem>>, vector<8x128xf32>
    %c4_154 = arith.constant 4 : index
    %c0_155 = arith.constant 0 : index
    %c0_156 = arith.constant 0 : index
    %152 = vector.load %arg6[%c4_154, %c0_155, %c0_156] : memref<5x128x120xf32, #tpu.memory_space<vmem>>, vector<1x128x120xf32>
    %153 = vector.shape_cast %152 : vector<1x128x120xf32> to vector<128x120xf32>
    %cst_157 = arith.constant dense<0.000000e+00> : vector<8x120xf32>
    %154 = tpu.matmul %151, %153, %cst_157 {dimension_numbers = #tpu.dot_dimension_numbers<[1], [0], [0], [1], [0, 0, 1, 1], [], []>} : vector<8x128xf32>, vector<128x120xf32>, vector<8x120xf32> -> vector<8x120xf32>
    %155 = arith.addf %150, %154 : vector<8x120xf32>
    %c0_158 = arith.constant 0 : index
    %c0_159 = arith.constant 0 : index
    %156 = vector.load %arg7[%c0_158, %c0_159] : memref<1x120xf32, #tpu.memory_space<vmem>>, vector<1x120xf32>
    %157 = vector.broadcast %156 : vector<1x120xf32> to vector<8x120xf32>
    %158 = arith.addf %155, %157 : vector<8x120xf32>
    %cst_160 = arith.constant 0.000000e+00 : f32
    %159 = vector.broadcast %cst_160 : f32 to vector<8x120xf32>
    %160 = arith.maximumf %158, %159 : vector<8x120xf32>
    %c0_161 = arith.constant 0 : index
    %c0_162 = arith.constant 0 : index
    %161 = vector.load %arg8[%c0_161, %c0_162] : memref<120x84xf32, #tpu.memory_space<vmem>>, vector<120x84xf32>
    %cst_163 = arith.constant dense<0.000000e+00> : vector<8x84xf32>
    %162 = tpu.matmul %160, %161, %cst_163 {dimension_numbers = #tpu.dot_dimension_numbers<[1], [0], [0], [1], [0, 0, 1, 1], [], []>} : vector<8x120xf32>, vector<120x84xf32>, vector<8x84xf32> -> vector<8x84xf32>
    %c0_164 = arith.constant 0 : index
    %c0_165 = arith.constant 0 : index
    %163 = vector.load %arg9[%c0_164, %c0_165] : memref<1x84xf32, #tpu.memory_space<vmem>>, vector<1x84xf32>
    %164 = vector.broadcast %163 : vector<1x84xf32> to vector<8x84xf32>
    %165 = arith.addf %162, %164 : vector<8x84xf32>
    %cst_166 = arith.constant 0.000000e+00 : f32
    %166 = vector.broadcast %cst_166 : f32 to vector<8x84xf32>
    %167 = arith.maximumf %165, %166 : vector<8x84xf32>
    %c0_167 = arith.constant 0 : index
    %c0_168 = arith.constant 0 : index
    %168 = vector.load %arg10[%c0_167, %c0_168] : memref<84x10xf32, #tpu.memory_space<vmem>>, vector<84x10xf32>
    %cst_169 = arith.constant dense<0.000000e+00> : vector<8x10xf32>
    %169 = tpu.matmul %167, %168, %cst_169 {dimension_numbers = #tpu.dot_dimension_numbers<[1], [0], [0], [1], [0, 0, 1, 1], [], []>} : vector<8x84xf32>, vector<84x10xf32>, vector<8x10xf32> -> vector<8x10xf32>
    %c0_170 = arith.constant 0 : index
    %c0_171 = arith.constant 0 : index
    %170 = vector.load %arg11[%c0_170, %c0_171] : memref<1x10xf32, #tpu.memory_space<vmem>>, vector<1x10xf32>
    %171 = vector.broadcast %170 : vector<1x10xf32> to vector<8x10xf32>
    %172 = arith.addf %169, %171 : vector<8x10xf32>
    %c0_172 = arith.constant 0 : index
    %c0_173 = arith.constant 0 : index
    %173 = vector.load %arg12[%c0_172, %c0_173] : memref<8x10xf32, #tpu.memory_space<vmem>>, vector<8x10xf32>
    tpu.vector_store %arg12[%c0_172, %c0_173], %172 {strides = array<i32>} : memref<8x10xf32, #tpu.memory_space<vmem>>, vector<8x10xf32>,
    return
  }
  func.func @transform_0(%arg0: i32) -> (i32, i32) {
    %c0_i32 = arith.constant 0 : i32
    %c0_i32_0 = arith.constant 0 : i32
    return %arg0, %c0_i32 : i32, i32
  }
  func.func @transform_1(%arg0: i32) -> (i32, i32, i32) {
    %c0_i32 = arith.constant 0 : i32
    %c0_i32_0 = arith.constant 0 : i32
    %c0_i32_1 = arith.constant 0 : i32
    %c0_i32_2 = arith.constant 0 : i32
    return %c0_i32, %c0_i32_0, %c0_i32_1 : i32, i32, i32
  }
  func.func @transform_2(%arg0: i32) -> (i32, i32) {
    %c0_i32 = arith.constant 0 : i32
    %c0_i32_0 = arith.constant 0 : i32
    %c0_i32_1 = arith.constant 0 : i32
    return %c0_i32, %c0_i32_0 : i32, i32
  }
  func.func @transform_3(%arg0: i32) -> (i32, i32, i32) {
    %c0_i32 = arith.constant 0 : i32
    %c0_i32_0 = arith.constant 0 : i32
    %c0_i32_1 = arith.constant 0 : i32
    %c0_i32_2 = arith.constant 0 : i32
    return %c0_i32, %c0_i32_0, %c0_i32_1 : i32, i32, i32
  }
  func.func @transform_4(%arg0: i32) -> (i32, i32) {
    %c0_i32 = arith.constant 0 : i32
    %c0_i32_0 = arith.constant 0 : i32
    %c0_i32_1 = arith.constant 0 : i32
    return %c0_i32, %c0_i32_0 : i32, i32
  }
  func.func @transform_5(%arg0: i32) -> (i32, i32, i32) {
    %c0_i32 = arith.constant 0 : i32
    %c0_i32_0 = arith.constant 0 : i32
    %c0_i32_1 = arith.constant 0 : i32
    %c0_i32_2 = arith.constant 0 : i32
    return %c0_i32, %c0_i32_0, %c0_i32_1 : i32, i32, i32
  }
  func.func @transform_6(%arg0: i32) -> (i32, i32) {
    %c0_i32 = arith.constant 0 : i32
    %c0_i32_0 = arith.constant 0 : i32
    %c0_i32_1 = arith.constant 0 : i32
    return %c0_i32, %c0_i32_0 : i32, i32
  }
  func.func @transform_7(%arg0: i32) -> (i32, i32) {
    %c0_i32 = arith.constant 0 : i32
    %c0_i32_0 = arith.constant 0 : i32
    %c0_i32_1 = arith.constant 0 : i32
    return %c0_i32, %c0_i32_0 : i32, i32
  }
  func.func @transform_8(%arg0: i32) -> (i32, i32) {
    %c0_i32 = arith.constant 0 : i32
    %c0_i32_0 = arith.constant 0 : i32
    %c0_i32_1 = arith.constant 0 : i32
    return %c0_i32, %c0_i32_0 : i32, i32
  }
  func.func @transform_9(%arg0: i32) -> (i32, i32) {
    %c0_i32 = arith.constant 0 : i32
    %c0_i32_0 = arith.constant 0 : i32
    %c0_i32_1 = arith.constant 0 : i32
    return %c0_i32, %c0_i32_0 : i32, i32
  }
  func.func @transform_10(%arg0: i32) -> (i32, i32) {
    %c0_i32 = arith.constant 0 : i32
    %c0_i32_0 = arith.constant 0 : i32
    %c0_i32_1 = arith.constant 0 : i32
    return %c0_i32, %c0_i32_0 : i32, i32
  }
  func.func @transform_11(%arg0: i32) -> (i32, i32) {
    %c0_i32 = arith.constant 0 : i32
    %c0_i32_0 = arith.constant 0 : i32
    return %arg0, %c0_i32 : i32, i32
  }
}

</mosaic_0001>

<bundles_post_ra>
// kernel: tile.13
= control target key start
LH: loop header
LB: loop body
LE: loop exit
PB: predicated region body
PF: predicated region fallthrough
CT: control target
= control target key end

     0   :  { %s28_s0 = inlined_call_operand.vmem [shape: f32[6], index: 0, kind: input, shape index: {}]   ;;  %s29_s1 = inlined_call_operand.vmem [shape: f32[14,6], index: 1, kind: output, shape index: {}]  }
   0x1   :  { %v4_v0 = vld [vmem:[%s28_s0] ss:$0 sm:$0xff] }
   0x2   :  { %5 = vst [vmem:[%s29_s1] sm:$0xff] %v4_v0  ;;  %8 = vst [vmem:[%s29_s1 + $0x8] sm:$0xff] %v4_v0 }

// kernel: tile.14
= control target key start
LH: loop header
LB: loop body
LE: loop exit
PB: predicated region body
PF: predicated region fallthrough
CT: control target
= control target key end

     0   :  { %s117_s10 = smov 78   ;;  %s118_s11 = smov 66   ;;  %vm3_vm0 = vcmask 48128   ;;  %vm9_vm1 = vcmask 687728   ;;  %vm15_vm2 = vcmask 638528   ;;  %vm21_vm3 = vcmask 589328   ;;  %s185_s0 = inlined_call_operand.vmem [shape: f32[14,6], index: 0, kind: input, shape index: {}]   ;;  %s186_s1 = inlined_call_operand.vmem [shape: f32[84], index: 1, kind: output, shape index: {}]  }
   0x1   :  { %v91_v0 = vld [vmem:[%s185_s0 + $0xd] sm:$0x1]   ;;  %v93_v1 = vld [vmem:[%s185_s0 + $0xb] sm:$0x1]   ;;  %v92_v2 = vld [vmem:[%s185_s0 + $0xc] sm:$0x1]  }
   0x2   :  { %7 = vrot.lane.b32.xlu0 %v91_v0, %s117_s10  ;;  %19 = vrot.lane.b32.xlu1 %v93_v1, %s118_s11  ;;  %v94_v3 = vld [vmem:[%s185_s0 + $0xa] sm:$0x1]   ;;  %s119_s16 = smov 72   ;;  %s120_s17 = smov 60   ;;  %v95_v4 = vld [vmem:[%s185_s0 + $0x9] sm:$0x1]  }
   0x3   :  { %v96_v5 = vld [vmem:[%s185_s0 + $0x8] sm:$0x1]   ;;  %v2_v6 = vld [vmem:[%s185_s0] sm:$0x1]   ;;  %s121_s24 = smov 54   ;;  %s122_s25 = smov 48  }
   0x4   :  { %4 = vst.msk [vmem:[#allocation0] sm:$0x1] %vm3_vm0, %v2_v6   ;;  %v97_v7 = vld [vmem:[%s185_s0 + $0x7] sm:$0x1]   ;;  %v98_v8 = vld [vmem:[%s185_s0 + $0x6] sm:$0x1]  }
   0x5   :  { %s123_s30 = smov 42   ;;  %s124_s2 = smov 36   ;;  %v99_v9 = vld [vmem:[%s185_s0 + $0x5] sm:$0x1]   ;;  %v100_v10 = vld [vmem:[%s185_s0 + $0x4] sm:$0x1]  }
   0x6   :  { %13 = vrot.lane.b32.xlu0 %v92_v2, %s119_s16  ;;  %25 = vrot.lane.b32.xlu1 %v94_v3, %s120_s17  ;;  %s125_s7 = smov 30   ;;  %s126_s8 = smov 24   ;;  %v101_v11 = vld [vmem:[%s185_s0 + $0x3] sm:$0x1]   ;;  %v102_v12 = vld [vmem:[%s185_s0 + $0x2] sm:$0x1]  }
   0x7   :  { %s127_s13 = smov 18   ;;  %s128_s14 = smov 12   ;;  %v103_v13 = vld [vmem:[%s185_s0 + $0x1] sm:$0x1]   ;;  %vm27_vm4 = vcmask 540128   ;;  %vm33_vm5 = vcmask 490928  }
   0x8   :  { %s129_s0 = smov 6   ;;  %vm39_vm6 = vcmask 441728   ;;  %vm45_vm7 = vcmask 392528   ;;  %vm51_vm8 = vcmask 343328   ;;  %vm57_vm9 = vcmask 294128  }
   0x9   :  { %vm63_vm10 = vcmask 244928   ;;  %vm69_vm11 = vcmask 195728   ;;  %vm75_vm12 = vcmask 146528   ;;  %vm81_vm13 = vcmask 97328  }
   0xa   :  { %31 = vrot.lane.b32.xlu0 %v95_v4, %s121_s24  ;;  %37 = vrot.lane.b32.xlu1 %v96_v5, %s122_s25 }
   0xe   :  { %43 = vrot.lane.b32.xlu0 %v97_v7, %s123_s30  ;;  %49 = vrot.lane.b32.xlu1 %v98_v8, %s124_s2 }
  0x12   :  { %55 = vrot.lane.b32.xlu0 %v99_v9, %s125_s7  ;;  %61 = vrot.lane.b32.xlu1 %v100_v10, %s126_s8 }
  0x16   :  { %67 = vrot.lane.b32.xlu0 %v101_v11, %s127_s13  ;;  %73 = vrot.lane.b32.xlu1 %v102_v12, %s128_s14 }
  0x1a   :  { %79 = vrot.lane.b32.xlu0 %v103_v13, %s129_s0 }
  0x74   :  { %v8_v14 = vpop.permute.xlu0 %7   ;;  %v20_v15 = vpop.permute.xlu1 %19  }
  0x75   :  { %10 = vst.msk [vmem:[#allocation0] sm:$0x1] %vm9_vm1, %v8_v14  }
  0x78   :  { %v14_v16 = vpop.permute.xlu0 %13   ;;  %v26_v17 = vpop.permute.xlu1 %25  }
  0x79   :  { %16 = vst.msk [vmem:[#allocation0] sm:$0x1] %vm15_vm2, %v14_v16  }
  0x7a   :  { %22 = vst.msk [vmem:[#allocation0] sm:$0x1] %vm21_vm3, %v20_v15  }
  0x7b   :  { %28 = vst.msk [vmem:[#allocation0] sm:$0x1] %vm27_vm4, %v26_v17  }
  0x7c   :  { %v32_v18 = vpop.permute.xlu0 %31   ;;  %v38_v19 = vpop.permute.xlu1 %37  }
  0x7d   :  { %34 = vst.msk [vmem:[#allocation0] sm:$0x1] %vm33_vm5, %v32_v18  }
  0x7e   :  { %40 = vst.msk [vmem:[#allocation0] sm:$0x1] %vm39_vm6, %v38_v19  }
  0x80   :  { %v44_v20 = vpop.permute.xlu0 %43   ;;  %v50_v21 = vpop.permute.xlu1 %49  }
  0x81   :  { %46 = vst.msk [vmem:[#allocation0] sm:$0x1] %vm45_vm7, %v44_v20  }
  0x82   :  { %52 = vst.msk [vmem:[#allocation0] sm:$0x1] %vm51_vm8, %v50_v21  }
  0x84   :  { %v56_v22 = vpop.permute.xlu0 %55   ;;  %v62_v23 = vpop.permute.xlu1 %61  }
  0x85   :  { %58 = vst.msk [vmem:[#allocation0] sm:$0x1] %vm57_vm9, %v56_v22  }
  0x86   :  { %64 = vst.msk [vmem:[#allocation0] sm:$0x1] %vm63_vm10, %v62_v23  }
  0x88   :  { %v68_v24 = vpop.permute.xlu0 %67   ;;  %v74_v25 = vpop.permute.xlu1 %73  }
  0x89   :  { %70 = vst.msk [vmem:[#allocation0] sm:$0x1] %vm69_vm11, %v68_v24  }
  0x8a   :  { %76 = vst.msk [vmem:[#allocation0] sm:$0x1] %vm75_vm12, %v74_v25  }
  0x8c   :  { %v80_v26 = vpop.permute.xlu0 %79  }
  0x8d   :  { %82 = vst.msk [vmem:[#allocation0] sm:$0x1] %vm81_vm13, %v80_v26  }
  0x94   :  { %v87_v27 = vld [vmem:[#allocation0] sm:$0x1] }
  0x95   :  { %90 = vst [vmem:[%s186_s1] sm:$0x1] %v87_v27 }

// kernel: tile.18
= control target key start
LH: loop header
LB: loop body
LE: loop exit
PB: predicated region body
PF: predicated region fallthrough
CT: control target
= control target key end

     0   :  { %s22_s0 = inlined_call_operand.vmem [shape: f32[16], index: 0, kind: input, shape index: {}]   ;;  %s23_s1 = inlined_call_operand.vmem [shape: f32[5,16], index: 1, kind: output, shape index: {}]  }
   0x1   :  { %v4_v0 = vld [vmem:[%s22_s0] ss:$0 sm:$0xff] }
   0x2   :  { %5 = vst [vmem:[%s23_s1] sm:$0xff] %v4_v0 }

// kernel: tile.19
= control target key start
LH: loop header
LB: loop body
LE: loop exit
PB: predicated region body
PF: predicated region fallthrough
CT: control target
= control target key end

     0   :  { %s45_s10 = smov 64   ;;  %s46_s11 = smov 32   ;;  %vm3_vm0 = vcmask 130048   ;;  %vm9_vm1 = vcmask 654848   ;;  %vm15_vm2 = vcmask 523648   ;;  %vm21_vm3 = vcmask 392448   ;;  %s77_s0 = inlined_call_operand.vmem [shape: f32[5,16], index: 0, kind: input, shape index: {}]   ;;  %s78_s1 = inlined_call_operand.vmem [shape: f32[80], index: 1, kind: output, shape index: {}]  }
   0x1   :  { %v37_v0 = vld [vmem:[%s77_s0 + $0x4] sm:$0x1]   ;;  %v39_v1 = vld [vmem:[%s77_s0 + $0x2] sm:$0x1]   ;;  %v38_v2 = vld [vmem:[%s77_s0 + $0x3] sm:$0x1]  }
   0x2   :  { %7 = vrot.lane.b32.xlu0 %v37_v0, %s45_s10  ;;  %19 = vrot.lane.b32.xlu1 %v39_v1, %s46_s11  ;;  %v40_v3 = vld [vmem:[%s77_s0 + $0x1] sm:$0x1]   ;;  %v2_v4 = vld [vmem:[%s77_s0] sm:$0x1]   ;;  %s47_s0 = smov 48   ;;  %s48_s18 = smov 16  }
   0x3   :  { %4 = vst.msk [vmem:[#allocation0] sm:$0x1] %vm3_vm0, %v2_v4   ;;  %vm27_vm4 = vcmask 261248  }
   0x6   :  { %13 = vrot.lane.b32.xlu0 %v38_v2, %s47_s0  ;;  %25 = vrot.lane.b32.xlu1 %v40_v3, %s48_s18 }
  0x74   :  { %v8_v5 = vpop.permute.xlu0 %7   ;;  %v20_v6 = vpop.permute.xlu1 %19  }
  0x75   :  { %10 = vst.msk [vmem:[#allocation0] sm:$0x1] %vm9_vm1, %v8_v5  }
  0x78   :  { %v14_v7 = vpop.permute.xlu0 %13   ;;  %v26_v8 = vpop.permute.xlu1 %25  }
  0x79   :  { %16 = vst.msk [vmem:[#allocation0] sm:$0x1] %vm15_vm2, %v14_v7  }
  0x7a   :  { %22 = vst.msk [vmem:[#allocation0] sm:$0x1] %vm21_vm3, %v20_v6  }
  0x7b   :  { %28 = vst.msk [vmem:[#allocation0] sm:$0x1] %vm27_vm4, %v26_v8  }
  0x82   :  { %v33_v9 = vld [vmem:[#allocation0] sm:$0x1] }
  0x83   :  { %36 = vst [vmem:[%s78_s1] sm:$0x1] %v33_v9 }

// kernel: net_forward.1
= control target key start
LH: loop header
LB: loop body
LE: loop exit
PB: predicated region body
PF: predicated region fallthrough
CT: control target
= control target key end

     0   :  { %v10125_v3 = vmov 0.0   ;;  %vm150_vm0 = vcmask 785408   ;;  %vm5729_vm1 = vmmov 0   ;;  %vm4574_vm2 = vcmask 982016   ;;  %s10113_s1 = inlined_call_operand.vmem [shape: f32[5,96,256], index: 1, kind: input, shape index: {}]   ;;  %s10114_s0 = inlined_call_operand.vmem [shape: f32[256,96], index: 0, kind: input, shape index: {}]   ;;  %s10115_s3 = inlined_call_operand.vmem [shape: f32[5,128,256], index: 3, kind: input, shape index: {}]   ;;  %s10116_s2 = inlined_call_operand.vmem [shape: f32[1,128], index: 2, kind: input, shape index: {}]   ;;  %s10117_s5 = inlined_call_operand.vmem [shape: f32[5,128,120], index: 5, kind: input, shape index: {}]   ;;  %s10118_s4 = inlined_call_operand.vmem [shape: f32[1,128], index: 4, kind: input, shape index: {}]   ;;  %s10119_s7 = inlined_call_operand.vmem [shape: f32[120,84], index: 7, kind: input, shape index: {}]   ;;  %s10120_s6 = inlined_call_operand.vmem [shape: f32[1,120], index: 6, kind: input, shape index: {}]   ;;  %s10121_s9 = inlined_call_operand.vmem [shape: f32[84,10], index: 9, kind: input, shape index: {}]   ;;  %s10122_s8 = inlined_call_operand.vmem [shape: f32[1,84], index: 8, kind: input, shape index: {}]   ;;  %s10123_s10 = inlined_call_operand.vmem [shape: f32[1,10], index: 10, kind: input, shape index: {}]   ;;  %s10124_s11 = inlined_call_operand.vmem [shape: f32[8,10], index: 11, kind: output, shape index: {}]  }
   0x1   :  { %v5793_v0 = vld [vmem:[%s10113_s1 + $0x178] sm:$0xff]  ;;  %v5803_v2 = vld [vmem:[%s10113_s1 + $0x170] sm:$0xff]  ;;  %263 = vmatprep.mubr.f32.mxu0 %v10125_v3  ;;  %472 = vmatprep.mubr.f32.mxu1 %v10125_v3  ;;  %v5817_v5 = vld [vmem:[%s10113_s1 + $0x168] sm:$0xff]  ;;  %vm4671_vm3 = vcmask 1043456   ;;  %vm4667_vm4 = vcmask 687104   ;;  %vm4745_vm5 = vcmask 80896  }
   0x2   :  { %v5798_v1 = vld [vmem:[%s10113_s1 + $0xb8] sm:$0xff]  ;;  %207 = vmatprep.subr.mxu0 %v5793_v0  ;;  %v5812_v4 = vld [vmem:[%s10113_s1 + $0xb0] sm:$0xff]  ;;  %v5822_v6 = vld [vmem:[%s10113_s1 + $0xa8] sm:$0xff] }
   0x3   :  { %416 = vmatprep.subr.mxu1 %v5798_v1  ;;  %208 = vmatpush1.msra.mxu0 %v5803_v2  ;;  %v5829_v7 = vld [vmem:[%s10113_s1 + $0x160] sm:$0xff]  ;;  %v5839_v9 = vld [vmem:[%s10113_s1 + $0x158] sm:$0xff]  ;;  %v5851_v11 = vld [vmem:[%s10113_s1 + $0x150] sm:$0xff] }
   0x4   :  { %417 = vmatpush1.msra.mxu1 %v5812_v4  ;;  %v5834_v8 = vld [vmem:[%s10113_s1 + $0xa0] sm:$0xff]  ;;  %209 = vmatprep.subr.mxu0 %v5817_v5  ;;  %v5846_v10 = vld [vmem:[%s10113_s1 + $0x98] sm:$0xff]  ;;  %v5856_v12 = vld [vmem:[%s10113_s1 + $0x90] sm:$0xff] }
   0x5   :  { %418 = vmatprep.subr.mxu1 %v5822_v6  ;;  %210 = vmatpush1.msra.mxu0 %v5829_v7  ;;  %v5863_v13 = vld [vmem:[%s10113_s1 + $0x148] sm:$0xff]  ;;  %v5875_v15 = vld [vmem:[%s10113_s1 + $0x140] sm:$0xff]  ;;  %v5887_v17 = vld [vmem:[%s10113_s1 + $0x138] sm:$0xff] }
   0x6   :  { %419 = vmatpush1.msra.mxu1 %v5834_v8  ;;  %v5868_v14 = vld [vmem:[%s10113_s1 + $0x88] sm:$0xff]  ;;  %211 = vmatprep.subr.mxu0 %v5839_v9  ;;  %v5880_v16 = vld [vmem:[%s10113_s1 + $0x80] sm:$0xff]  ;;  %v5892_v18 = vld [vmem:[%s10113_s1 + $0x78] sm:$0xff] }
   0x7   :  { %420 = vmatprep.subr.mxu1 %v5846_v10  ;;  %212 = vmatpush1.msra.mxu0 %v5851_v11  ;;  %v5899_v19 = vld [vmem:[%s10113_s1 + $0x130] sm:$0xff]  ;;  %v5911_v21 = vld [vmem:[%s10113_s1 + $0x128] sm:$0xff]  ;;  %v5923_v23 = vld [vmem:[%s10113_s1 + $0x120] sm:$0xff] }
   0x8   :  { %421 = vmatpush1.msra.mxu1 %v5856_v12  ;;  %213 = vmatprep.subr.mxu0 %v5863_v13  ;;  %v5904_v20 = vld [vmem:[%s10113_s1 + $0x70] sm:$0xff]  ;;  %v5916_v22 = vld [vmem:[%s10113_s1 + $0x68] sm:$0xff]  ;;  %v5928_v24 = vld [vmem:[%s10113_s1 + $0x60] sm:$0xff] }
   0x9   :  { %422 = vmatprep.subr.mxu1 %v5868_v14  ;;  %214 = vmatpush1.msra.mxu0 %v5875_v15  ;;  %v5935_v25 = vld [vmem:[%s10113_s1 + $0x118] sm:$0xff]  ;;  %v5947_v27 = vld [vmem:[%s10113_s1 + $0x110] sm:$0xff]  ;;  %v5959_v29 = vld [vmem:[%s10113_s1 + $0x108] sm:$0xff] }
   0xa   :  { %423 = vmatpush1.msra.mxu1 %v5880_v16  ;;  %215 = vmatprep.subr.mxu0 %v5887_v17  ;;  %v5940_v26 = vld [vmem:[%s10113_s1 + $0x58] sm:$0xff]  ;;  %v5952_v28 = vld [vmem:[%s10113_s1 + $0x50] sm:$0xff]  ;;  %v5964_v30 = vld [vmem:[%s10113_s1 + $0x48] sm:$0xff] }
   0xb   :  { %424 = vmatprep.subr.mxu1 %v5892_v18  ;;  %216 = vmatpush1.msra.mxu0 %v5899_v19  ;;  %v5971_v31 = vld [vmem:[%s10113_s1 + $0x100] sm:$0xff]  ;;  %v5983_v33 = vld [vmem:[%s10113_s1 + $0xf8] sm:$0xff]  ;;  %v5995_v35 = vld [vmem:[%s10113_s1 + $0xf0] sm:$0xff] }
   0xc   :  { %425 = vmatpush1.msra.mxu1 %v5904_v20  ;;  %217 = vmatprep.subr.mxu0 %v5911_v21  ;;  %v5976_v32 = vld [vmem:[%s10113_s1 + $0x40] sm:$0xff]  ;;  %v5988_v34 = vld [vmem:[%s10113_s1 + $0x38] sm:$0xff]  ;;  %v6000_v36 = vld [vmem:[%s10113_s1 + $0x30] sm:$0xff] }
   0xd   :  { %426 = vmatprep.subr.mxu1 %v5916_v22  ;;  %218 = vmatpush1.msra.mxu0 %v5923_v23  ;;  %10296 = vst [vmem:[#allocation4_spill] sm:$0xff] %v5988_v34  ;;  %10297 = vst [vmem:[#allocation5_spill] sm:$0xff] %v6000_v36  ;;  %v6007_v37 = vld [vmem:[%s10113_s1 + $0xe8] sm:$0xff]  ;;  %v6019_v39 = vld [vmem:[%s10113_s1 + $0xe0] sm:$0xff] }
   0xe   :  { %427 = vmatpush1.msra.mxu1 %v5928_v24  ;;  %219 = vmatprep.subr.mxu0 %v5935_v25  ;;  %v6012_v38 = vld [vmem:[%s10113_s1 + $0x28] sm:$0xff]  ;;  %v6024_v40 = vld [vmem:[%s10113_s1 + $0x20] sm:$0xff]  ;;  %v6031_v41 = vld [vmem:[%s10113_s1 + $0xd8] sm:$0xff] }
   0xf   :  { %428 = vmatprep.subr.mxu1 %v5940_v26  ;;  %220 = vmatpush1.msra.mxu0 %v5947_v27  ;;  %10298 = vst [vmem:[#allocation6_spill] sm:$0xff] %v6012_v38  ;;  %10299 = vst [vmem:[#allocation7_spill] sm:$0xff] %v6024_v40  ;;  %v6036_v42 = vld [vmem:[%s10113_s1 + $0x18] sm:$0xff]  ;;  %v6043_v43 = vld [vmem:[%s10113_s1 + $0xd0] sm:$0xff] }
  0x10   :  { %429 = vmatpush1.msra.mxu1 %v5952_v28  ;;  %221 = vmatprep.subr.mxu0 %v5959_v29  ;;  %10300 = vst [vmem:[#allocation8_spill] sm:$0xff] %v6036_v42  ;;  %v6048_v44 = vld [vmem:[%s10113_s1 + $0x10] sm:$0xff]  ;;  %v6055_v45 = vld [vmem:[%s10113_s1 + $0xc8] sm:$0xff]  ;;  %v6067_v47 = vld [vmem:[%s10113_s1 + $0xc0] sm:$0xff] }
  0x11   :  { %430 = vmatprep.subr.mxu1 %v5964_v30  ;;  %222 = vmatpush1.msra.mxu0 %v5971_v31  ;;  %10301 = vst [vmem:[#allocation9_spill] sm:$0xff] %v6048_v44  ;;  %v6060_v46 = vld [vmem:[%s10113_s1 + $0x8] sm:$0xff]  ;;  %v6072_v48 = vld [vmem:[%s10113_s1] sm:$0xff]  ;;  %v6089_v51 = vld [vmem:[%s10113_s1 + $0x238] sm:$0xff] }
  0x12   :  { %431 = vmatpush1.msra.mxu1 %v5976_v32  ;;  %223 = vmatprep.subr.mxu0 %v5983_v33  ;;  %10302 = vst [vmem:[#allocation10_spill] sm:$0xff] %v6060_v46  ;;  %10303 = vst [vmem:[#allocation11_spill] sm:$0xff] %v6072_v48  ;;  %v6079_v49 = vld [vmem:[%s10114_s0 + $0x1] ss:$2 sm:$0xff]  ;;  %v38_v50 = vld [vmem:[%s10114_s0] ss:$2 sm:$0xff] }
  0x13   :  { %432 = vmatprep.subr.mxu1 %v5988_v34  ;;  %224 = vmatpush1.msra.mxu0 %v5995_v35  ;;  %10304 = vst [vmem:[#allocation12_spill] sm:$0xff] %v6079_v49  ;;  %v6094_v52 = vld [vmem:[%s10113_s1 + $0x2f8] sm:$0xff]  ;;  %v6101_v53 = vld [vmem:[%s10113_s1 + $0x230] sm:$0xff]  ;;  %v6126_v57 = vld [vmem:[%s10113_s1 + $0x228] sm:$0xff] }
  0x14   :  { %433 = vmatpush1.msra.mxu1 %v6000_v36  ;;  %225 = vmatprep.subr.mxu0 %v6007_v37  ;;  %10305 = vst [vmem:[#allocation13_spill] sm:$0xff] %v6094_v52  ;;  %v6109_v54 = vld [vmem:[%s10113_s1 + $0x2f0] sm:$0xff]  ;;  %v6133_v58 = vld [vmem:[%s10113_s1 + $0x220] sm:$0xff]  ;;  %v6141_v59 = vld [vmem:[%s10113_s1 + $0x2e8] sm:$0xff] }
  0x15   :  { %434 = vmatprep.subr.mxu1 %v6012_v38  ;;  %226 = vmatpush1.msra.mxu0 %v6019_v39  ;;  %10306 = vst [vmem:[#allocation14_spill] sm:$0xff] %v6109_v54  ;;  %v6116_v55 = vld [vmem:[%s10114_s0 + $0x11] ss:$2 sm:$0xff]  ;;  %v4751_v56 = vld [vmem:[%s10114_s0 + $0x10] ss:$2 sm:$0xff]  ;;  %10308 = vst [vmem:[#allocation16_spill] sm:$0xff] %v6141_v59 }
  0x16   :  { %435 = vmatpush1.msra.mxu1 %v6024_v40  ;;  %227 = vmatprep.subr.mxu0 %v6031_v41  ;;  %10307 = vst [vmem:[#allocation15_spill] sm:$0xff] %v6116_v55  ;;  %v6146_v60 = vld [vmem:[%s10113_s1 + $0x218] sm:$0xff]  ;;  %v6153_v61 = vld [vmem:[%s10114_s0 + $0x21] ss:$2 sm:$0xff]  ;;  %v4752_v62 = vld [vmem:[%s10114_s0 + $0x20] ss:$2 sm:$0xff] }
  0x17   :  { %436 = vmatprep.subr.mxu1 %v6036_v42  ;;  %228 = vmatpush1.msra.mxu0 %v6043_v43  ;;  %10309 = vst [vmem:[#allocation17_spill] sm:$0xff] %v6153_v61  ;;  %v6163_v63 = vld [vmem:[%s10113_s1 + $0x2e0] sm:$0xff]  ;;  %v6318_v42 = vld [vmem:[%s10113_s1 + $0x1d0] sm:$0xff] }
  0x18   :  { %437 = vmatpush1.msra.mxu1 %v6048_v44  ;;  %229 = vmatprep.subr.mxu0 %v6055_v45  ;;  %10310 = vst [vmem:[#allocation18_spill] sm:$0xff] %v6163_v63  ;;  %v6312_v44 = vld [vmem:[%s10113_s1 + $0x2a0] sm:$0xff]  ;;  %v6349_v40 = vld [vmem:[%s10113_s1 + $0x290] sm:$0xff] }
  0x19   :  { %438 = vmatprep.subr.mxu1 %v6060_v46  ;;  %230 = vmatpush1.msra.mxu0 %v6067_v47  ;;  %v6281_v46 = vld [vmem:[%s10113_s1 + $0x1e0] sm:$0xff]  ;;  %10323 = vst [vmem:[#allocation30_spill] sm:$0xff] %v6312_v44  ;;  %10326 = vst [vmem:[#allocation33_spill] sm:$0xff] %v6349_v40  ;;  %v6392_v34 = vld [vmem:[%s10113_s1 + $0x1b0] sm:$0xff] }
  0x1a   :  { %439 = vmatpush1.msra.mxu1 %v6072_v48  ;;  %4806 = vmatmul.mubr.msk.f32.vlgmr.msra.gmra.mxu0 %vm150_vm0, %v6079_v49  ;;  %v6244_v49 = vld [vmem:[%s10113_s1 + $0x1f0] sm:$0xff]  ;;  %v6355_v38 = vld [vmem:[%s10113_s1 + $0x1c0] sm:$0xff]  ;;  %10332 = vst [vmem:[#allocation39_spill] sm:$0xff] %v6392_v34 }
  0x1b   :  { %4822 = vmatmul.mubr.msk.f32.vlgmr.msra.gmra.mxu1 %vm150_vm0, %v38_v50  ;;  %682 = vmatprep.subr.mxu0 %v6089_v51  ;;  %v6170_v50 = vld [vmem:[%s10113_s1 + $0x210] sm:$0xff]  ;;  %10327 = vst [vmem:[#allocation34_spill] sm:$0xff] %v6355_v38  ;;  %v6386_v36 = vld [vmem:[%s10113_s1 + $0x280] sm:$0xff] }
  0x1c   :  { %980 = vmatprep.subr.mxu1 %v6094_v52  ;;  %683 = vmatpush1.msra.mxu0 %v6101_v53  ;;  %v6257_v52 = vld [vmem:[%s10113_s1 + $0x1e8] sm:$0xff]  ;;  %v6275_v48 = vld [vmem:[%s10113_s1 + $0x2b0] sm:$0xff]  ;;  %10331 = vst [vmem:[#allocation38_spill] sm:$0xff] %v6386_v36 }
  0x1d   :  { %269 = vmatprep.mubr.f32.mxu0 %v10125_v3  ;;  %478 = vmatprep.mubr.f32.mxu1 %v10125_v3  ;;  %10320 = vst [vmem:[#allocation27_spill] sm:$0xff] %v6275_v48 }
  0x1e   :  { %981 = vmatpush1.msra.mxu1 %v6109_v54  ;;  %4807 = vmatmul.mubr.msk.f32.gmra.mxu0 %vm150_vm0, %v6116_v55  ;;  %v10312_v55 = vmov 0.0   ;;  %v6215_v54 = vld [vmem:[%s10113_s1 + $0x2c8] sm:$0xff] }
  0x1f   :  { %4823 = vmatmul.mubr.msk.f32.gmra.mxu1 %vm150_vm0, %v4751_v56  ;;  %684 = vmatprep.subr.mxu0 %v6126_v57  ;;  %v6178_v56 = vld [vmem:[%s10113_s1 + $0x2d8] sm:$0xff]  ;;  %10315 = vst [vmem:[#allocation22_spill] sm:$0xff] %v6215_v54 }
  0x20   :  { %275 = vmatprep.mubr.f32.mxu0 %v10125_v3  ;;  %484 = vmatprep.mubr.f32.mxu1 %v10125_v3  ;;  %10311 = vst [vmem:[#allocation19_spill] sm:$0xff] %v6178_v56  ;;  %v6183_v3 = vld [vmem:[%s10113_s1 + $0x208] sm:$0xff] }
  0x21   :  { %685 = vmatpush1.msra.mxu0 %v6133_v58  ;;  %982 = vmatprep.subr.mxu1 %v6141_v59  ;;  %v6200_v59 = vld [vmem:[%s10113_s1 + $0x2d0] sm:$0xff] }
  0x22   :  { %686 = vmatprep.subr.mxu0 %v6146_v60  ;;  %4808 = vmatmul.mubr.msk.f32.gmra.mxu0 %vm150_vm0, %v6153_v61  ;;  %v6190_v61 = vld [vmem:[%s10114_s0 + $0x31] ss:$2 sm:$0xff]  ;;  %10314 = vst [vmem:[#allocation21_spill] sm:$0xff] %v6200_v59 }
  0x23   :  { %4824 = vmatmul.mubr.msk.f32.gmra.mxu1 %vm150_vm0, %v4752_v62  ;;  %281 = vmatprep.mubr.f32.mxu0 %v10312_v55  ;;  %10313 = vst [vmem:[#allocation20_spill] sm:$0xff] %v6190_v61  ;;  %v4753_v62 = vld [vmem:[%s10114_s0 + $0x30] ss:$2 sm:$0xff] }
  0x24   :  { %983 = vmatpush1.msra.mxu1 %v6163_v63  ;;  %490 = vmatprep.mubr.f32.mxu1 %v10312_v55  ;;  %v6207_v63 = vld [vmem:[%s10113_s1 + $0x200] sm:$0xff] }
  0x25   :  { %687 = vmatpush1.msra.mxu0 %v6170_v50  ;;  %984 = vmatprep.subr.mxu1 %v6178_v56  ;;  %v6220_v56 = vld [vmem:[%s10113_s1 + $0x1f8] sm:$0xff] }
  0x26   :  { %688 = vmatprep.subr.mxu0 %v6183_v3  ;;  %4809 = vmatmul.mubr.msk.f32.gmra.mxu0 %vm150_vm0, %v6190_v61  ;;  %v6227_v61 = vld [vmem:[%s10114_s0 + $0x41] ss:$2 sm:$0xff] }
  0x27   :  { %4825 = vmatmul.mubr.msk.f32.gmra.mxu1 %vm150_vm0, %v4753_v62  ;;  %287 = vmatprep.mubr.f32.mxu0 %v10312_v55  ;;  %10316 = vst [vmem:[#allocation23_spill] sm:$0xff] %v6227_v61  ;;  %v4754_v62 = vld [vmem:[%s10114_s0 + $0x40] ss:$2 sm:$0xff] }
  0x28   :  { %985 = vmatpush1.msra.mxu1 %v6200_v59  ;;  %496 = vmatprep.mubr.f32.mxu1 %v10312_v55  ;;  %v6238_v59 = vld [vmem:[%s10113_s1 + $0x2c0] sm:$0xff] }
  0x29   :  { %689 = vmatpush1.msra.mxu0 %v6207_v63  ;;  %986 = vmatprep.subr.mxu1 %v6215_v54  ;;  %10317 = vst [vmem:[#allocation24_spill] sm:$0xff] %v6238_v59  ;;  %v6252_v54 = vld [vmem:[%s10113_s1 + $0x2b8] sm:$0xff] }
  0x2a   :  { %690 = vmatprep.subr.mxu0 %v6220_v56  ;;  %4810 = vmatmul.mubr.msk.f32.gmra.mxu0 %vm150_vm0, %v6227_v61  ;;  %10318 = vst [vmem:[#allocation25_spill] sm:$0xff] %v6252_v54  ;;  %v6264_v61 = vld [vmem:[%s10114_s0 + $0x51] ss:$2 sm:$0xff] }
  0x2b   :  { %4826 = vmatmul.mubr.msk.f32.gmra.mxu1 %vm150_vm0, %v4754_v62  ;;  %293 = vmatprep.mubr.f32.mxu0 %v10312_v55  ;;  %10319 = vst [vmem:[#allocation26_spill] sm:$0xff] %v6264_v61  ;;  %v4755_v62 = vld [vmem:[%s10114_s0 + $0x50] ss:$2 sm:$0xff] }
  0x2c   :  { %502 = vmatprep.mubr.f32.mxu1 %v10312_v55  ;;  %987 = vmatpush1.msra.mxu1 %v6238_v59  ;;  %v6294_v59 = vld [vmem:[%s10113_s1 + $0x1d8] sm:$0xff] }
  0x2d   :  { %691 = vmatpush1.msra.mxu0 %v6244_v49  ;;  %988 = vmatprep.subr.mxu1 %v6252_v54  ;;  %v6289_v54 = vld [vmem:[%s10113_s1 + $0x2a8] sm:$0xff] }
  0x2e   :  { %692 = vmatprep.subr.mxu0 %v6257_v52  ;;  %4811 = vmatmul.mubr.msk.f32.gmra.mxu0 %vm150_vm0, %v6264_v61  ;;  %10321 = vst [vmem:[#allocation28_spill] sm:$0xff] %v6289_v54  ;;  %v6301_v61 = vld [vmem:[%s10114_s0 + $0x61] ss:$2 sm:$0xff] }
  0x2f   :  { %4827 = vmatmul.mubr.msk.f32.gmra.mxu1 %vm150_vm0, %v4755_v62  ;;  %299 = vmatprep.mubr.f32.mxu0 %v10312_v55  ;;  %10322 = vst [vmem:[#allocation29_spill] sm:$0xff] %v6301_v61  ;;  %v4756_v62 = vld [vmem:[%s10114_s0 + $0x60] ss:$2 sm:$0xff] }
  0x30   :  { %508 = vmatprep.mubr.f32.mxu1 %v10312_v55  ;;  %989 = vmatpush1.msra.mxu1 %v6275_v48  ;;  %v6331_v48 = vld [vmem:[%s10113_s1 + $0x1c8] sm:$0xff] }
  0x31   :  { %693 = vmatpush1.msra.mxu0 %v6281_v46  ;;  %990 = vmatprep.subr.mxu1 %v6289_v54  ;;  %v6326_v54 = vld [vmem:[%s10113_s1 + $0x298] sm:$0xff] }
  0x32   :  { %694 = vmatprep.subr.mxu0 %v6294_v59  ;;  %4812 = vmatmul.mubr.msk.f32.gmra.mxu0 %vm150_vm0, %v6301_v61  ;;  %10324 = vst [vmem:[#allocation31_spill] sm:$0xff] %v6326_v54  ;;  %v6338_v61 = vld [vmem:[%s10114_s0 + $0x71] ss:$2 sm:$0xff] }
  0x33   :  { %4828 = vmatmul.mubr.msk.f32.gmra.mxu1 %vm150_vm0, %v4756_v62  ;;  %305 = vmatprep.mubr.f32.mxu0 %v10312_v55  ;;  %10325 = vst [vmem:[#allocation32_spill] sm:$0xff] %v6338_v61  ;;  %v4757_v62 = vld [vmem:[%s10114_s0 + $0x70] ss:$2 sm:$0xff] }
  0x34   :  { %514 = vmatprep.mubr.f32.mxu1 %v10312_v55  ;;  %991 = vmatpush1.msra.mxu1 %v6312_v44  ;;  %v6368_v44 = vld [vmem:[%s10113_s1 + $0x1b8] sm:$0xff] }
  0x35   :  { %695 = vmatpush1.msra.mxu0 %v6318_v42  ;;  %992 = vmatprep.subr.mxu1 %v6326_v54  ;;  %v6363_v54 = vld [vmem:[%s10113_s1 + $0x288] sm:$0xff]  ;;  %10329 = vst [vmem:[#allocation36_spill] sm:$0xff] %v6368_v44 }
  0x36   :  { %696 = vmatprep.subr.mxu0 %v6331_v48  ;;  %4813 = vmatmul.mubr.msk.f32.gmra.mxu0 %vm150_vm0, %v6338_v61  ;;  %10328 = vst [vmem:[#allocation35_spill] sm:$0xff] %v6363_v54  ;;  %v6375_v61 = vld [vmem:[%s10114_s0 + $0x81] ss:$2 sm:$0xff] }
  0x37   :  { %4829 = vmatmul.mubr.msk.f32.gmra.mxu1 %vm150_vm0, %v4757_v62  ;;  %311 = vmatprep.mubr.f32.mxu0 %v10312_v55  ;;  %10330 = vst [vmem:[#allocation37_spill] sm:$0xff] %v6375_v61  ;;  %v4758_v62 = vld [vmem:[%s10114_s0 + $0x80] ss:$2 sm:$0xff] }
  0x38   :  { %520 = vmatprep.mubr.f32.mxu1 %v10312_v55  ;;  %993 = vmatpush1.msra.mxu1 %v6349_v40  ;;  %v6405_v40 = vld [vmem:[%s10113_s1 + $0x1a8] sm:$0xff] }
  0x39   :  { %697 = vmatpush1.msra.mxu0 %v6355_v38  ;;  %994 = vmatprep.subr.mxu1 %v6363_v54  ;;  %v6400_v54 = vld [vmem:[%s10113_s1 + $0x278] sm:$0xff]  ;;  %10334 = vst [vmem:[#allocation41_spill] sm:$0xff] %v6405_v40  ;;  %v6429_v38 = vld [vmem:[%s10113_s1 + $0x1a0] sm:$0xff] }
  0x3a   :  { %698 = vmatprep.subr.mxu0 %v6368_v44  ;;  %4814 = vmatmul.mubr.msk.f32.gmra.mxu0 %vm150_vm0, %v6375_v61  ;;  %10333 = vst [vmem:[#allocation40_spill] sm:$0xff] %v6400_v54  ;;  %v6412_v61 = vld [vmem:[%s10114_s0 + $0x91] ss:$2 sm:$0xff]  ;;  %10337 = vst [vmem:[#allocation44_spill] sm:$0xff] %v6429_v38 }
  0x3b   :  { %4830 = vmatmul.mubr.msk.f32.gmra.mxu1 %vm150_vm0, %v4758_v62  ;;  %317 = vmatprep.mubr.f32.mxu0 %v10312_v55  ;;  %10335 = vst [vmem:[#allocation42_spill] sm:$0xff] %v6412_v61  ;;  %v4759_v62 = vld [vmem:[%s10114_s0 + $0x90] ss:$2 sm:$0xff] }
  0x3c   :  { %526 = vmatprep.mubr.f32.mxu1 %v10312_v55  ;;  %995 = vmatpush1.msra.mxu1 %v6386_v36  ;;  %v6423_v44 = vld [vmem:[%s10113_s1 + $0x270] sm:$0xff]  ;;  %v6442_v36 = vld [vmem:[%s10113_s1 + $0x198] sm:$0xff] }
  0x3d   :  { %699 = vmatpush1.msra.mxu0 %v6392_v34  ;;  %996 = vmatprep.subr.mxu1 %v6400_v54  ;;  %10336 = vst [vmem:[#allocation43_spill] sm:$0xff] %v6423_v44  ;;  %v6437_v54 = vld [vmem:[%s10113_s1 + $0x268] sm:$0xff]  ;;  %10339 = vst [vmem:[#allocation46_spill] sm:$0xff] %v6442_v36  ;;  %v6466_v34 = vld [vmem:[%s10113_s1 + $0x190] sm:$0xff] }
  0x3e   :  { %700 = vmatprep.subr.mxu0 %v6405_v40  ;;  %4815 = vmatmul.mubr.msk.f32.gmra.mxu0 %vm150_vm0, %v6412_v61  ;;  %10338 = vst [vmem:[#allocation45_spill] sm:$0xff] %v6437_v54  ;;  %v6449_v61 = vld [vmem:[%s10114_s0 + $0xa1] ss:$2 sm:$0xff] }
  0x3f   :  { %4831 = vmatmul.mubr.msk.f32.gmra.mxu1 %vm150_vm0, %v4759_v62  ;;  %323 = vmatprep.mubr.f32.mxu0 %v10312_v55  ;;  %10340 = vst [vmem:[#allocation47_spill] sm:$0xff] %v6449_v61  ;;  %v4760_v62 = vld [vmem:[%s10114_s0 + $0xa0] ss:$2 sm:$0xff] }
  0x40   :  { %532 = vmatprep.mubr.f32.mxu1 %v10312_v55  ;;  %997 = vmatpush1.msra.mxu1 %v6423_v44  ;;  %v6460_v40 = vld [vmem:[%s10113_s1 + $0x260] sm:$0xff]  ;;  %v6479_v44 = vld [vmem:[%s10113_s1 + $0x188] sm:$0xff] }
  0x41   :  { %701 = vmatpush1.msra.mxu0 %v6429_v38  ;;  %998 = vmatprep.subr.mxu1 %v6437_v54  ;;  %10341 = vst [vmem:[#allocation48_spill] sm:$0xff] %v6460_v40  ;;  %v6474_v54 = vld [vmem:[%s10113_s1 + $0x258] sm:$0xff]  ;;  %10343 = vst [vmem:[#allocation50_spill] sm:$0xff] %v6479_v44  ;;  %v6503_v38 = vld [vmem:[%s10113_s1 + $0x180] sm:$0xff] }
  0x42   :  { %702 = vmatprep.subr.mxu0 %v6442_v36  ;;  %4816 = vmatmul.mubr.msk.f32.gmra.mxu0 %vm150_vm0, %v6449_v61  ;;  %10342 = vst [vmem:[#allocation49_spill] sm:$0xff] %v6474_v54  ;;  %v6486_v61 = vld [vmem:[%s10114_s0 + $0xb1] ss:$2 sm:$0xff] }
  0x43   :  { %4832 = vmatmul.mubr.msk.f32.gmra.mxu1 %vm150_vm0, %v4760_v62  ;;  %329 = vmatprep.mubr.f32.mxu0 %v10312_v55  ;;  %10344 = vst [vmem:[#allocation51_spill] sm:$0xff] %v6486_v61  ;;  %v4761_v62 = vld [vmem:[%s10114_s0 + $0xb0] ss:$2 sm:$0xff] }
  0x44   :  { %538 = vmatprep.mubr.f32.mxu1 %v10312_v55  ;;  %999 = vmatpush1.msra.mxu1 %v6460_v40  ;;  %v6497_v36 = vld [vmem:[%s10113_s1 + $0x250] sm:$0xff]  ;;  %v6516_v40 = vld [vmem:[%s10113_s1 + $0x3b8] sm:$0xff] }
  0x45   :  { %703 = vmatpush1.msra.mxu0 %v6466_v34  ;;  %1000 = vmatprep.subr.mxu1 %v6474_v54  ;;  %10345 = vst [vmem:[#allocation52_spill] sm:$0xff] %v6497_v36  ;;  %v6511_v54 = vld [vmem:[%s10113_s1 + $0x248] sm:$0xff] }
  0x46   :  { %704 = vmatprep.subr.mxu0 %v6479_v44  ;;  %4817 = vmatmul.mubr.msk.f32.gmra.mxu0 %vm150_vm0, %v6486_v61  ;;  %10346 = vst [vmem:[#allocation53_spill] sm:$0xff] %v6511_v54  ;;  %v6523_v61 = vld [vmem:[%s10114_s0 + $0xc1] ss:$2 sm:$0xff] }
  0x47   :  { %4833 = vmatmul.mubr.msk.f32.gmra.mxu1 %vm150_vm0, %v4761_v62  ;;  %335 = vmatprep.mubr.f32.mxu0 %v10312_v55  ;;  %10347 = vst [vmem:[#allocation54_spill] sm:$0xff] %v6523_v61  ;;  %v4762_v62 = vld [vmem:[%s10114_s0 + $0xc0] ss:$2 sm:$0xff] }
  0x48   :  { %544 = vmatprep.mubr.f32.mxu1 %v10312_v55  ;;  %1001 = vmatpush1.msra.mxu1 %v6497_v36  ;;  %v6534_v44 = vld [vmem:[%s10113_s1 + $0x240] sm:$0xff]  ;;  %v4763_v36 = vld [vmem:[%s10114_s0 + $0xd0] ss:$2 sm:$0xff] }
  0x49   :  { %705 = vmatpush1.msra.mxu0 %v6503_v38  ;;  %1002 = vmatprep.subr.mxu1 %v6511_v54  ;;  %10348 = vst [vmem:[#allocation55_spill] sm:$0xff] %v6534_v44  ;;  %v6545_v54 = vld [vmem:[%s10114_s0 + $0xd1] ss:$2 sm:$0xff] }
  0x4a   :  { %1278 = vmatprep.subr.mxu0 %v6516_v40  ;;  %4818 = vmatmul.mubr.msk.f32.gmra.mxu0 %vm150_vm0, %v6523_v61  ;;  %10349 = vst [vmem:[#allocation56_spill] sm:$0xff] %v6545_v54  ;;  %v4764_v61 = vld [vmem:[%s10114_s0 + $0xe0] ss:$2 sm:$0xff] }
  0x4b   :  { %4834 = vmatmul.mubr.msk.f32.gmra.mxu1 %vm150_vm0, %v4762_v62  ;;  %341 = vmatprep.mubr.f32.mxu0 %v10312_v55  ;;  %v6560_v62 = vld [vmem:[%s10114_s0 + $0xe1] ss:$2 sm:$0xff] }
  0x4c   :  { %550 = vmatprep.mubr.f32.mxu1 %v10312_v55  ;;  %1003 = vmatpush1.msra.mxu1 %v6534_v44  ;;  %10350 = vst [vmem:[#allocation57_spill] sm:$0xff] %v6560_v62  ;;  %v6617_v44 = vld [vmem:[%s10114_s0 + $0x13] ss:$2 sm:$0xff] }
  0x4d   :  { %1487 = vmatprep.subr.mxu1 %v5793_v0  ;;  %v6573_v0 = vld [vmem:[%s10114_s0 + $0xf1] ss:$2 sm:$0x3f]  ;;  %10354 = vst [vmem:[#allocation61_spill] sm:$0xff] %v6617_v44 }
  0x4e   :  { %4819 = vmatmul.mubr.msk.f32.gmra.mxu0 %vm150_vm0, %v6545_v54  ;;  %10351 = vst [vmem:[#allocation58_spill] sm:$0xff] %v6573_v0  ;;  %v6612_v54 = vld [vmem:[%s10114_s0 + $0x12] ss:$2 sm:$0xff] }
  0x4f   :  { %4835 = vmatmul.mubr.msk.f32.gmra.mxu1 %vm150_vm0, %v4763_v36  ;;  %347 = vmatprep.mubr.f32.mxu0 %v10312_v55  ;;  %v4765_v36 = vld [vmem:[%s10114_s0 + $0xf0] ss:$2 sm:$0x3f] }
  0x50   :  { %556 = vmatprep.mubr.f32.mxu1 %v10312_v55 }
  0x52   :  { %4820 = vmatmul.mubr.msk.f32.gmra.mxu0 %vm150_vm0, %v6560_v62  ;;  %v6591_v62 = vld [vmem:[%s10114_s0 + $0x3] ss:$2 sm:$0xff] }
  0x53   :  { %4836 = vmatmul.mubr.msk.f32.gmra.mxu1 %vm150_vm0, %v4764_v61  ;;  %353 = vmatprep.mubr.f32.mxu0 %v10312_v55  ;;  %v6585_v61 = vld [vmem:[%s10114_s0 + $0x2] ss:$2 sm:$0xff] }
  0x54   :  { %562 = vmatprep.mubr.f32.mxu1 %v10312_v55 }
  0x56   :  { %4821 = vmatmul.mubr.msk.f32.gmra.mxu0 %vm150_vm0, %v6573_v0  ;;  %v6596_v0 = vld [vmem:[%s10113_s1 + $0x3b0] sm:$0xff] }
  0x57   :  { %4837 = vmatmul.mubr.msk.f32.gmra.mxu1 %vm150_vm0, %v4765_v36  ;;  %738 = vmatprep.mubr.f32.mxu0 %v10312_v55  ;;  %10352 = vst [vmem:[#allocation59_spill] sm:$0xff] %v6596_v0  ;;  %v6605_v36 = vld [vmem:[%s10113_s1 + $0x3a8] sm:$0xff] }
  0x58   :  { %1036 = vmatprep.mubr.f32.mxu1 %v10312_v55  ;;  %10353 = vst [vmem:[#allocation60_spill] sm:$0xff] %v6605_v36 }
  0x5a   :  { %4878 = vmatmul.mubr.msk.f32.vlgmr.msra.gmra.mxu0 %vm150_vm0, %v6585_v61 }
  0x5b   :  { %4934 = vmatmul.mubr.msk.f32.vlgmr.msra.gmra.mxu1 %vm150_vm0, %v6591_v62  ;;  %1279 = vmatpush1.msra.mxu0 %v6596_v0  ;;  %v6624_v0 = vld [vmem:[%s10113_s1 + $0x3a0] sm:$0xff] }
  0x5c   :  { %744 = vmatprep.mubr.f32.mxu0 %v10312_v55  ;;  %1488 = vmatpush1.msra.mxu1 %v5803_v2  ;;  %10355 = vst [vmem:[#allocation62_spill] sm:$0xff] %v6624_v0  ;;  %v6635_v2 = vld [vmem:[%s10113_s1 + $0x398] sm:$0xff] }
  0x5d   :  { %1042 = vmatprep.mubr.f32.mxu1 %v10312_v55  ;;  %1280 = vmatprep.subr.mxu0 %v6605_v36  ;;  %v6642_v36 = vld [vmem:[%s10114_s0 + $0x22] ss:$2 sm:$0xff] }
  0x5e   :  { %1489 = vmatprep.subr.mxu1 %v5817_v5  ;;  %4879 = vmatmul.mubr.msk.f32.gmra.mxu0 %vm150_vm0, %v6612_v54  ;;  %v6647_v5 = vld [vmem:[%s10114_s0 + $0x23] ss:$2 sm:$0xff] }
  0x5f   :  { %4935 = vmatmul.mubr.msk.f32.gmra.mxu1 %vm150_vm0, %v6617_v44  ;;  %750 = vmatprep.mubr.f32.mxu0 %v10312_v55  ;;  %10356 = vst [vmem:[#allocation63_spill] sm:$0xff] %v6647_v5  ;;  %v6665_v44 = vld [vmem:[%s10113_s1 + $0x388] sm:$0xff] }
  0x60   :  { %1281 = vmatpush1.msra.mxu0 %v6624_v0  ;;  %1048 = vmatprep.mubr.f32.mxu1 %v10312_v55  ;;  %v6655_v0 = vld [vmem:[%s10113_s1 + $0x390] sm:$0xff] }
  0x61   :  { %1490 = vmatpush1.msra.mxu1 %v5829_v7  ;;  %1282 = vmatprep.subr.mxu0 %v6635_v2  ;;  %10357 = vst [vmem:[#allocation64_spill] sm:$0xff] %v6655_v0  ;;  %v6671_v7 = vld [vmem:[%s10114_s0 + $0x32] ss:$2 sm:$0xff] }
  0x62   :  { %1491 = vmatprep.subr.mxu1 %v5839_v9  ;;  %4880 = vmatmul.mubr.msk.f32.gmra.mxu0 %vm150_vm0, %v6642_v36  ;;  %v6677_v9 = vld [vmem:[%s10114_s0 + $0x33] ss:$2 sm:$0xff] }
  0x63   :  { %4936 = vmatmul.mubr.msk.f32.gmra.mxu1 %vm150_vm0, %v6647_v5  ;;  %756 = vmatprep.mubr.f32.mxu0 %v10312_v55  ;;  %10358 = vst [vmem:[#allocation65_spill] sm:$0xff] %v6677_v9  ;;  %v6685_v5 = vld [vmem:[%s10113_s1 + $0x380] sm:$0xff] }
  0x64   :  { %1054 = vmatprep.mubr.f32.mxu1 %v10312_v55  ;;  %1283 = vmatpush1.msra.mxu0 %v6655_v0  ;;  %10359 = vst [vmem:[#allocation66_spill] sm:$0xff] %v6685_v5  ;;  %v6695_v0 = vld [vmem:[%s10113_s1 + $0x378] sm:$0xff] }
  0x65   :  { %1492 = vmatpush1.msra.mxu1 %v5851_v11  ;;  %1284 = vmatprep.subr.mxu0 %v6665_v44  ;;  %v6701_v11 = vld [vmem:[%s10114_s0 + $0x42] ss:$2 sm:$0xff] }
  0x66   :  { %1493 = vmatprep.subr.mxu1 %v5863_v13  ;;  %4881 = vmatmul.mubr.msk.f32.gmra.mxu0 %vm150_vm0, %v6671_v7  ;;  %v6707_v13 = vld [vmem:[%s10114_s0 + $0x43] ss:$2 sm:$0xff] }
  0x67   :  { %4937 = vmatmul.mubr.msk.f32.gmra.mxu1 %vm150_vm0, %v6677_v9  ;;  %762 = vmatprep.mubr.f32.mxu0 %v10312_v55  ;;  %10360 = vst [vmem:[#allocation67_spill] sm:$0xff] %v6707_v13  ;;  %v6715_v9 = vld [vmem:[%s10113_s1 + $0x370] sm:$0xff] }
  0x68   :  { %1060 = vmatprep.mubr.f32.mxu1 %v10312_v55  ;;  %1285 = vmatpush1.msra.mxu0 %v6685_v5  ;;  %10361 = vst [vmem:[#allocation68_spill] sm:$0xff] %v6715_v9  ;;  %v6725_v5 = vld [vmem:[%s10113_s1 + $0x368] sm:$0xff] }
  0x69   :  { %1494 = vmatpush1.msra.mxu1 %v5875_v15  ;;  %1286 = vmatprep.subr.mxu0 %v6695_v0  ;;  %v6731_v15 = vld [vmem:[%s10114_s0 + $0x52] ss:$2 sm:$0xff] }
  0x6a   :  { %1495 = vmatprep.subr.mxu1 %v5887_v17  ;;  %4882 = vmatmul.mubr.msk.f32.gmra.mxu0 %vm150_vm0, %v6701_v11  ;;  %v6737_v17 = vld [vmem:[%s10114_s0 + $0x53] ss:$2 sm:$0xff] }
  0x6b   :  { %4938 = vmatmul.mubr.msk.f32.gmra.mxu1 %vm150_vm0, %v6707_v13  ;;  %768 = vmatprep.mubr.f32.mxu0 %v10312_v55  ;;  %10362 = vst [vmem:[#allocation69_spill] sm:$0xff] %v6737_v17  ;;  %v6745_v13 = vld [vmem:[%s10113_s1 + $0x360] sm:$0xff] }
  0x6c   :  { %1066 = vmatprep.mubr.f32.mxu1 %v10312_v55  ;;  %1287 = vmatpush1.msra.mxu0 %v6715_v9  ;;  %10363 = vst [vmem:[#allocation70_spill] sm:$0xff] %v6745_v13  ;;  %v6755_v9 = vld [vmem:[%s10113_s1 + $0x358] sm:$0xff] }
  0x6d   :  { %1496 = vmatpush1.msra.mxu1 %v5899_v19  ;;  %1288 = vmatprep.subr.mxu0 %v6725_v5  ;;  %v6761_v19 = vld [vmem:[%s10114_s0 + $0x62] ss:$2 sm:$0xff] }
  0x6e   :  { %1497 = vmatprep.subr.mxu1 %v5911_v21  ;;  %4883 = vmatmul.mubr.msk.f32.gmra.mxu0 %vm150_vm0, %v6731_v15  ;;  %v6767_v21 = vld [vmem:[%s10114_s0 + $0x63] ss:$2 sm:$0xff] }
  0x6f   :  { %4939 = vmatmul.mubr.msk.f32.gmra.mxu1 %vm150_vm0, %v6737_v17  ;;  %774 = vmatprep.mubr.f32.mxu0 %v10312_v55  ;;  %10364 = vst [vmem:[#allocation71_spill] sm:$0xff] %v6767_v21  ;;  %v6775_v17 = vld [vmem:[%s10113_s1 + $0x350] sm:$0xff] }
  0x70   :  { %1072 = vmatprep.mubr.f32.mxu1 %v10312_v55  ;;  %1289 = vmatpush1.msra.mxu0 %v6745_v13  ;;  %10365 = vst [vmem:[#allocation72_spill] sm:$0xff] %v6775_v17  ;;  %v6785_v13 = vld [vmem:[%s10113_s1 + $0x348] sm:$0xff] }
  0x71   :  { %1498 = vmatpush1.msra.mxu1 %v5923_v23  ;;  %1290 = vmatprep.subr.mxu0 %v6755_v9  ;;  %v6791_v23 = vld [vmem:[%s10114_s0 + $0x72] ss:$2 sm:$0xff] }
  0x72   :  { %1499 = vmatprep.subr.mxu1 %v5935_v25  ;;  %4884 = vmatmul.mubr.msk.f32.gmra.mxu0 %vm150_vm0, %v6761_v19  ;;  %v6797_v25 = vld [vmem:[%s10114_s0 + $0x73] ss:$2 sm:$0xff] }
  0x73   :  { %4940 = vmatmul.mubr.msk.f32.gmra.mxu1 %vm150_vm0, %v6767_v21  ;;  %780 = vmatprep.mubr.f32.mxu0 %v10312_v55  ;;  %10366 = vst [vmem:[#allocation73_spill] sm:$0xff] %v6797_v25  ;;  %v6805_v21 = vld [vmem:[%s10113_s1 + $0x340] sm:$0xff] }
  0x74   :  { %1078 = vmatprep.mubr.f32.mxu1 %v10312_v55  ;;  %1291 = vmatpush1.msra.mxu0 %v6775_v17  ;;  %10367 = vst [vmem:[#allocation74_spill] sm:$0xff] %v6805_v21  ;;  %v6815_v17 = vld [vmem:[%s10113_s1 + $0x338] sm:$0xff] }
  0x75   :  { %1500 = vmatpush1.msra.mxu1 %v5947_v27  ;;  %1292 = vmatprep.subr.mxu0 %v6785_v13  ;;  %v6821_v27 = vld [vmem:[%s10114_s0 + $0x82] ss:$2 sm:$0xff] }
  0x76   :  { %1501 = vmatprep.subr.mxu1 %v5959_v29  ;;  %4885 = vmatmul.mubr.msk.f32.gmra.mxu0 %vm150_vm0, %v6791_v23  ;;  %v6827_v29 = vld [vmem:[%s10114_s0 + $0x83] ss:$2 sm:$0xff] }
  0x77   :  { %4941 = vmatmul.mubr.msk.f32.gmra.mxu1 %vm150_vm0, %v6797_v25  ;;  %786 = vmatprep.mubr.f32.mxu0 %v10312_v55  ;;  %10368 = vst [vmem:[#allocation75_spill] sm:$0xff] %v6827_v29  ;;  %v6835_v25 = vld [vmem:[%s10113_s1 + $0x330] sm:$0xff] }
  0x78   :  { %1084 = vmatprep.mubr.f32.mxu1 %v10312_v55  ;;  %1293 = vmatpush1.msra.mxu0 %v6805_v21  ;;  %10369 = vst [vmem:[#allocation76_spill] sm:$0xff] %v6835_v25  ;;  %v6845_v21 = vld [vmem:[%s10113_s1 + $0x328] sm:$0xff] }
  0x79   :  { %1502 = vmatpush1.msra.mxu1 %v5971_v31  ;;  %1294 = vmatprep.subr.mxu0 %v6815_v17  ;;  %v6851_v31 = vld [vmem:[%s10114_s0 + $0x92] ss:$2 sm:$0xff] }
  0x7a   :  { %1503 = vmatprep.subr.mxu1 %v5983_v33  ;;  %4886 = vmatmul.mubr.msk.f32.gmra.mxu0 %vm150_vm0, %v6821_v27  ;;  %v6857_v33 = vld [vmem:[%s10114_s0 + $0x93] ss:$2 sm:$0xff] }
  0x7b   :  { %4942 = vmatmul.mubr.msk.f32.gmra.mxu1 %vm150_vm0, %v6827_v29  ;;  %792 = vmatprep.mubr.f32.mxu0 %v10312_v55  ;;  %10370 = vst [vmem:[#allocation77_spill] sm:$0xff] %v6857_v33  ;;  %v6865_v29 = vld [vmem:[%s10113_s1 + $0x320] sm:$0xff] }
  0x7c   :  { %1090 = vmatprep.mubr.f32.mxu1 %v10312_v55  ;;  %1295 = vmatpush1.msra.mxu0 %v6835_v25  ;;  %10371 = vst [vmem:[#allocation78_spill] sm:$0xff] %v6865_v29  ;;  %v6875_v25 = vld [vmem:[%s10113_s1 + $0x318] sm:$0xff] }
  0x7d   :  { %1504 = vmatpush1.msra.mxu1 %v5995_v35  ;;  %1296 = vmatprep.subr.mxu0 %v6845_v21  ;;  %v6881_v35 = vld [vmem:[%s10114_s0 + $0xa2] ss:$2 sm:$0xff] }
  0x7e   :  { %1505 = vmatprep.subr.mxu1 %v6007_v37  ;;  %4887 = vmatmul.mubr.msk.f32.gmra.mxu0 %vm150_vm0, %v6851_v31  ;;  %v6887_v37 = vld [vmem:[%s10114_s0 + $0xa3] ss:$2 sm:$0xff] }
  0x7f   :  { %4943 = vmatmul.mubr.msk.f32.gmra.mxu1 %vm150_vm0, %v6857_v33  ;;  %798 = vmatprep.mubr.f32.mxu0 %v10312_v55  ;;  %10372 = vst [vmem:[#allocation79_spill] sm:$0xff] %v6887_v37  ;;  %v6895_v33 = vld [vmem:[%s10113_s1 + $0x310] sm:$0xff] }
  0x80   :  { %1096 = vmatprep.mubr.f32.mxu1 %v10312_v55  ;;  %1297 = vmatpush1.msra.mxu0 %v6865_v29  ;;  %v6905_v29 = vld [vmem:[%s10113_s1 + $0x308] sm:$0xff] }
  0x81   :  { %1506 = vmatpush1.msra.mxu1 %v6019_v39  ;;  %1298 = vmatprep.subr.mxu0 %v6875_v25  ;;  %10373 = vst [vmem:[#allocation80_spill] sm:$0xff] %v6905_v29  ;;  %v6911_v39 = vld [vmem:[%s10114_s0 + $0xb2] ss:$2 sm:$0xff] }
  0x82   :  { %1507 = vmatprep.subr.mxu1 %v6031_v41  ;;  %4888 = vmatmul.mubr.msk.f32.gmra.mxu0 %vm150_vm0, %v6881_v35  ;;  %v6917_v41 = vld [vmem:[%s10114_s0 + $0xb3] ss:$2 sm:$0xff] }
  0x83   :  { %4944 = vmatmul.mubr.msk.f32.gmra.mxu1 %vm150_vm0, %v6887_v37  ;;  %804 = vmatprep.mubr.f32.mxu0 %v10312_v55  ;;  %v6925_v37 = vld [vmem:[%s10113_s1 + $0x300] sm:$0xff] }
  0x84   :  { %1102 = vmatprep.mubr.f32.mxu1 %v10312_v55  ;;  %1299 = vmatpush1.msra.mxu0 %v6895_v33 }
  0x85   :  { %1508 = vmatpush1.msra.mxu1 %v6043_v43  ;;  %1300 = vmatprep.subr.mxu0 %v6905_v29  ;;  %v6936_v43 = vld [vmem:[%s10114_s0 + $0xc2] ss:$2 sm:$0xff]  ;;  %v6942_v29 = vld [vmem:[%s10114_s0 + $0xc3] ss:$2 sm:$0xff] }
  0x86   :  { %1509 = vmatprep.subr.mxu1 %v6055_v45  ;;  %4889 = vmatmul.mubr.msk.f32.gmra.mxu0 %vm150_vm0, %v6911_v39  ;;  %10374 = vst [vmem:[#allocation81_spill] sm:$0xff] %v6942_v29  ;;  %v6956_v45 = vld [vmem:[%s10114_s0 + $0xd2] ss:$2 sm:$0xff] }
  0x87   :  { %4945 = vmatmul.mubr.msk.f32.gmra.mxu1 %vm150_vm0, %v6917_v41  ;;  %810 = vmatprep.mubr.f32.mxu0 %v10312_v55 }
  0x88   :  { %1108 = vmatprep.mubr.f32.mxu1 %v10312_v55  ;;  %1301 = vmatpush1.msra.mxu0 %v6925_v37 }
  0x89   :  { %1510 = vmatpush1.msra.mxu1 %v6067_v47  ;;  %1648 = vmatprep.subr.mxu0 %v5798_v1  ;;  %v6962_v1 = vld [vmem:[%s10114_s0 + $0xd3] ss:$2 sm:$0xff]  ;;  %v6972_v47 = vld [vmem:[%s10114_s0 + $0xe2] ss:$2 sm:$0xff] }
  0x8a   :  { %1809 = vmatprep.subr.mxu1 %v6089_v51  ;;  %4890 = vmatmul.mubr.msk.f32.gmra.mxu0 %vm150_vm0, %v6936_v43  ;;  %10375 = vst [vmem:[#allocation82_spill] sm:$0xff] %v6962_v1  ;;  %v6978_v51 = vld [vmem:[%s10114_s0 + $0xe3] ss:$2 sm:$0xff] }
  0x8b   :  { %4946 = vmatmul.mubr.msk.f32.gmra.mxu1 %vm150_vm0, %v6942_v29  ;;  %816 = vmatprep.mubr.f32.mxu0 %v10312_v55  ;;  %10376 = vst [vmem:[#allocation83_spill] sm:$0xff] %v6978_v51  ;;  %v6994_v29 = vld [vmem:[%s10114_s0 + $0xf3] ss:$2 sm:$0x3f] }
  0x8c   :  { %1114 = vmatprep.mubr.f32.mxu1 %v10312_v55  ;;  %10377 = vst [vmem:[#allocation84_spill] sm:$0xff] %v6994_v29 }
  0x8e   :  { %4891 = vmatmul.mubr.msk.f32.gmra.mxu0 %vm150_vm0, %v6956_v45 }
  0x8f   :  { %4947 = vmatmul.mubr.msk.f32.gmra.mxu1 %vm150_vm0, %v6962_v1  ;;  %822 = vmatprep.mubr.f32.mxu0 %v10312_v55  ;;  %v6988_v1 = vld [vmem:[%s10114_s0 + $0xf2] ss:$2 sm:$0x3f] }
  0x90   :  { %1120 = vmatprep.mubr.f32.mxu1 %v10312_v55 }
  0x92   :  { %4892 = vmatmul.mubr.msk.f32.gmra.mxu0 %vm150_vm0, %v6972_v47 }
  0x93   :  { %4948 = vmatmul.mubr.msk.f32.gmra.mxu1 %vm150_vm0, %v6978_v51  ;;  %828 = vmatprep.mubr.f32.mxu0 %v10312_v55  ;;  %v7004_v51 = vld [vmem:[%s10114_s0 + $0x4] ss:$2 sm:$0xff] }
  0x94   :  { %1126 = vmatprep.mubr.f32.mxu1 %v10312_v55 }
  0x96   :  { %4893 = vmatmul.mubr.msk.f32.gmra.mxu0 %vm150_vm0, %v6988_v1 }
  0x97   :  { %4949 = vmatmul.mubr.msk.f32.gmra.mxu1 %vm150_vm0, %v6994_v29  ;;  %1334 = vmatprep.mubr.f32.mxu0 %v10312_v55  ;;  %v7016_v29 = vld [vmem:[%s10114_s0 + $0x14] ss:$2 sm:$0xff] }
  0x98   :  { %1543 = vmatprep.mubr.f32.mxu1 %v10312_v55 }
  0x9a   :  { %4990 = vmatmul.mubr.msk.f32.vlgmr.msra.gmra.mxu0 %vm150_vm0, %v7004_v51 }
  0x9b   :  { %5006 = vmatmul.mubr.msk.f32.vlgmr.msra.gmra.mxu1 %vm150_vm0, %v6585_v61  ;;  %1649 = vmatpush1.msra.mxu0 %v5812_v4  ;;  %v7031_v4 = vld [vmem:[%s10114_s0 + $0x24] ss:$2 sm:$0xff] }
  0x9c   :  { %1340 = vmatprep.mubr.f32.mxu0 %v10312_v55  ;;  %1810 = vmatpush1.msra.mxu1 %v6101_v53  ;;  %v10389_v53 = vld [vmem:[#allocation9_spill] sm:$0xff] }
  0x9d   :  { %1549 = vmatprep.mubr.f32.mxu1 %v10312_v55  ;;  %1650 = vmatprep.subr.mxu0 %v5822_v6  ;;  %v7045_v6 = vld [vmem:[%s10114_s0 + $0x34] ss:$2 sm:$0xff] }
  0x9e   :  { %1811 = vmatprep.subr.mxu1 %v6126_v57  ;;  %4991 = vmatmul.mubr.msk.f32.gmra.mxu0 %vm150_vm0, %v7016_v29  ;;  %v10391_v57 = vld [vmem:[#allocation50_spill] sm:$0xff] }
  0x9f   :  { %5007 = vmatmul.mubr.msk.f32.gmra.mxu1 %vm150_vm0, %v6612_v54  ;;  %1346 = vmatprep.mubr.f32.mxu0 %v10312_v55  ;;  %v10390_v54 = vld [vmem:[#allocation10_spill] sm:$0xff] }
  0xa0   :  { %1651 = vmatpush1.msra.mxu0 %v5834_v8  ;;  %1555 = vmatprep.mubr.f32.mxu1 %v10312_v55  ;;  %v7060_v8 = vld [vmem:[%s10114_s0 + $0x44] ss:$2 sm:$0xff] }
  0xa1   :  { %1812 = vmatpush1.msra.mxu1 %v6133_v58  ;;  %1652 = vmatprep.subr.mxu0 %v5846_v10  ;;  %v7090_v10 = vld [vmem:[%s10114_s0 + $0x64] ss:$2 sm:$0xff] }
  0xa2   :  { %1813 = vmatprep.subr.mxu1 %v6146_v60  ;;  %4992 = vmatmul.mubr.msk.f32.gmra.mxu0 %vm150_vm0, %v7031_v4  ;;  %v7180_v58 = vld [vmem:[%s10114_s0 + $0xc4] ss:$2 sm:$0xff]  ;;  %v7195_v60 = vld [vmem:[%s10114_s0 + $0xd4] ss:$2 sm:$0xff] }
  0xa3   :  { %5008 = vmatmul.mubr.msk.f32.gmra.mxu1 %vm150_vm0, %v6642_v36  ;;  %1352 = vmatprep.mubr.f32.mxu0 %v10312_v55  ;;  %v10395_v36 = vld [vmem:[#allocation14_spill] sm:$0xff] }
  0xa4   :  { %1561 = vmatprep.mubr.f32.mxu1 %v10312_v55  ;;  %1653 = vmatpush1.msra.mxu0 %v5856_v12  ;;  %v7105_v12 = vld [vmem:[%s10114_s0 + $0x74] ss:$2 sm:$0xff] }
  0xa5   :  { %1814 = vmatpush1.msra.mxu1 %v6170_v50  ;;  %1654 = vmatprep.subr.mxu0 %v5868_v14  ;;  %v7120_v14 = vld [vmem:[%s10114_s0 + $0x84] ss:$2 sm:$0xff] }
  0xa6   :  { %1815 = vmatprep.subr.mxu1 %v6183_v3  ;;  %4993 = vmatmul.mubr.msk.f32.gmra.mxu0 %vm150_vm0, %v7045_v6  ;;  %v7075_v3 = vld [vmem:[%s10114_s0 + $0x54] ss:$2 sm:$0xff] }
  0xa7   :  { %5009 = vmatmul.mubr.msk.f32.gmra.mxu1 %vm150_vm0, %v6671_v7  ;;  %1358 = vmatprep.mubr.f32.mxu0 %v10312_v55 }
  0xa8   :  { %1567 = vmatprep.mubr.f32.mxu1 %v10312_v55  ;;  %1655 = vmatpush1.msra.mxu0 %v5880_v16  ;;  %v10378_v16 = vld [vmem:[#allocation34_spill] sm:$0xff] }
  0xa9   :  { %1816 = vmatpush1.msra.mxu1 %v6207_v63  ;;  %1656 = vmatprep.subr.mxu0 %v5892_v18  ;;  %v10379_v18 = vld [vmem:[#allocation4_spill] sm:$0xff] }
  0xaa   :  { %1817 = vmatprep.subr.mxu1 %v6220_v56  ;;  %4994 = vmatmul.mubr.msk.f32.gmra.mxu0 %vm150_vm0, %v7060_v8  ;;  %v10394_v56 = vld [vmem:[#allocation12_spill] sm:$0xff] }
  0xab   :  { %5010 = vmatmul.mubr.msk.f32.gmra.mxu1 %vm150_vm0, %v6701_v11  ;;  %1364 = vmatprep.mubr.f32.mxu0 %v10312_v55 }
  0xac   :  { %1573 = vmatprep.mubr.f32.mxu1 %v10312_v55  ;;  %1657 = vmatpush1.msra.mxu0 %v5904_v20  ;;  %v10380_v20 = vld [vmem:[#allocation36_spill] sm:$0xff] }
  0xad   :  { %1818 = vmatpush1.msra.mxu1 %v6244_v49  ;;  %1658 = vmatprep.subr.mxu0 %v5916_v22  ;;  %v7135_v22 = vld [vmem:[%s10114_s0 + $0x94] ss:$2 sm:$0xff] }
  0xae   :  { %1819 = vmatprep.subr.mxu1 %v6257_v52  ;;  %4995 = vmatmul.mubr.msk.f32.gmra.mxu0 %vm150_vm0, %v7075_v3  ;;  %v10388_v49 = vld [vmem:[#allocation46_spill] sm:$0xff] }
  0xaf   :  { %5011 = vmatmul.mubr.msk.f32.gmra.mxu1 %vm150_vm0, %v6731_v15  ;;  %1370 = vmatprep.mubr.f32.mxu0 %v10312_v55  ;;  %v7165_v52 = vld [vmem:[%s10114_s0 + $0xb4] ss:$2 sm:$0xff] }
  0xb0   :  { %1579 = vmatprep.mubr.f32.mxu1 %v10312_v55  ;;  %1659 = vmatpush1.msra.mxu0 %v5928_v24  ;;  %v10381_v24 = vld [vmem:[#allocation5_spill] sm:$0xff]  ;;  %v10396_v15 = vld [vmem:[#allocation59_spill] sm:$0xff] }
  0xb1   :  { %1820 = vmatpush1.msra.mxu1 %v6281_v46  ;;  %1660 = vmatprep.subr.mxu0 %v5940_v26  ;;  %v10382_v26 = vld [vmem:[#allocation39_spill] sm:$0xff]  ;;  %v10386_v46 = vld [vmem:[#allocation44_spill] sm:$0xff] }
  0xb2   :  { %1821 = vmatprep.subr.mxu1 %v6294_v59  ;;  %4996 = vmatmul.mubr.msk.f32.gmra.mxu0 %vm150_vm0, %v7090_v10  ;;  %v10393_v59 = vld [vmem:[#allocation13_spill] sm:$0xff] }
  0xb3   :  { %5012 = vmatmul.mubr.msk.f32.gmra.mxu1 %vm150_vm0, %v6761_v19  ;;  %1376 = vmatprep.mubr.f32.mxu0 %v10312_v55 }
  0xb4   :  { %1585 = vmatprep.mubr.f32.mxu1 %v10312_v55  ;;  %1661 = vmatpush1.msra.mxu0 %v5952_v28  ;;  %v10383_v28 = vld [vmem:[#allocation6_spill] sm:$0xff] }
  0xb5   :  { %1822 = vmatpush1.msra.mxu1 %v6318_v42  ;;  %1662 = vmatprep.subr.mxu0 %v5964_v30  ;;  %v10384_v30 = vld [vmem:[#allocation41_spill] sm:$0xff]  ;;  %v10385_v42 = vld [vmem:[#allocation7_spill] sm:$0xff] }
  0xb6   :  { %1823 = vmatprep.subr.mxu1 %v6331_v48  ;;  %4997 = vmatmul.mubr.msk.f32.gmra.mxu0 %vm150_vm0, %v7105_v12  ;;  %v10387_v48 = vld [vmem:[#allocation8_spill] sm:$0xff] }
  0xb7   :  { %5013 = vmatmul.mubr.msk.f32.gmra.mxu1 %vm150_vm0, %v6791_v23  ;;  %1382 = vmatprep.mubr.f32.mxu0 %v10312_v55  ;;  %v10397_v23 = vld [vmem:[#allocation16_spill] sm:$0xff] }
  0xb8   :  { %1591 = vmatprep.mubr.f32.mxu1 %v10312_v55  ;;  %1663 = vmatpush1.msra.mxu0 %v5976_v32  ;;  %v7150_v32 = vld [vmem:[%s10114_s0 + $0xa4] ss:$2 sm:$0xff] }
  0xb9   :  { %1824 = vmatpush1.msra.mxu1 %v10378_v16  ;;  %1664 = vmatprep.subr.mxu0 %v10379_v18  ;;  %v10402_v16 = vld [vmem:[#allocation62_spill] sm:$0xff] }
  0xba   :  { %1825 = vmatprep.subr.mxu1 %v10380_v20  ;;  %4998 = vmatmul.mubr.msk.f32.gmra.mxu0 %vm150_vm0, %v7120_v14  ;;  %v10403_v20 = vld [vmem:[#allocation19_spill] sm:$0xff] }
  0xbb   :  { %5014 = vmatmul.mubr.msk.f32.gmra.mxu1 %vm150_vm0, %v6821_v27  ;;  %1388 = vmatprep.mubr.f32.mxu0 %v10312_v55  ;;  %v10398_v27 = vld [vmem:[#allocation60_spill] sm:$0xff] }
  0xbc   :  { %1597 = vmatprep.mubr.f32.mxu1 %v10312_v55  ;;  %1665 = vmatpush1.msra.mxu0 %v10381_v24 }
  0xbd   :  { %1826 = vmatpush1.msra.mxu1 %v10382_v26  ;;  %1666 = vmatprep.subr.mxu0 %v10383_v28  ;;  %v10404_v28 = vld [vmem:[#allocation17_spill] sm:$0xff] }
  0xbe   :  { %1827 = vmatprep.subr.mxu1 %v10384_v30  ;;  %4999 = vmatmul.mubr.msk.f32.gmra.mxu0 %vm150_vm0, %v7135_v22  ;;  %v10405_v30 = vld [vmem:[#allocation63_spill] sm:$0xff] }
  0xbf   :  { %5015 = vmatmul.mubr.msk.f32.gmra.mxu1 %vm150_vm0, %v6851_v31  ;;  %1394 = vmatprep.mubr.f32.mxu0 %v10312_v55 }
  0xc0   :  { %1603 = vmatprep.mubr.f32.mxu1 %v10312_v55  ;;  %1667 = vmatpush1.msra.mxu0 %v10385_v42 }
  0xc1   :  { %1828 = vmatpush1.msra.mxu1 %v10386_v46  ;;  %1668 = vmatprep.subr.mxu0 %v10387_v48 }
  0xc2   :  { %1829 = vmatprep.subr.mxu1 %v10388_v49  ;;  %5000 = vmatmul.mubr.msk.f32.gmra.mxu0 %vm150_vm0, %v7150_v32  ;;  %v10406_v49 = vld [vmem:[#allocation21_spill] sm:$0xff] }
  0xc3   :  { %5016 = vmatmul.mubr.msk.f32.gmra.mxu1 %vm150_vm0, %v6881_v35  ;;  %1400 = vmatprep.mubr.f32.mxu0 %v10312_v55  ;;  %v10399_v35 = vld [vmem:[#allocation15_spill] sm:$0xff] }
  0xc4   :  { %1609 = vmatprep.mubr.f32.mxu1 %v10312_v55  ;;  %1669 = vmatpush1.msra.mxu0 %v10389_v53  ;;  %v10407_v53 = vld [vmem:[#allocation64_spill] sm:$0xff] }
  0xc5   :  { %1830 = vmatpush1.msra.mxu1 %v6466_v34  ;;  %1670 = vmatprep.subr.mxu0 %v10390_v54  ;;  %v10392_v34 = vld [vmem:[#allocation11_spill] sm:$0xff]  ;;  %v10408_v54 = vld [vmem:[#allocation22_spill] sm:$0xff] }
  0xc6   :  { %1831 = vmatprep.subr.mxu1 %v10391_v57  ;;  %5001 = vmatmul.mubr.msk.f32.gmra.mxu0 %vm150_vm0, %v7165_v52 }
  0xc7   :  { %5017 = vmatmul.mubr.msk.f32.gmra.mxu1 %vm150_vm0, %v6911_v39  ;;  %1406 = vmatprep.mubr.f32.mxu0 %v10312_v55  ;;  %v10400_v39 = vld [vmem:[#allocation61_spill] sm:$0xff] }
  0xc8   :  { %1615 = vmatprep.mubr.f32.mxu1 %v10312_v55  ;;  %1671 = vmatpush1.msra.mxu0 %v10392_v34 }
  0xc9   :  { %1832 = vmatpush1.msra.mxu1 %v6503_v38  ;;  %2002 = vmatprep.subr.mxu0 %v10393_v59  ;;  %v7206_v38 = vld [vmem:[%s10114_s0 + $0xe4] ss:$2 sm:$0xff] }
  0xca   :  { %2275 = vmatprep.subr.mxu1 %v6516_v40  ;;  %5002 = vmatmul.mubr.msk.f32.gmra.mxu0 %vm150_vm0, %v7180_v58  ;;  %v7217_v40 = vld [vmem:[%s10114_s0 + $0xf4] ss:$2 sm:$0x3f]  ;;  %v10409_v59 = vld [vmem:[#allocation20_spill] sm:$0xff] }
  0xcb   :  { %5018 = vmatmul.mubr.msk.f32.gmra.mxu1 %vm150_vm0, %v6936_v43  ;;  %1412 = vmatprep.mubr.f32.mxu0 %v10312_v55 }
  0xcc   :  { %1621 = vmatprep.mubr.f32.mxu1 %v10312_v55 }
  0xce   :  { %5003 = vmatmul.mubr.msk.f32.gmra.mxu0 %vm150_vm0, %v7195_v60 }
  0xcf   :  { %5019 = vmatmul.mubr.msk.f32.gmra.mxu1 %vm150_vm0, %v6956_v45  ;;  %1418 = vmatprep.mubr.f32.mxu0 %v10312_v55  ;;  %v10401_v45 = vld [vmem:[#allocation18_spill] sm:$0xff] }
  0xd0   :  { %1627 = vmatprep.mubr.f32.mxu1 %v10312_v55 }
  0xd2   :  { %5004 = vmatmul.mubr.msk.f32.gmra.mxu0 %vm150_vm0, %v7206_v38 }
  0xd3   :  { %5020 = vmatmul.mubr.msk.f32.gmra.mxu1 %vm150_vm0, %v6972_v47  ;;  %1424 = vmatprep.mubr.f32.mxu0 %v10312_v55 }
  0xd4   :  { %1633 = vmatprep.mubr.f32.mxu1 %v10312_v55 }
  0xd6   :  { %5005 = vmatmul.mubr.msk.f32.gmra.mxu0 %vm150_vm0, %v7217_v40 }
  0xd7   :  { %5021 = vmatmul.mubr.msk.f32.gmra.mxu1 %vm150_vm0, %v6988_v1  ;;  %1704 = vmatprep.mubr.f32.mxu0 %v10312_v55 }
  0xd8   :  { %1865 = vmatprep.mubr.f32.mxu1 %v10312_v55 }
  0xda   :  { %v265_v63 = vpop.f32.mrf.mxu0  ;;  %5022 = vmatmul.mubr.msk.f32.vlgmr.msra.gmra.mxu0 %vm150_vm0, %v10394_v56 }
  0xdb   :  { %v474_v50 = vpop.f32.mrf.mxu1  ;;  %5038 = vmatmul.mubr.msk.f32.vlgmr.msra.gmra.mxu1 %vm150_vm0, %v6591_v62  ;;  %2003 = vmatpush1.msra.mxu0 %v10395_v36 }
  0xdc   :  { %v7230_v61 = vadd.f32 %v474_v50, %v265_v63  ;;  %1710 = vmatprep.mubr.f32.mxu0 %v10312_v55  ;;  %v267_v7 = vpop.f32.mrf.mxu0  ;;  %2276 = vmatpush1.msra.mxu1 %v10396_v15  ;;  %v10410_v63 = vld [vmem:[#allocation65_spill] sm:$0xff] }
  0xdd   :  { %v476_v11 = vpop.f32.mrf.mxu1  ;;  %1871 = vmatprep.mubr.f32.mxu1 %v10312_v55  ;;  %2004 = vmatprep.subr.mxu0 %v10397_v23  ;;  %v10413_v15 = vld [vmem:[#allocation25_spill] sm:$0xff] }
  0xde   :  { %v7236_v19 = vadd.f32 %v476_v11, %v267_v7  ;;  %2277 = vmatprep.subr.mxu1 %v10398_v27  ;;  %v271_v31 = vpop.f32.mrf.mxu0  ;;  %5023 = vmatmul.mubr.msk.f32.gmra.mxu0 %vm150_vm0, %v10399_v35  ;;  %v10411_v7 = vld [vmem:[#allocation24_spill] sm:$0xff]  ;;  %v10412_v11 = vld [vmem:[#allocation66_spill] sm:$0xff] }
  0xdf   :  { %v480_v62 = vpop.f32.mrf.mxu1  ;;  %5039 = vmatmul.mubr.msk.f32.gmra.mxu1 %vm150_vm0, %v10400_v39  ;;  %1716 = vmatprep.mubr.f32.mxu0 %v10312_v55 }
  0xe0   :  { %v7244_v43 = vadd.f32 %v480_v62, %v271_v31  ;;  %2005 = vmatpush1.msra.mxu0 %v10401_v45  ;;  %v273_v1 = vpop.f32.mrf.mxu0  ;;  %1877 = vmatprep.mubr.f32.mxu1 %v10312_v55  ;;  %v10414_v31 = vld [vmem:[#allocation23_spill] sm:$0xff] }
  0xe1   :  { %v482_v47 = vpop.f32.mrf.mxu1  ;;  %2278 = vmatpush1.msra.mxu1 %v10402_v16  ;;  %2006 = vmatprep.subr.mxu0 %v10403_v20  ;;  %v10415_v62 = vld [vmem:[#allocation67_spill] sm:$0xff]  ;;  %v10418_v16 = vld [vmem:[#allocation28_spill] sm:$0xff] }
  0xe2   :  { %v7250_v18 = vadd.f32 %v482_v47, %v273_v1  ;;  %2279 = vmatprep.subr.mxu1 %v6635_v2  ;;  %v277_v24 = vpop.f32.mrf.mxu0  ;;  %5024 = vmatmul.mubr.msk.f32.gmra.mxu0 %vm150_vm0, %v10404_v28  ;;  %v10416_v1 = vld [vmem:[#allocation27_spill] sm:$0xff]  ;;  %v10417_v47 = vld [vmem:[#allocation68_spill] sm:$0xff]  ;;  %v10420_v28 = vld [vmem:[#allocation69_spill] sm:$0xff] }
  0xe3   :  { %v486_v26 = vpop.f32.mrf.mxu1  ;;  %5040 = vmatmul.mubr.msk.f32.gmra.mxu1 %vm150_vm0, %v10405_v30  ;;  %1722 = vmatprep.mubr.f32.mxu0 %v10312_v55 }
  0xe4   :  { %v7258_v42 = vadd.f32 %v486_v26, %v277_v24  ;;  %1883 = vmatprep.mubr.f32.mxu1 %v10312_v55  ;;  %v279_v46 = vpop.f32.mrf.mxu0  ;;  %2007 = vmatpush1.msra.mxu0 %v10406_v49  ;;  %v10419_v26 = vld [vmem:[#allocation26_spill] sm:$0xff] }
  0xe5   :  { %v488_v48 = vpop.f32.mrf.mxu1  ;;  %2280 = vmatpush1.msra.mxu1 %v10407_v53  ;;  %2008 = vmatprep.subr.mxu0 %v10408_v54  ;;  %v10421_v49 = vld [vmem:[#allocation30_spill] sm:$0xff]  ;;  %v10423_v54 = vld [vmem:[#allocation31_spill] sm:$0xff] }
  0xe6   :  { %v7264_v2 = vadd.f32 %v488_v48, %v279_v46  ;;  %2281 = vmatprep.subr.mxu1 %v6665_v44  ;;  %v283_v57 = vpop.f32.mrf.mxu0  ;;  %5025 = vmatmul.mubr.msk.f32.gmra.mxu0 %vm150_vm0, %v10409_v59  ;;  %v10422_v53 = vld [vmem:[#allocation70_spill] sm:$0xff]  ;;  %v10424_v59 = vld [vmem:[#allocation29_spill] sm:$0xff] }
  0xe7   :  { %v492_v34 = vpop.f32.mrf.mxu1  ;;  %5041 = vmatmul.mubr.msk.f32.gmra.mxu1 %vm150_vm0, %v10410_v63  ;;  %1728 = vmatprep.mubr.f32.mxu0 %v10312_v55  ;;  %v10425_v63 = vld [vmem:[#allocation71_spill] sm:$0xff] }
  0xe8   :  { %v7272_v50 = vadd.f32 %v492_v34, %v283_v57  ;;  %1889 = vmatprep.mubr.f32.mxu1 %v10312_v55  ;;  %v285_v56 = vpop.f32.mrf.mxu0  ;;  %2009 = vmatpush1.msra.mxu0 %v10411_v7 }
  0xe9   :  { %v494_v36 = vpop.f32.mrf.mxu1  ;;  %2282 = vmatpush1.msra.mxu1 %v10412_v11  ;;  %2010 = vmatprep.subr.mxu0 %v10413_v15  ;;  %v10426_v11 = vld [vmem:[#allocation33_spill] sm:$0xff]  ;;  %v10427_v15 = vld [vmem:[#allocation72_spill] sm:$0xff] }
  0xea   :  { %v7278_v44 = vadd.f32 %v494_v36, %v285_v56  ;;  %2283 = vmatprep.subr.mxu1 %v6695_v0  ;;  %v289_v23 = vpop.f32.mrf.mxu0  ;;  %5026 = vmatmul.mubr.msk.f32.gmra.mxu0 %vm150_vm0, %v10414_v31 }
  0xeb   :  { %v498_v27 = vpop.f32.mrf.mxu1  ;;  %5042 = vmatmul.mubr.msk.f32.gmra.mxu1 %vm150_vm0, %v10415_v62  ;;  %1734 = vmatprep.mubr.f32.mxu0 %v10312_v55  ;;  %v10429_v62 = vld [vmem:[#allocation32_spill] sm:$0xff] }
  0xec   :  { %v7286_v35 = vadd.f32 %v498_v27, %v289_v23  ;;  %1895 = vmatprep.mubr.f32.mxu1 %v10312_v55  ;;  %v291_v39 = vpop.f32.mrf.mxu0  ;;  %2011 = vmatpush1.msra.mxu0 %v10416_v1  ;;  %v10428_v23 = vld [vmem:[#allocation35_spill] sm:$0xff] }
  0xed   :  { %v500_v45 = vpop.f32.mrf.mxu1  ;;  %2284 = vmatpush1.msra.mxu1 %v10417_v47  ;;  %2012 = vmatprep.subr.mxu0 %v10418_v16  ;;  %v10431_v16 = vld [vmem:[#allocation38_spill] sm:$0xff] }
  0xee   :  { %v7292_v0 = vadd.f32 %v500_v45, %v291_v39  ;;  %2285 = vmatprep.subr.mxu1 %v6725_v5  ;;  %v295_v20 = vpop.f32.mrf.mxu0  ;;  %5027 = vmatmul.mubr.msk.f32.gmra.mxu0 %vm150_vm0, %v10419_v26  ;;  %v10430_v39 = vld [vmem:[#allocation73_spill] sm:$0xff] }
  0xef   :  { %v504_v24 = vpop.f32.mrf.mxu1  ;;  %5043 = vmatmul.mubr.msk.f32.gmra.mxu1 %vm150_vm0, %v10420_v28  ;;  %1740 = vmatprep.mubr.f32.mxu0 %v10312_v55 }
  0xf0   :  { %v7300_v30 = vadd.f32 %v504_v24, %v295_v20  ;;  %1901 = vmatprep.mubr.f32.mxu1 %v10312_v55  ;;  %v297_v46 = vpop.f32.mrf.mxu0  ;;  %2013 = vmatpush1.msra.mxu0 %v10421_v49  ;;  %v10432_v20 = vld [vmem:[#allocation74_spill] sm:$0xff]  ;;  %v10433_v24 = vld [vmem:[#allocation40_spill] sm:$0xff] }
  0xf1   :  { %v506_v48 = vpop.f32.mrf.mxu1  ;;  %2286 = vmatpush1.msra.mxu1 %v10422_v53  ;;  %2014 = vmatprep.subr.mxu0 %v10423_v54 }
  0xf2   :  { %v7306_v5 = vadd.f32 %v506_v48, %v297_v46  ;;  %2287 = vmatprep.subr.mxu1 %v6755_v9  ;;  %v301_v57 = vpop.f32.mrf.mxu0  ;;  %5028 = vmatmul.mubr.msk.f32.gmra.mxu0 %vm150_vm0, %v10424_v59  ;;  %v10434_v46 = vld [vmem:[#allocation37_spill] sm:$0xff]  ;;  %v10435_v48 = vld [vmem:[#allocation75_spill] sm:$0xff] }
  0xf3   :  { %v510_v34 = vpop.f32.mrf.mxu1  ;;  %5044 = vmatmul.mubr.msk.f32.gmra.mxu1 %vm150_vm0, %v10425_v63  ;;  %1746 = vmatprep.mubr.f32.mxu0 %v10312_v55  ;;  %v10438_v59 = vld [vmem:[#allocation45_spill] sm:$0xff] }
  0xf4   :  { %v7314_v56 = vadd.f32 %v510_v34, %v301_v57  ;;  %1907 = vmatprep.mubr.f32.mxu1 %v10312_v55  ;;  %v303_v36 = vpop.f32.mrf.mxu0  ;;  %2015 = vmatpush1.msra.mxu0 %v10426_v11  ;;  %v10436_v57 = vld [vmem:[#allocation43_spill] sm:$0xff]  ;;  %v10437_v34 = vld [vmem:[#allocation76_spill] sm:$0xff]  ;;  %v10440_v11 = vld [vmem:[#allocation77_spill] sm:$0xff] }
  0xf5   :  { %v512_v7 = vpop.f32.mrf.mxu1  ;;  %2288 = vmatpush1.msra.mxu1 %v10427_v15  ;;  %2016 = vmatprep.subr.mxu0 %v10428_v23 }
  0xf6   :  { %v7320_v9 = vadd.f32 %v512_v7, %v303_v36  ;;  %2289 = vmatprep.subr.mxu1 %v6785_v13  ;;  %v307_v27 = vpop.f32.mrf.mxu0  ;;  %5029 = vmatmul.mubr.msk.f32.gmra.mxu0 %vm150_vm0, %v10429_v62  ;;  %v10439_v7 = vld [vmem:[#allocation42_spill] sm:$0xff] }
  0xf7   :  { %v516_v31 = vpop.f32.mrf.mxu1  ;;  %5045 = vmatmul.mubr.msk.f32.gmra.mxu1 %vm150_vm0, %v10430_v39  ;;  %1752 = vmatprep.mubr.f32.mxu0 %v10312_v55  ;;  %v10442_v62 = vld [vmem:[#allocation78_spill] sm:$0xff]  ;;  %v10443_v39 = vld [vmem:[#allocation49_spill] sm:$0xff] }
  0xf8   :  { %v7328_v45 = vadd.f32 %v516_v31, %v307_v27  ;;  %1913 = vmatprep.mubr.f32.mxu1 %v10312_v55  ;;  %v309_v1 = vpop.f32.mrf.mxu0  ;;  %2017 = vmatpush1.msra.mxu0 %v10431_v16  ;;  %v10441_v31 = vld [vmem:[#allocation48_spill] sm:$0xff]  ;;  %v10444_v16 = vld [vmem:[#allocation47_spill] sm:$0xff] }
  0xf9   :  { %v518_v47 = vpop.f32.mrf.mxu1  ;;  %2290 = vmatpush1.msra.mxu1 %v10432_v20  ;;  %2018 = vmatprep.subr.mxu0 %v10433_v24  ;;  %v10445_v20 = vld [vmem:[#allocation79_spill] sm:$0xff] }
  0xfa   :  { %v7334_v13 = vadd.f32 %v518_v47, %v309_v1  ;;  %2291 = vmatprep.subr.mxu1 %v6815_v17  ;;  %v313_v26 = vpop.f32.mrf.mxu0  ;;  %5030 = vmatmul.mubr.msk.f32.gmra.mxu0 %vm150_vm0, %v10434_v46  ;;  %v10446_v46 = vld [vmem:[#allocation52_spill] sm:$0xff] }
  0xfb   :  { %v522_v28 = vpop.f32.mrf.mxu1  ;;  %5046 = vmatmul.mubr.msk.f32.gmra.mxu1 %vm150_vm0, %v10435_v48  ;;  %1758 = vmatprep.mubr.f32.mxu0 %v10312_v55  ;;  %v10447_v48 = vld [vmem:[#allocation53_spill] sm:$0xff] }
  0xfc   :  { %v7342_v49 = vadd.f32 %v522_v28, %v313_v26  ;;  %1919 = vmatprep.mubr.f32.mxu1 %v10312_v55  ;;  %v315_v53 = vpop.f32.mrf.mxu0  ;;  %2019 = vmatpush1.msra.mxu0 %v10436_v57 }
  0xfd   :  { %v524_v54 = vpop.f32.mrf.mxu1  ;;  %2292 = vmatpush1.msra.mxu1 %v10437_v34  ;;  %2020 = vmatprep.subr.mxu0 %v10438_v59  ;;  %v10449_v34 = vld [vmem:[#allocation51_spill] sm:$0xff] }
  0xfe   :  { %v7348_v17 = vadd.f32 %v524_v54, %v315_v53  ;;  %2293 = vmatprep.subr.mxu1 %v6845_v21  ;;  %v319_v63 = vpop.f32.mrf.mxu0  ;;  %5031 = vmatmul.mubr.msk.f32.gmra.mxu0 %vm150_vm0, %v10439_v7  ;;  %v10448_v53 = vld [vmem:[#allocation80_spill] sm:$0xff] }
  0xff   :  { %v528_v36 = vpop.f32.mrf.mxu1  ;;  %5047 = vmatmul.mubr.msk.f32.gmra.mxu1 %vm150_vm0, %v10440_v11  ;;  %1764 = vmatprep.mubr.f32.mxu0 %v10312_v55 }
 0x100   :  { %v7356_v15 = vadd.f32 %v528_v36, %v319_v63  ;;  %1925 = vmatprep.mubr.f32.mxu1 %v10312_v55  ;;  %v321_v23 = vpop.f32.mrf.mxu0  ;;  %2021 = vmatpush1.msra.mxu0 %v10441_v31  ;;  %v10450_v36 = vld [vmem:[#allocation55_spill] sm:$0xff] }
 0x101   :  { %v530_v27 = vpop.f32.mrf.mxu1  ;;  %2294 = vmatpush1.msra.mxu1 %v10442_v62  ;;  %2022 = vmatprep.subr.mxu0 %v10443_v39 }
 0x102   :  { %v7362_v21 = vadd.f32 %v530_v27, %v321_v23  ;;  %2295 = vmatprep.subr.mxu1 %v6875_v25  ;;  %v325_v1 = vpop.f32.mrf.mxu0  ;;  %5032 = vmatmul.mubr.msk.f32.gmra.mxu0 %vm150_vm0, %v10444_v16  ;;  %v10451_v27 = vld [vmem:[#allocation54_spill] sm:$0xff]  ;;  %v10453_v16 = vld [vmem:[#allocation56_spill] sm:$0xff] }
 0x103   :  { %v534_v47 = vpop.f32.mrf.mxu1  ;;  %5048 = vmatmul.mubr.msk.f32.gmra.mxu1 %vm150_vm0, %v10445_v20  ;;  %1770 = vmatprep.mubr.f32.mxu0 %v10312_v55  ;;  %v10454_v20 = vld [vmem:[#allocation82_spill] sm:$0xff] }
 0x104   :  { %v7370_v24 = vadd.f32 %v534_v47, %v325_v1  ;;  %1931 = vmatprep.mubr.f32.mxu1 %v10312_v55  ;;  %v327_v26 = vpop.f32.mrf.mxu0  ;;  %2023 = vmatpush1.msra.mxu0 %v10446_v46 }
 0x105   :  { %v536_v28 = vpop.f32.mrf.mxu1  ;;  %2296 = vmatpush1.msra.mxu1 %v6895_v33  ;;  %2024 = vmatprep.subr.mxu0 %v10447_v48 }
 0x106   :  { %v7376_v25 = vadd.f32 %v536_v28, %v327_v26  ;;  %2297 = vmatprep.subr.mxu1 %v10448_v53  ;;  %v331_v54 = vpop.f32.mrf.mxu0  ;;  %5033 = vmatmul.mubr.msk.f32.gmra.mxu0 %vm150_vm0, %v10449_v34  ;;  %v10456_v34 = vld [vmem:[#allocation83_spill] sm:$0xff] }
 0x107   :  { %v540_v57 = vpop.f32.mrf.mxu1  ;;  %5049 = vmatmul.mubr.msk.f32.gmra.mxu1 %vm150_vm0, %v6917_v41  ;;  %1776 = vmatprep.mubr.f32.mxu0 %v10312_v55  ;;  %v10452_v41 = vld [vmem:[#allocation81_spill] sm:$0xff] }
 0x108   :  { %v7384_v59 = vadd.f32 %v540_v57, %v331_v54  ;;  %1937 = vmatprep.mubr.f32.mxu1 %v10312_v55  ;;  %v333_v33 = vpop.f32.mrf.mxu0  ;;  %2025 = vmatpush1.msra.mxu0 %v10450_v36  ;;  %v10455_v57 = vld [vmem:[#allocation57_spill] sm:$0xff] }
 0x109   :  { %v542_v63 = vpop.f32.mrf.mxu1  ;;  %2298 = vmatpush1.msra.mxu1 %v6925_v37 }
 0x10a   :  { %v7390_v7 = vadd.f32 %v542_v63, %v333_v33  ;;  %v337_v11 = vpop.f32.mrf.mxu0  ;;  %5034 = vmatmul.mubr.msk.f32.gmra.mxu0 %vm150_vm0, %v10451_v27 }
 0x10b   :  { %v546_v23 = vpop.f32.mrf.mxu1  ;;  %5050 = vmatmul.mubr.msk.f32.gmra.mxu1 %vm150_vm0, %v10452_v41  ;;  %1782 = vmatprep.mubr.f32.mxu0 %v10312_v55  ;;  %v10457_v41 = vld [vmem:[#allocation58_spill] sm:$0xff] }
 0x10c   :  { %v7396_v31 = vadd.f32 %v546_v23, %v337_v11  ;;  %1943 = vmatprep.mubr.f32.mxu1 %v10312_v55  ;;  %v339_v62 = vpop.f32.mrf.mxu0 }
 0x10d   :  { %v548_v39 = vpop.f32.mrf.mxu1 }
 0x10e   :  { %v7400_v1 = vadd.f32 %v548_v39, %v339_v62  ;;  %v343_v37 = vpop.f32.mrf.mxu0  ;;  %5035 = vmatmul.mubr.msk.f32.gmra.mxu0 %vm150_vm0, %v10453_v16  ;;  %v10458_v62 = vld [vmem:[#allocation84_spill] sm:$0xff] }
 0x10f   :  { %v552_v47 = vpop.f32.mrf.mxu1  ;;  %5051 = vmatmul.mubr.msk.f32.gmra.mxu1 %vm150_vm0, %v10454_v20  ;;  %1788 = vmatprep.mubr.f32.mxu0 %v10312_v55 }
 0x110   :  { %v7406_v26 = vadd.f32 %v552_v47, %v343_v37  ;;  %1949 = vmatprep.mubr.f32.mxu1 %v10312_v55  ;;  %v345_v28 = vpop.f32.mrf.mxu0  ;;  %v5070_v37 = vld [vmem:[%s10114_s0 + $0x5] ss:$2 sm:$0xff] }
 0x111   :  { %v554_v46 = vpop.f32.mrf.mxu1 }
 0x112   :  { %v7410_v48 = vadd.f32 %v554_v46, %v345_v28  ;;  %v349_v53 = vpop.f32.mrf.mxu0  ;;  %5036 = vmatmul.mubr.msk.f32.gmra.mxu0 %vm150_vm0, %v10455_v57 }
 0x113   :  { %v558_v54 = vpop.f32.mrf.mxu1  ;;  %5052 = vmatmul.mubr.msk.f32.gmra.mxu1 %vm150_vm0, %v10456_v34  ;;  %1794 = vmatprep.mubr.f32.mxu0 %v10312_v55 }
 0x114   :  { %v7416_v33 = vadd.f32 %v558_v54, %v349_v53  ;;  %1955 = vmatprep.mubr.f32.mxu1 %v10312_v55  ;;  %v351_v63 = vpop.f32.mrf.mxu0  ;;  %v5071_v54 = vld [vmem:[%s10114_s0 + $0x15] ss:$2 sm:$0xff] }
 0x115   :  { %v560_v36 = vpop.f32.mrf.mxu1 }
 0x116   :  { %v7420_v11 = vadd.f32 %v560_v36, %v351_v63  ;;  %v355_v23 = vpop.f32.mrf.mxu0  ;;  %5037 = vmatmul.mubr.msk.f32.gmra.mxu0 %vm150_vm0, %v10457_v41  ;;  %v5072_v41 = vld [vmem:[%s10114_s0 + $0x25] ss:$2 sm:$0xff] }
 0x117   :  { %v564_v27 = vpop.f32.mrf.mxu1  ;;  %5053 = vmatmul.mubr.msk.f32.gmra.mxu1 %vm150_vm0, %v10458_v62  ;;  %2058 = vmatprep.mubr.f32.mxu0 %v10312_v55 }
 0x118   :  { %v7426_v39 = vadd.f32 %v564_v27, %v355_v23  ;;  %2331 = vmatprep.mubr.f32.mxu1 %v10312_v55  ;;  %v357_v47 = vpop.f32.mrf.mxu0 }
 0x119   :  { %v566_v16 = vpop.f32.mrf.mxu1 }
 0x11a   :  { %v7433_v20 = vadd.f32 %v566_v16, %v357_v47  ;;  %v740_v28 = vpop.f32.mrf.mxu0  ;;  %5054 = vmatmul.mubr.msk.f32.vlgmr.msra.gmra.mxu0 %vm150_vm0, %v7004_v51 }
 0x11b   :  { %v1038_v46 = vpop.f32.mrf.mxu1  ;;  %5086 = vmatmul.mubr.msk.f32.vlgmr.msra.gmra.mxu1 %vm150_vm0, %v5070_v37  ;;  %v835_v53 = vadd.f32 %v740_v28, %v7230_v61  ;;  %2064 = vmatprep.mubr.f32.mxu0 %v10312_v55 }
 0x11c   :  { %2337 = vmatprep.mubr.f32.mxu1 %v10312_v55  ;;  %v742_v57 = vpop.f32.mrf.mxu0 }
 0x11d   :  { %v1040_v34 = vpop.f32.mrf.mxu1  ;;  %v7444_v63 = vadd.f32 %v1038_v46, %v835_v53  ;;  %v836_v36 = vadd.f32 %v742_v57, %v7236_v19  ;;  %v5073_v46 = vld [vmem:[%s10114_s0 + $0x35] ss:$2 sm:$0xff] }
 0x11e   :  { %v746_v51 = vpop.f32.mrf.mxu0  ;;  %5055 = vmatmul.mubr.msk.f32.gmra.mxu0 %vm150_vm0, %v7016_v29 }
 0x11f   :  { %v1044_v23 = vpop.f32.mrf.mxu1  ;;  %5087 = vmatmul.mubr.msk.f32.gmra.mxu1 %vm150_vm0, %v5071_v54  ;;  %v7450_v61 = vadd.f32 %v1040_v34, %v836_v36  ;;  %v837_v27 = vadd.f32 %v746_v51, %v7244_v43  ;;  %2070 = vmatprep.mubr.f32.mxu0 %v10312_v55  ;;  %v5074_v51 = vld [vmem:[%s10114_s0 + $0x45] ss:$2 sm:$0xff] }
 0x120   :  { %2343 = vmatprep.mubr.f32.mxu1 %v10312_v55  ;;  %v748_v19 = vpop.f32.mrf.mxu0 }
 0x121   :  { %v1046_v62 = vpop.f32.mrf.mxu1  ;;  %v7458_v37 = vadd.f32 %v1044_v23, %v837_v27  ;;  %v838_v29 = vadd.f32 %v748_v19, %v7250_v18 }
 0x122   :  { %v752_v47 = vpop.f32.mrf.mxu0  ;;  %5056 = vmatmul.mubr.msk.f32.gmra.mxu0 %vm150_vm0, %v7031_v4 }
 0x123   :  { %v1050_v16 = vpop.f32.mrf.mxu1  ;;  %5088 = vmatmul.mubr.msk.f32.gmra.mxu1 %vm150_vm0, %v5072_v41  ;;  %v7464_v43 = vadd.f32 %v1046_v62, %v838_v29  ;;  %v839_v28 = vadd.f32 %v752_v47, %v7258_v42  ;;  %2076 = vmatprep.mubr.f32.mxu0 %v10312_v55  ;;  %v5075_v29 = vld [vmem:[%s10114_s0 + $0x55] ss:$2 sm:$0xff] }
 0x124   :  { %2349 = vmatprep.mubr.f32.mxu1 %v10312_v55  ;;  %v754_v18 = vpop.f32.mrf.mxu0 }
 0x125   :  { %v1052_v53 = vpop.f32.mrf.mxu1  ;;  %v7472_v54 = vadd.f32 %v1050_v16, %v839_v28  ;;  %v840_v4 = vadd.f32 %v754_v18, %v7264_v2 }
 0x126   :  { %v758_v57 = vpop.f32.mrf.mxu0  ;;  %5057 = vmatmul.mubr.msk.f32.gmra.mxu0 %vm150_vm0, %v7045_v6 }
 0x127   :  { %v1056_v34 = vpop.f32.mrf.mxu1  ;;  %5089 = vmatmul.mubr.msk.f32.gmra.mxu1 %vm150_vm0, %v5073_v46  ;;  %v7478_v42 = vadd.f32 %v1052_v53, %v840_v4  ;;  %v841_v36 = vadd.f32 %v758_v57, %v7272_v50  ;;  %2082 = vmatprep.mubr.f32.mxu0 %v10312_v55  ;;  %v5076_v53 = vld [vmem:[%s10114_s0 + $0x65] ss:$2 sm:$0xff] }
 0x128   :  { %2355 = vmatprep.mubr.f32.mxu1 %v10312_v55  ;;  %v760_v2 = vpop.f32.mrf.mxu0 }
 0x129   :  { %v1058_v23 = vpop.f32.mrf.mxu1  ;;  %v7486_v27 = vadd.f32 %v1056_v34, %v841_v36  ;;  %v842_v6 = vadd.f32 %v760_v2, %v7278_v44  ;;  %v5077_v2 = vld [vmem:[%s10114_s0 + $0x75] ss:$2 sm:$0xff] }
 0x12a   :  { %v764_v41 = vpop.f32.mrf.mxu0  ;;  %5058 = vmatmul.mubr.msk.f32.gmra.mxu0 %vm150_vm0, %v7060_v8 }
 0x12b   :  { %v1062_v19 = vpop.f32.mrf.mxu1  ;;  %5090 = vmatmul.mubr.msk.f32.gmra.mxu1 %vm150_vm0, %v5074_v51  ;;  %v7492_v50 = vadd.f32 %v1058_v23, %v842_v6  ;;  %v843_v62 = vadd.f32 %v764_v41, %v7286_v35  ;;  %2088 = vmatprep.mubr.f32.mxu0 %v10312_v55 }
 0x12c   :  { %2361 = vmatprep.mubr.f32.mxu1 %v10312_v55  ;;  %v766_v44 = vpop.f32.mrf.mxu0 }
 0x12d   :  { %v1064_v47 = vpop.f32.mrf.mxu1  ;;  %v7500_v16 = vadd.f32 %v1062_v19, %v843_v62  ;;  %v844_v8 = vadd.f32 %v766_v44, %v7292_v0 }
 0x12e   :  { %v770_v28 = vpop.f32.mrf.mxu0  ;;  %5059 = vmatmul.mubr.msk.f32.gmra.mxu0 %vm150_vm0, %v7075_v3 }
 0x12f   :  { %v1068_v46 = vpop.f32.mrf.mxu1  ;;  %5091 = vmatmul.mubr.msk.f32.gmra.mxu1 %vm150_vm0, %v5075_v29  ;;  %v7506_v35 = vadd.f32 %v1064_v47, %v844_v8  ;;  %v845_v18 = vadd.f32 %v770_v28, %v7300_v30  ;;  %2094 = vmatprep.mubr.f32.mxu0 %v10312_v55  ;;  %v5078_v29 = vld [vmem:[%s10114_s0 + $0x85] ss:$2 sm:$0xff] }
 0x130   :  { %2367 = vmatprep.mubr.f32.mxu1 %v10312_v55  ;;  %v772_v0 = vpop.f32.mrf.mxu0 }
 0x131   :  { %v1070_v4 = vpop.f32.mrf.mxu1  ;;  %v7514_v57 = vadd.f32 %v1068_v46, %v845_v18  ;;  %v846_v3 = vadd.f32 %v772_v0, %v7306_v5  ;;  %v5079_v18 = vld [vmem:[%s10114_s0 + $0x95] ss:$2 sm:$0xff] }
 0x132   :  { %v776_v34 = vpop.f32.mrf.mxu0  ;;  %5060 = vmatmul.mubr.msk.f32.gmra.mxu0 %vm150_vm0, %v7090_v10 }
 0x133   :  { %v1074_v36 = vpop.f32.mrf.mxu1  ;;  %5092 = vmatmul.mubr.msk.f32.gmra.mxu1 %vm150_vm0, %v5076_v53  ;;  %v7520_v30 = vadd.f32 %v1070_v4, %v846_v3  ;;  %v847_v51 = vadd.f32 %v776_v34, %v7314_v56  ;;  %2100 = vmatprep.mubr.f32.mxu0 %v10312_v55  ;;  %v5080_v3 = vld [vmem:[%s10114_s0 + $0xa5] ss:$2 sm:$0xff] }
 0x134   :  { %2373 = vmatprep.mubr.f32.mxu1 %v10312_v55  ;;  %v778_v5 = vpop.f32.mrf.mxu0 }
 0x135   :  { %v1076_v23 = vpop.f32.mrf.mxu1  ;;  %v7528_v6 = vadd.f32 %v1074_v36, %v847_v51  ;;  %v848_v10 = vadd.f32 %v778_v5, %v7320_v9  ;;  %v5081_v5 = vld [vmem:[%s10114_s0 + $0xb5] ss:$2 sm:$0xff] }
 0x136   :  { %v782_v41 = vpop.f32.mrf.mxu0  ;;  %5061 = vmatmul.mubr.msk.f32.gmra.mxu0 %vm150_vm0, %v7105_v12 }
 0x137   :  { %v1080_v19 = vpop.f32.mrf.mxu1  ;;  %5093 = vmatmul.mubr.msk.f32.gmra.mxu1 %vm150_vm0, %v5077_v2  ;;  %v7534_v56 = vadd.f32 %v1076_v23, %v848_v10  ;;  %v849_v62 = vadd.f32 %v782_v41, %v7328_v45  ;;  %2106 = vmatprep.mubr.f32.mxu0 %v10312_v55 }
 0x138   :  { %2379 = vmatprep.mubr.f32.mxu1 %v10312_v55  ;;  %v784_v9 = vpop.f32.mrf.mxu0 }
 0x139   :  { %v1082_v44 = vpop.f32.mrf.mxu1  ;;  %v7542_v47 = vadd.f32 %v1080_v19, %v849_v62  ;;  %v850_v12 = vadd.f32 %v784_v9, %v7334_v13  ;;  %v5082_v62 = vld [vmem:[%s10114_s0 + $0xc5] ss:$2 sm:$0xff] }
 0x13a   :  { %v788_v8 = vpop.f32.mrf.mxu0  ;;  %5062 = vmatmul.mubr.msk.f32.gmra.mxu0 %vm150_vm0, %v7120_v14 }
 0x13b   :  { %v1086_v28 = vpop.f32.mrf.mxu1  ;;  %5094 = vmatmul.mubr.msk.f32.gmra.mxu1 %vm150_vm0, %v5078_v29  ;;  %v7548_v45 = vadd.f32 %v1082_v44, %v850_v12  ;;  %v851_v46 = vadd.f32 %v788_v8, %v7342_v49  ;;  %2112 = vmatprep.mubr.f32.mxu0 %v10312_v55  ;;  %v5083_v8 = vld [vmem:[%s10114_s0 + $0xd5] ss:$2 sm:$0xff] }
 0x13c   :  { %2385 = vmatprep.mubr.f32.mxu1 %v10312_v55  ;;  %v7556_v13 = vpop.f32.mrf.mxu0 }
 0x13d   :  { %v7558_v53 = vpop.f32.mrf.mxu1  ;;  %v7560_v14 = vadd.f32 %v1086_v28, %v851_v46 }
 0x13e   :  { %v794_v0 = vpop.f32.mrf.mxu0  ;;  %5063 = vmatmul.mubr.msk.f32.gmra.mxu0 %vm150_vm0, %v7135_v22 }
 0x13f   :  { %v1092_v4 = vpop.f32.mrf.mxu1  ;;  %5095 = vmatmul.mubr.msk.f32.gmra.mxu1 %vm150_vm0, %v5079_v18  ;;  %v853_v49 = vadd.f32 %v794_v0, %v7356_v15  ;;  %2118 = vmatprep.mubr.f32.mxu0 %v10312_v55 }
 0x140   :  { %2391 = vmatprep.mubr.f32.mxu1 %v10312_v55  ;;  %v7571_v34 = vpop.f32.mrf.mxu0 }
 0x141   :  { %v7573_v36 = vpop.f32.mrf.mxu1  ;;  %v7575_v51 = vadd.f32 %v1092_v4, %v853_v49  ;;  %v5084_v4 = vld [vmem:[%s10114_s0 + $0xe5] ss:$2 sm:$0xff] }
 0x142   :  { %v800_v22 = vpop.f32.mrf.mxu0  ;;  %5064 = vmatmul.mubr.msk.f32.gmra.mxu0 %vm150_vm0, %v7150_v32 }
 0x143   :  { %v1098_v2 = vpop.f32.mrf.mxu1  ;;  %5096 = vmatmul.mubr.msk.f32.gmra.mxu1 %vm150_vm0, %v5080_v3  ;;  %v855_v15 = vadd.f32 %v800_v22, %v7370_v24  ;;  %2124 = vmatprep.mubr.f32.mxu0 %v10312_v55 }
 0x144   :  { %2397 = vmatprep.mubr.f32.mxu1 %v10312_v55  ;;  %v7586_v23 = vpop.f32.mrf.mxu0 }
 0x145   :  { %v7588_v10 = vpop.f32.mrf.mxu1  ;;  %v7590_v41 = vadd.f32 %v1098_v2, %v855_v15  ;;  %v5085_v15 = vld [vmem:[%s10114_s0 + $0xf5] ss:$2 sm:$0x3f] }
 0x146   :  { %v806_v32 = vpop.f32.mrf.mxu0  ;;  %5065 = vmatmul.mubr.msk.f32.gmra.mxu0 %vm150_vm0, %v7165_v52 }
 0x147   :  { %v1104_v19 = vpop.f32.mrf.mxu1  ;;  %5097 = vmatmul.mubr.msk.f32.gmra.mxu1 %vm150_vm0, %v5081_v5  ;;  %v857_v24 = vadd.f32 %v806_v32, %v7384_v59  ;;  %2130 = vmatprep.mubr.f32.mxu0 %v10312_v55 }
 0x148   :  { %2403 = vmatprep.mubr.f32.mxu1 %v10312_v55  ;;  %v7601_v29 = vpop.f32.mrf.mxu0 }
 0x149   :  { %v7603_v9 = vpop.f32.mrf.mxu1  ;;  %v7605_v44 = vadd.f32 %v1104_v19, %v857_v24  ;;  %v2593_v19 = vld [vmem:[%s10115_s3 + $0xf8] sm:$0xff] }
 0x14a   :  { %v812_v52 = vpop.f32.mrf.mxu0  ;;  %5066 = vmatmul.mubr.msk.f32.gmra.mxu0 %vm150_vm0, %v7180_v58  ;;  %2756 = vmatprep.subr.mxu1 %v2593_v19  ;;  %v5128_v19 = vld [vmem:[%s10115_s3 + $0x1c8] sm:$0xff] }
 0x14b   :  { %v1110_v12 = vpop.f32.mrf.mxu1  ;;  %5098 = vmatmul.mubr.msk.f32.gmra.mxu1 %vm150_vm0, %v5082_v62  ;;  %v859_v59 = vadd.f32 %v812_v52, %v7396_v31  ;;  %2136 = vmatprep.mubr.f32.mxu0 %v10312_v55  ;;  %v2592_v62 = vld [vmem:[%s10115_s3 + $0xf0] sm:$0xff] }
 0x14c   :  { %2409 = vmatprep.mubr.f32.mxu1 %v10312_v55  ;;  %v7616_v28 = vpop.f32.mrf.mxu0  ;;  %2757 = vmatpush1.msra.mxu1 %v2592_v62  ;;  %v2587_v62 = vld [vmem:[%s10115_s3 + $0xc8] sm:$0xff] }
 0x14d   :  { %v7618_v46 = vpop.f32.mrf.mxu1  ;;  %v7620_v18 = vadd.f32 %v1110_v12, %v859_v59  ;;  %v5132_v59 = vld [vmem:[%s10115_s3 + $0x1e8] sm:$0xff] }
 0x14e   :  { %v818_v58 = vpop.f32.mrf.mxu0  ;;  %5067 = vmatmul.mubr.msk.f32.gmra.mxu0 %vm150_vm0, %v7195_v60 }
 0x14f   :  { %v1116_v0 = vpop.f32.mrf.mxu1  ;;  %5099 = vmatmul.mubr.msk.f32.gmra.mxu1 %vm150_vm0, %v5083_v8  ;;  %v861_v31 = vadd.f32 %v818_v58, %v7406_v26  ;;  %2142 = vmatprep.mubr.f32.mxu0 %v10312_v55  ;;  %v2591_v8 = vld [vmem:[%s10115_s3 + $0xe8] sm:$0xff] }
 0x150   :  { %2415 = vmatprep.mubr.f32.mxu1 %v10312_v55  ;;  %v7631_v49 = vpop.f32.mrf.mxu0  ;;  %2758 = vmatprep.subr.mxu1 %v2591_v8 }
 0x151   :  { %v7633_v3 = vpop.f32.mrf.mxu1  ;;  %v7635_v22 = vadd.f32 %v1116_v0, %v861_v31  ;;  %v5131_v0 = vld [vmem:[%s10115_s3 + $0x1e0] sm:$0xff] }
 0x152   :  { %v824_v60 = vpop.f32.mrf.mxu0  ;;  %5068 = vmatmul.mubr.msk.f32.gmra.mxu0 %vm150_vm0, %v7206_v38  ;;  %v5134_v38 = vld [vmem:[%s10115_s3 + $0x1f8] sm:$0xff] }
 0x153   :  { %v1122_v2 = vpop.f32.mrf.mxu1  ;;  %5100 = vmatmul.mubr.msk.f32.gmra.mxu1 %vm150_vm0, %v5084_v4  ;;  %v863_v26 = vadd.f32 %v824_v60, %v7416_v33  ;;  %2148 = vmatprep.mubr.f32.mxu0 %v10312_v55  ;;  %v5133_v33 = vld [vmem:[%s10115_s3 + $0x1f0] sm:$0xff]  ;;  %v2589_v60 = vld [vmem:[%s10115_s3 + $0xd8] sm:$0xff] }
 0x154   :  { %2421 = vmatprep.mubr.f32.mxu1 %v10312_v55  ;;  %v7646_v5 = vpop.f32.mrf.mxu0  ;;  %2643 = vmatprep.subr.mxu0 %v5134_v38 }
 0x155   :  { %v7648_v32 = vpop.f32.mrf.mxu1  ;;  %v7659_v24 = vadd.f32 %v1122_v2, %v863_v26  ;;  %2644 = vmatpush1.msra.mxu0 %v5133_v33  ;;  %v5129_v26 = vld [vmem:[%s10115_s3 + $0x1d0] sm:$0xff] }
 0x156   :  { %v830_v52 = vpop.f32.mrf.mxu0  ;;  %5069 = vmatmul.mubr.msk.f32.gmra.mxu0 %vm150_vm0, %v7217_v40  ;;  %v2590_v40 = vld [vmem:[%s10115_s3 + $0xe0] sm:$0xff]  ;;  %2645 = vmatprep.subr.mxu0 %v5132_v59 }
 0x157   :  { %v1128_v12 = vpop.f32.mrf.mxu1  ;;  %5101 = vmatmul.mubr.msk.f32.gmra.mxu1 %vm150_vm0, %v5085_v15  ;;  %v865_v58 = vadd.f32 %v830_v52, %v7426_v39  ;;  %v5130_v39 = vld [vmem:[%s10115_s3 + $0x1d8] sm:$0xff]  ;;  %2646 = vmatpush1.msra.mxu0 %v5131_v0  ;;  %v2588_v15 = vld [vmem:[%s10115_s3 + $0xd0] sm:$0xff]  ;;  %v2586_v59 = vld [vmem:[%s10115_s3 + $0xc0] sm:$0xff] }
 0x158   :  { %v7680_v31 = vpop.f32.mrf.mxu0  ;;  %2759 = vmatpush1.msra.mxu1 %v2590_v40  ;;  %2647 = vmatprep.subr.mxu0 %v5130_v39  ;;  %v2585_v0 = vld [vmem:[%s10115_s3 + $0xb8] sm:$0xff]  ;;  %v5125_v39 = vld [vmem:[%s10115_s3 + $0x1b0] sm:$0xff] }
 0x159   :  { %v7682_v4 = vpop.f32.mrf.mxu1  ;;  %v7690_v2 = vadd.f32 %v1128_v12, %v865_v58  ;;  %2760 = vmatprep.subr.mxu1 %v2589_v60  ;;  %2648 = vmatpush1.msra.mxu0 %v5129_v26  ;;  %v5127_v12 = vld [vmem:[%s10115_s3 + $0x1c0] sm:$0xff]  ;;  %v2584_v60 = vld [vmem:[%s10115_s3 + $0xb0] sm:$0xff] }
 0x15a   :  { %v1336_v38 = vpop.f32.mrf.mxu0  ;;  %2761 = vmatpush1.msra.mxu1 %v2588_v15  ;;  %2649 = vmatprep.subr.mxu0 %v5128_v19 }
 0x15b   :  { %v7698_v33 = vpop.f32.mrf.mxu1  ;;  %v7707_v52 = vadd.f32 %v1336_v38, %v7444_v63  ;;  %2762 = vmatprep.subr.mxu1 %v2587_v62  ;;  %v5126_v63 = vld [vmem:[%s10115_s3 + $0x1b8] sm:$0xff]  ;;  %2650 = vmatpush1.msra.mxu0 %v5127_v12  ;;  %v2583_v38 = vld [vmem:[%s10115_s3 + $0xa8] sm:$0xff]  ;;  %v5123_v12 = vld [vmem:[%s10115_s3 + $0x1a0] sm:$0xff] }
 0x15c   :  { %v1338_v8 = vpop.f32.mrf.mxu0  ;;  %2763 = vmatpush1.msra.mxu1 %v2586_v59  ;;  %2651 = vmatprep.subr.mxu0 %v5126_v63  ;;  %v2582_v59 = vld [vmem:[%s10115_s3 + $0xa0] sm:$0xff] }
 0x15d   :  { %v7715_v58 = vpop.f32.mrf.mxu1  ;;  %v7724_v40 = vadd.f32 %v1338_v8, %v7450_v61  ;;  %2764 = vmatprep.subr.mxu1 %v2585_v0  ;;  %v5124_v61 = vld [vmem:[%s10115_s3 + $0x1a8] sm:$0xff]  ;;  %2652 = vmatpush1.msra.mxu0 %v5125_v39  ;;  %v2581_v0 = vld [vmem:[%s10115_s3 + $0x98] sm:$0xff] }
 0x15e   :  { %v1342_v26 = vpop.f32.mrf.mxu0  ;;  %2765 = vmatpush1.msra.mxu1 %v2584_v60  ;;  %2653 = vmatprep.subr.mxu0 %v5124_v61  ;;  %v5121_v60 = vld [vmem:[%s10115_s3 + $0x190] sm:$0xff] }
 0x15f   :  { %10459 = vst [vmem:[#allocation34_spill] sm:$0xff] %v7724_v40  ;;  %v7732_v15 = vpop.f32.mrf.mxu1  ;;  %v7743_v62 = vadd.f32 %v1342_v26, %v7458_v37  ;;  %2766 = vmatprep.subr.mxu1 %v2583_v38  ;;  %v5122_v37 = vld [vmem:[%s10115_s3 + $0x198] sm:$0xff]  ;;  %2654 = vmatpush1.msra.mxu0 %v5123_v12  ;;  %v2580_v26 = vld [vmem:[%s10115_s3 + $0x90] sm:$0xff]  ;;  %v2579_v12 = vld [vmem:[%s10115_s3 + $0x88] sm:$0xff] }
 0x160   :  { %v1344_v8 = vpop.f32.mrf.mxu0  ;;  %2767 = vmatpush1.msra.mxu1 %v2582_v59  ;;  %2655 = vmatprep.subr.mxu0 %v5122_v37  ;;  %v5119_v37 = vld [vmem:[%s10115_s3 + $0x180] sm:$0xff] }
 0x161   :  { %10460 = vst [vmem:[#allocation4_spill] sm:$0xff] %v7743_v62  ;;  %v7751_v63 = vpop.f32.mrf.mxu1  ;;  %v7760_v39 = vadd.f32 %v1344_v8, %v7464_v43  ;;  %2768 = vmatprep.subr.mxu1 %v2581_v0  ;;  %v5120_v43 = vld [vmem:[%s10115_s3 + $0x188] sm:$0xff]  ;;  %2656 = vmatpush1.msra.mxu0 %v5121_v60  ;;  %v2578_v0 = vld [vmem:[%s10115_s3 + $0x80] sm:$0xff]  ;;  %v2577_v60 = vld [vmem:[%s10115_s3 + $0x78] sm:$0xff] }
 0x162   :  { %v1348_v61 = vpop.f32.mrf.mxu0  ;;  %2769 = vmatpush1.msra.mxu1 %v2580_v26  ;;  %2657 = vmatprep.subr.mxu0 %v5120_v43  ;;  %v2576_v43 = vld [vmem:[%s10115_s3 + $0x70] sm:$0xff] }
 0x163   :  { %10461 = vst [vmem:[#allocation36_spill] sm:$0xff] %v7760_v39  ;;  %v7768_v38 = vpop.f32.mrf.mxu1  ;;  %v7779_v8 = vadd.f32 %v1348_v61, %v7472_v54  ;;  %2770 = vmatprep.subr.mxu1 %v2579_v12  ;;  %v5118_v54 = vld [vmem:[%s10115_s3 + $0x178] sm:$0xff]  ;;  %2658 = vmatpush1.msra.mxu0 %v5119_v37  ;;  %v5117_v61 = vld [vmem:[%s10115_s3 + $0x170] sm:$0xff] }
 0x164   :  { %v1350_v19 = vpop.f32.mrf.mxu0  ;;  %2771 = vmatpush1.msra.mxu1 %v2578_v0  ;;  %2659 = vmatprep.subr.mxu0 %v5118_v54  ;;  %v5115_v54 = vld [vmem:[%s10115_s3 + $0x160] sm:$0xff] }
 0x165   :  { %10462 = vst [vmem:[#allocation5_spill] sm:$0xff] %v7779_v8  ;;  %v7787_v40 = vpop.f32.mrf.mxu1  ;;  %v7796_v26 = vadd.f32 %v1350_v19, %v7478_v42  ;;  %2772 = vmatprep.subr.mxu1 %v2577_v60  ;;  %v5116_v42 = vld [vmem:[%s10115_s3 + $0x168] sm:$0xff]  ;;  %2660 = vmatpush1.msra.mxu0 %v5117_v61  ;;  %v2574_v60 = vld [vmem:[%s10115_s3 + $0x60] sm:$0xff]  ;;  %v2573_v61 = vld [vmem:[%s10115_s3 + $0x58] sm:$0xff] }
 0x166   :  { %v1354_v12 = vpop.f32.mrf.mxu0  ;;  %v2575_v19 = vld [vmem:[%s10115_s3 + $0x68] sm:$0xff]  ;;  %2773 = vmatpush1.msra.mxu1 %v2576_v43  ;;  %2661 = vmatprep.subr.mxu0 %v5116_v42  ;;  %v2572_v42 = vld [vmem:[%s10115_s3 + $0x50] sm:$0xff] }
 0x167   :  { %10463 = vst [vmem:[#allocation39_spill] sm:$0xff] %v7796_v26  ;;  %v7804_v59 = vpop.f32.mrf.mxu1  ;;  %v7815_v0 = vadd.f32 %v1354_v12, %v7486_v27  ;;  %2774 = vmatprep.subr.mxu1 %v2575_v19  ;;  %v5114_v27 = vld [vmem:[%s10115_s3 + $0x158] sm:$0xff]  ;;  %2662 = vmatpush1.msra.mxu0 %v5115_v54  ;;  %v5113_v12 = vld [vmem:[%s10115_s3 + $0x150] sm:$0xff] }
 0x168   :  { %v1356_v39 = vpop.f32.mrf.mxu0  ;;  %2775 = vmatpush1.msra.mxu1 %v2574_v60  ;;  %2663 = vmatprep.subr.mxu0 %v5114_v27  ;;  %v5111_v27 = vld [vmem:[%s10115_s3 + $0x140] sm:$0xff] }
 0x169   :  { %10464 = vst [vmem:[#allocation6_spill] sm:$0xff] %v7815_v0  ;;  %v7823_v62 = vpop.f32.mrf.mxu1  ;;  %v7832_v43 = vadd.f32 %v1356_v39, %v7492_v50  ;;  %2776 = vmatprep.subr.mxu1 %v2573_v61  ;;  %v5112_v50 = vld [vmem:[%s10115_s3 + $0x148] sm:$0xff]  ;;  %2664 = vmatpush1.msra.mxu0 %v5113_v12  ;;  %v2570_v61 = vld [vmem:[%s10115_s3 + $0x40] sm:$0xff]  ;;  %v2569_v12 = vld [vmem:[%s10115_s3 + $0x38] sm:$0xff] }
 0x16a   :  { %v1360_v19 = vpop.f32.mrf.mxu0  ;;  %v2571_v39 = vld [vmem:[%s10115_s3 + $0x48] sm:$0xff]  ;;  %2777 = vmatpush1.msra.mxu1 %v2572_v42  ;;  %2665 = vmatprep.subr.mxu0 %v5112_v50  ;;  %v2568_v50 = vld [vmem:[%s10115_s3 + $0x30] sm:$0xff] }
 0x16b   :  { %10465 = vst [vmem:[#allocation41_spill] sm:$0xff] %v7832_v43  ;;  %v7840_v37 = vpop.f32.mrf.mxu1  ;;  %v7851_v60 = vadd.f32 %v1360_v19, %v7500_v16  ;;  %2778 = vmatprep.subr.mxu1 %v2571_v39  ;;  %v5110_v16 = vld [vmem:[%s10115_s3 + $0x138] sm:$0xff]  ;;  %2666 = vmatpush1.msra.mxu0 %v5111_v27  ;;  %v5109_v19 = vld [vmem:[%s10115_s3 + $0x130] sm:$0xff] }
 0x16c   :  { %v1362_v26 = vpop.f32.mrf.mxu0  ;;  %2779 = vmatpush1.msra.mxu1 %v2570_v61  ;;  %2667 = vmatprep.subr.mxu0 %v5110_v16  ;;  %v5107_v16 = vld [vmem:[%s10115_s3 + $0x120] sm:$0xff] }
 0x16d   :  { %10466 = vst [vmem:[#allocation7_spill] sm:$0xff] %v7851_v60  ;;  %v7859_v8 = vpop.f32.mrf.mxu1  ;;  %v7868_v42 = vadd.f32 %v1362_v26, %v7506_v35  ;;  %2780 = vmatprep.subr.mxu1 %v2569_v12  ;;  %v5108_v35 = vld [vmem:[%s10115_s3 + $0x128] sm:$0xff]  ;;  %2668 = vmatpush1.msra.mxu0 %v5109_v19  ;;  %v2566_v12 = vld [vmem:[%s10115_s3 + $0x20] sm:$0xff]  ;;  %v2565_v19 = vld [vmem:[%s10115_s3 + $0x18] sm:$0xff] }
 0x16e   :  { %v1366_v39 = vpop.f32.mrf.mxu0  ;;  %v2567_v26 = vld [vmem:[%s10115_s3 + $0x28] sm:$0xff]  ;;  %2781 = vmatpush1.msra.mxu1 %v2568_v50  ;;  %2669 = vmatprep.subr.mxu0 %v5108_v35  ;;  %v2564_v35 = vld [vmem:[%s10115_s3 + $0x10] sm:$0xff] }
 0x16f   :  { %10467 = vst [vmem:[#allocation44_spill] sm:$0xff] %v7868_v42  ;;  %v7876_v54 = vpop.f32.mrf.mxu1  ;;  %v7887_v61 = vadd.f32 %v1366_v39, %v7514_v57  ;;  %2782 = vmatprep.subr.mxu1 %v2567_v26  ;;  %v5106_v57 = vld [vmem:[%s10115_s3 + $0x118] sm:$0xff]  ;;  %2670 = vmatpush1.msra.mxu0 %v5107_v16  ;;  %v5105_v39 = vld [vmem:[%s10115_s3 + $0x110] sm:$0xff] }
 0x170   :  { %v1368_v43 = vpop.f32.mrf.mxu0  ;;  %2783 = vmatpush1.msra.mxu1 %v2566_v12  ;;  %2671 = vmatprep.subr.mxu0 %v5106_v57  ;;  %v5103_v57 = vld [vmem:[%s10115_s3 + $0x100] sm:$0xff] }
 0x171   :  { %10468 = vst [vmem:[#allocation8_spill] sm:$0xff] %v7887_v61  ;;  %v7895_v0 = vpop.f32.mrf.mxu1  ;;  %v7904_v50 = vadd.f32 %v1368_v43, %v7520_v30  ;;  %2784 = vmatprep.subr.mxu1 %v2565_v19  ;;  %v5104_v30 = vld [vmem:[%s10115_s3 + $0x108] sm:$0xff]  ;;  %2672 = vmatpush1.msra.mxu0 %v5105_v39  ;;  %v2562_v19 = vld [vmem:[%s10115_s3] sm:$0xff] }
 0x172   :  { %v1372_v26 = vpop.f32.mrf.mxu0  ;;  %v2563_v43 = vld [vmem:[%s10115_s3 + $0x8] sm:$0xff]  ;;  %2785 = vmatpush1.msra.mxu1 %v2564_v35  ;;  %2673 = vmatprep.subr.mxu0 %v5104_v30  ;;  %v852_v35 = vadd.f32 %v7556_v13, %v7348_v17  ;;  %v854_v17 = vadd.f32 %v7571_v34, %v7362_v21 }
 0x173   :  { %10469 = vst [vmem:[#allocation46_spill] sm:$0xff] %v7904_v50  ;;  %v7912_v27 = vpop.f32.mrf.mxu1  ;;  %v7923_v12 = vadd.f32 %v1372_v26, %v7528_v6  ;;  %2786 = vmatprep.subr.mxu1 %v2563_v43  ;;  %2674 = vmatpush1.msra.mxu0 %v5103_v57 }
 0x174   :  { %v1374_v42 = vpop.f32.mrf.mxu0  ;;  %2707 = vmatprep.mubr.f32.mxu0 %v10312_v55  ;;  %2787 = vmatpush1.msra.mxu1 %v2562_v19  ;;  %v1150_v19 = vadd.f32 %v7558_v53, %v852_v35  ;;  %v856_v53 = vadd.f32 %v7586_v23, %v7376_v25 }
 0x175   :  { %10470 = vst [vmem:[#allocation9_spill] sm:$0xff] %v7923_v12  ;;  %v7931_v60 = vpop.f32.mrf.mxu1  ;;  %v7934_v16 = vadd.f32 %v1374_v42, %v7534_v56  ;;  %2820 = vmatprep.mubr.f32.mxu1 %v10312_v55  ;;  %v1152_v12 = vadd.f32 %v7573_v36, %v854_v17  ;;  %v858_v36 = vadd.f32 %v7601_v29, %v7390_v7 }
 0x176   :  { %v1378_v6 = vpop.f32.mrf.mxu0  ;;  %v1154_v13 = vadd.f32 %v7588_v10, %v856_v53  ;;  %v860_v10 = vadd.f32 %v7616_v28, %v7400_v1 }
 0x177   :  { %10471 = vst [vmem:[#allocation10_spill] sm:$0xff] %v7934_v16  ;;  %v7937_v39 = vpop.f32.mrf.mxu1  ;;  %v7945_v30 = vadd.f32 %v1378_v6, %v7542_v47  ;;  %v1156_v21 = vadd.f32 %v7603_v9, %v858_v36  ;;  %v862_v9 = vadd.f32 %v7631_v49, %v7410_v48 }
 0x178   :  { %v1380_v56 = vpop.f32.mrf.mxu0  ;;  %v1158_v25 = vadd.f32 %v7618_v46, %v860_v10  ;;  %v864_v46 = vadd.f32 %v7646_v5, %v7420_v11 }
 0x179   :  { %10472 = vst [vmem:[#allocation50_spill] sm:$0xff] %v7945_v30  ;;  %v7947_v42 = vpop.f32.mrf.mxu1  ;;  %v7950_v43 = vadd.f32 %v1380_v56, %v7548_v45  ;;  %v1160_v7 = vadd.f32 %v7633_v3, %v862_v9  ;;  %v5198_v3 = vld [vmem:[%s10115_s3 + $0x3f8] sm:$0xff]  ;;  %v866_v9 = vadd.f32 %v7680_v31, %v7433_v20 }
 0x17a   :  { %v1384_v57 = vpop.f32.mrf.mxu0  ;;  %3096 = vmatprep.subr.mxu1 %v5198_v3 }
 0x17b   :  { %10473 = vst [vmem:[#allocation11_spill] sm:$0xff] %v7950_v43  ;;  %v7952_v50 = vpop.f32.mrf.mxu1  ;;  %v7960_v47 = vadd.f32 %v1384_v57, %v7560_v14 }
 0x17c   :  { %v1386_v6 = vpop.f32.mrf.mxu0 }
 0x17d   :  { %10474 = vst [vmem:[#allocation13_spill] sm:$0xff] %v7960_v47  ;;  %v7962_v26 = vpop.f32.mrf.mxu1  ;;  %v7964_v16 = vadd.f32 %v1386_v6, %v1150_v19 }
 0x17e   :  { %v1390_v45 = vpop.f32.mrf.mxu0 }
 0x17f   :  { %10475 = vst [vmem:[#allocation12_spill] sm:$0xff] %v7964_v16  ;;  %v7966_v56 = vpop.f32.mrf.mxu1  ;;  %v7974_v34 = vadd.f32 %v1390_v45, %v7575_v51 }
 0x180   :  { %10476 = vst [vmem:[#allocation14_spill] sm:$0xff] %v7966_v56  ;;  %v1392_v14 = vpop.f32.mrf.mxu0 }
 0x181   :  { %10477 = vst [vmem:[#allocation59_spill] sm:$0xff] %v7974_v34  ;;  %v7976_v35 = vpop.f32.mrf.mxu1  ;;  %v7978_v57 = vadd.f32 %v1392_v14, %v1152_v12 }
 0x182   :  { %10478 = vst [vmem:[#allocation16_spill] sm:$0xff] %v7976_v35  ;;  %v1396_v19 = vpop.f32.mrf.mxu0 }
 0x183   :  { %10479 = vst [vmem:[#allocation60_spill] sm:$0xff] %v7978_v57  ;;  %v7980_v6 = vpop.f32.mrf.mxu1  ;;  %v7988_v23 = vadd.f32 %v1396_v19, %v7590_v41 }
 0x184   :  { %10480 = vst [vmem:[#allocation15_spill] sm:$0xff] %v7980_v6  ;;  %v1398_v51 = vpop.f32.mrf.mxu0 }
 0x185   :  { %10481 = vst [vmem:[#allocation61_spill] sm:$0xff] %v7988_v23  ;;  %v7990_v17 = vpop.f32.mrf.mxu1  ;;  %v7992_v45 = vadd.f32 %v1398_v51, %v1154_v13 }
 0x186   :  { %10482 = vst [vmem:[#allocation18_spill] sm:$0xff] %v7990_v17  ;;  %v1402_v12 = vpop.f32.mrf.mxu0 }
 0x187   :  { %10483 = vst [vmem:[#allocation62_spill] sm:$0xff] %v7992_v45  ;;  %v7994_v14 = vpop.f32.mrf.mxu1  ;;  %v8002_v29 = vadd.f32 %v1402_v12, %v7605_v44 }
 0x188   :  { %10484 = vst [vmem:[#allocation19_spill] sm:$0xff] %v7994_v14  ;;  %v1404_v41 = vpop.f32.mrf.mxu0 }
 0x189   :  { %10485 = vst [vmem:[#allocation17_spill] sm:$0xff] %v8002_v29  ;;  %v8004_v53 = vpop.f32.mrf.mxu1  ;;  %v8006_v19 = vadd.f32 %v1404_v41, %v1156_v21 }
 0x18a   :  { %10486 = vst [vmem:[#allocation63_spill] sm:$0xff] %v8004_v53  ;;  %v1408_v13 = vpop.f32.mrf.mxu0 }
 0x18b   :  { %10487 = vst [vmem:[#allocation21_spill] sm:$0xff] %v8006_v19  ;;  %v8008_v51 = vpop.f32.mrf.mxu1  ;;  %v8016_v28 = vadd.f32 %v1408_v13, %v7620_v18 }
 0x18c   :  { %10488 = vst [vmem:[#allocation64_spill] sm:$0xff] %v8008_v51  ;;  %v1410_v44 = vpop.f32.mrf.mxu0 }
 0x18d   :  { %10489 = vst [vmem:[#allocation22_spill] sm:$0xff] %v8016_v28  ;;  %v8018_v36 = vpop.f32.mrf.mxu1  ;;  %v8020_v12 = vadd.f32 %v1410_v44, %v1158_v25  ;;  %v5166_v25 = vld [vmem:[%s10115_s3 + $0x2f8] sm:$0xff] }
 0x18e   :  { %10490 = vst [vmem:[#allocation20_spill] sm:$0xff] %v8018_v36  ;;  %v1414_v21 = vpop.f32.mrf.mxu0  ;;  %2918 = vmatprep.subr.mxu0 %v5166_v25  ;;  %v1164_v25 = vadd.f32 %v7682_v4, %v866_v9 }
 0x18f   :  { %10491 = vst [vmem:[#allocation65_spill] sm:$0xff] %v8020_v12  ;;  %v8022_v41 = vpop.f32.mrf.mxu1  ;;  %v8030_v49 = vadd.f32 %v1414_v21, %v7635_v22  ;;  %v1162_v22 = vadd.f32 %v7648_v32, %v864_v46 }
 0x190   :  { %10492 = vst [vmem:[#allocation24_spill] sm:$0xff] %v8022_v41  ;;  %v1416_v18 = vpop.f32.mrf.mxu0 }
 0x191   :  { %10493 = vst [vmem:[#allocation66_spill] sm:$0xff] %v8030_v49  ;;  %v8032_v10 = vpop.f32.mrf.mxu1  ;;  %v8034_v13 = vadd.f32 %v1416_v18, %v1160_v7 }
 0x192   :  { %10494 = vst [vmem:[#allocation25_spill] sm:$0xff] %v8032_v10  ;;  %v1420_v11 = vpop.f32.mrf.mxu0 }
 0x193   :  { %10495 = vst [vmem:[#allocation23_spill] sm:$0xff] %v8034_v13  ;;  %v8042_v5 = vpop.f32.mrf.mxu1  ;;  %v8050_v44 = vadd.f32 %v1420_v11, %v7659_v24 }
 0x194   :  { %10496 = vst [vmem:[#allocation67_spill] sm:$0xff] %v8042_v5  ;;  %v1422_v21 = vpop.f32.mrf.mxu0 }
 0x195   :  { %10497 = vst [vmem:[#allocation27_spill] sm:$0xff] %v8050_v44  ;;  %v8052_v18 = vpop.f32.mrf.mxu1  ;;  %v8054_v48 = vadd.f32 %v1422_v21, %v1162_v22 }
 0x196   :  { %10498 = vst [vmem:[#allocation68_spill] sm:$0xff] %v8052_v18  ;;  %v1426_v1 = vpop.f32.mrf.mxu0 }
 0x197   :  { %10499 = vst [vmem:[#allocation28_spill] sm:$0xff] %v8054_v48  ;;  %v8056_v12 = vpop.f32.mrf.mxu1  ;;  %v8062_v20 = vadd.f32 %v1426_v1, %v7690_v2 }
 0x198   :  { %10500 = vst [vmem:[#allocation26_spill] sm:$0xff] %v8056_v12  ;;  %v1428_v31 = vpop.f32.mrf.mxu0 }
 0x199   :  { %10501 = vst [vmem:[#allocation69_spill] sm:$0xff] %v8062_v20  ;;  %v8064_v46 = vpop.f32.mrf.mxu1  ;;  %v8066_v24 = vadd.f32 %v1428_v31, %v1164_v25 }
 0x19a   :  { %10502 = vst [vmem:[#allocation30_spill] sm:$0xff] %v8064_v46  ;;  %v1706_v3 = vpop.f32.mrf.mxu0 }
 0x19b   :  { %10503 = vst [vmem:[#allocation70_spill] sm:$0xff] %v8066_v24  ;;  %v8068_v11 = vpop.f32.mrf.mxu1 }
 0x19c   :  { %v1708_v21 = vpop.f32.mrf.mxu0 }
 0x19d   :  { %v8072_v7 = vpop.f32.mrf.mxu1 }
 0x19e   :  { %v8074_v4 = vpop.f32.mrf.mxu0 }
 0x19f   :  { %v8076_v9 = vpop.f32.mrf.mxu1 }
 0x1a0   :  { %v8078_v2 = vpop.f32.mrf.mxu0 }
 0x1a1   :  { %v8080_v1 = vpop.f32.mrf.mxu1 }
 0x1a2   :  { %v8082_v32 = vpop.f32.mrf.mxu0 }
 0x1a3   :  { %v8084_v25 = vpop.f32.mrf.mxu1 }
 0x1a4   :  { %v8086_v31 = vpop.f32.mrf.mxu0 }
 0x1a5   :  { %v8088_v48 = vpop.f32.mrf.mxu1 }
 0x1a6   :  { %v8090_v22 = vpop.f32.mrf.mxu0 }
 0x1a7   :  { %v8092_v24 = vpop.f32.mrf.mxu1 }
 0x1a8   :  { %v8094_v20 = vpop.f32.mrf.mxu0 }
 0x1a9   :  { %v8096_v44 = vpop.f32.mrf.mxu1 }
 0x1aa   :  { %v8098_v13 = vpop.f32.mrf.mxu0 }
 0x1ab   :  { %v8100_v49 = vpop.f32.mrf.mxu1 }
 0x1ac   :  { %v8102_v28 = vpop.f32.mrf.mxu0 }
 0x1ad   :  { %v8104_v46 = vpop.f32.mrf.mxu1 }
 0x1ae   :  { %v8106_v12 = vpop.f32.mrf.mxu0 }
 0x1af   :  { %v8108_v19 = vpop.f32.mrf.mxu1 }
 0x1b0   :  { %v8110_v29 = vpop.f32.mrf.mxu0 }
 0x1b1   :  { %v8112_v18 = vpop.f32.mrf.mxu1 }
 0x1b2   :  { %v8114_v5 = vpop.f32.mrf.mxu0 }
 0x1b3   :  { %v8116_v45 = vpop.f32.mrf.mxu1 }
 0x1b4   :  { %v8118_v23 = vpop.f32.mrf.mxu0 }
 0x1b5   :  { %v8120_v10 = vpop.f32.mrf.mxu1 }
 0x1b6   :  { %v8122_v41 = vpop.f32.mrf.mxu0 }
 0x1b7   :  { %v8124_v57 = vpop.f32.mrf.mxu1 }
 0x1b8   :  { %v8126_v34 = vpop.f32.mrf.mxu0 }
 0x1b9   :  { %v8128_v36 = vpop.f32.mrf.mxu1 }
 0x1ba   :  { %v8130_v51 = vpop.f32.mrf.mxu0 }
 0x1bb   :  { %v8132_v16 = vpop.f32.mrf.mxu1 }
 0x1bc   :  { %10504 = vst [vmem:[#allocation31_spill] sm:$0xff] %v8132_v16  ;;  %v8134_v47 = vpop.f32.mrf.mxu0 }
 0x1bd   :  { %v8136_v53 = vpop.f32.mrf.mxu1 }
 0x1be   :  { %10505 = vst [vmem:[#allocation29_spill] sm:$0xff] %v8136_v53  ;;  %v8138_v14 = vpop.f32.mrf.mxu0 }
 0x1bf   :  { %10506 = vst [vmem:[#allocation71_spill] sm:$0xff] %v8138_v14  ;;  %v8140_v43 = vpop.f32.mrf.mxu1 }
 0x1c0   :  { %10507 = vst [vmem:[#allocation33_spill] sm:$0xff] %v8140_v43  ;;  %v8142_v30 = vpop.f32.mrf.mxu0 }
 0x1c1   :  { %10508 = vst [vmem:[#allocation72_spill] sm:$0xff] %v8142_v30  ;;  %v8144_v17 = vpop.f32.mrf.mxu1 }
 0x1c2   :  { %10509 = vst [vmem:[#allocation35_spill] sm:$0xff] %v8144_v17  ;;  %v8146_v6 = vpop.f32.mrf.mxu0 }
 0x1c3   :  { %10510 = vst [vmem:[#allocation32_spill] sm:$0xff] %v8146_v6  ;;  %v8148_v35 = vpop.f32.mrf.mxu1 }
 0x1c4   :  { %10511 = vst [vmem:[#allocation73_spill] sm:$0xff] %v8148_v35  ;;  %v8150_v56 = vpop.f32.mrf.mxu0 }
 0x1c5   :  { %10512 = vst [vmem:[#allocation38_spill] sm:$0xff] %v8150_v56  ;;  %v8152_v61 = vpop.f32.mrf.mxu1 }
 0x1c6   :  { %10513 = vst [vmem:[#allocation74_spill] sm:$0xff] %v8152_v61  ;;  %v8154_v16 = vpop.f32.mrf.mxu0 }
 0x1c7   :  { %10514 = vst [vmem:[#allocation40_spill] sm:$0xff] %v8154_v16  ;;  %v8156_v55 = vpop.f32.mrf.mxu1 }
 0x1c8   :  { %10515 = vst [vmem:[#allocation37_spill] sm:$0xff] %v8156_v55  ;;  %v8158_v53 = vpop.f32.mrf.mxu0 }
 0x1c9   :  { %10516 = vst [vmem:[#allocation75_spill] sm:$0xff] %v8158_v53  ;;  %v8160_v14 = vpop.f32.mrf.mxu1 }
 0x1ca   :  { %10517 = vst [vmem:[#allocation43_spill] sm:$0xff] %v8160_v14  ;;  %v8162_v43 = vpop.f32.mrf.mxu0 }
 0x1cb   :  { %10518 = vst [vmem:[#allocation76_spill] sm:$0xff] %v8162_v43  ;;  %v8164_v30 = vpop.f32.mrf.mxu1 }
 0x1cc   :  { %10519 = vst [vmem:[#allocation45_spill] sm:$0xff] %v8164_v30  ;;  %v8166_v17 = vpop.f32.mrf.mxu0  ;;  %v1707_v30 = vadd.f32 %v1706_v3, %v7698_v33  ;;  %v1715_v33 = vadd.f32 %v8078_v2, %v7751_v63 }
 0x1cd   :  { %10520 = vst [vmem:[#allocation42_spill] sm:$0xff] %v8166_v17  ;;  %v8168_v6 = vpop.f32.mrf.mxu1 }
 0x1ce   :  { %10521 = vst [vmem:[#allocation77_spill] sm:$0xff] %v8168_v6  ;;  %v8170_v35 = vpop.f32.mrf.mxu0 }
 0x1cf   :  { %10522 = vst [vmem:[#allocation48_spill] sm:$0xff] %v8170_v35  ;;  %v8172_v56 = vpop.f32.mrf.mxu1 }
 0x1d0   :  { %10523 = vst [vmem:[#allocation78_spill] sm:$0xff] %v8172_v56  ;;  %v8174_v61 = vpop.f32.mrf.mxu0  ;;  %v1709_v56 = vadd.f32 %v1708_v21, %v7715_v58  ;;  %v1719_v21 = vadd.f32 %v8082_v32, %v7768_v38 }
 0x1d1   :  { %10524 = vst [vmem:[#allocation49_spill] sm:$0xff] %v8174_v61  ;;  %v8176_v16 = vpop.f32.mrf.mxu1 }
 0x1d2   :  { %10525 = vst [vmem:[#allocation47_spill] sm:$0xff] %v8176_v16  ;;  %v8178_v55 = vpop.f32.mrf.mxu0  ;;  %v1962_v16 = vadd.f32 %v8068_v11, %v1707_v30  ;;  %v1721_v30 = vadd.f32 %v8086_v31, %v7787_v40  ;;  %v1727_v40 = vadd.f32 %v8094_v20, %v7823_v62 }
 0x1d3   :  { %10526 = vst [vmem:[#allocation79_spill] sm:$0xff] %v8178_v55  ;;  %v8180_v53 = vpop.f32.mrf.mxu1 }
 0x1d4   :  { %10527 = vst [vmem:[#allocation52_spill] sm:$0xff] %v8180_v53  ;;  %v8182_v14 = vpop.f32.mrf.mxu0  ;;  %v1713_v53 = vadd.f32 %v8074_v4, %v7732_v15  ;;  %v1965_v4 = vadd.f32 %v8080_v1, %v1715_v33 }
 0x1d5   :  { %10528 = vst [vmem:[#allocation53_spill] sm:$0xff] %v8182_v14  ;;  %v8184_v43 = vpop.f32.mrf.mxu1 }
 0x1d6   :  { %10529 = vst [vmem:[#allocation80_spill] sm:$0xff] %v8184_v43  ;;  %v8187_v17 = vpop.f32.mrf.mxu0  ;;  %v1963_v43 = vadd.f32 %v8072_v7, %v1709_v56  ;;  %v1964_v58 = vadd.f32 %v8076_v9, %v1713_v53  ;;  %v1725_v53 = vadd.f32 %v8090_v22, %v7804_v59 }
 0x1d7   :  { %10530 = vst [vmem:[#allocation51_spill] sm:$0xff] %v8187_v17  ;;  %v8189_v6 = vpop.f32.mrf.mxu1 }
 0x1d8   :  { %10531 = vst [vmem:[#allocation55_spill] sm:$0xff] %v8189_v6  ;;  %v8192_v35 = vpop.f32.mrf.mxu0  ;;  %v1968_v62 = vadd.f32 %v8092_v24, %v1725_v53 }
 0x1d9   :  { %10532 = vst [vmem:[#allocation54_spill] sm:$0xff] %v8192_v35  ;;  %v8194_v61 = vpop.f32.mrf.mxu1 }
 0x1da   :  { %10533 = vst [vmem:[#allocation81_spill] sm:$0xff] %v8194_v61  ;;  %v2060_v14 = vpop.f32.mrf.mxu0 }
 0x1db   :  { %v2333_v55 = vpop.f32.mrf.mxu1  ;;  %v2155_v3 = vadd.f32 %v2060_v14, %v1962_v16  ;;  %v1966_v14 = vadd.f32 %v8084_v25, %v1719_v21 }
 0x1dc   :  { %v2062_v6 = vpop.f32.mrf.mxu0 }
 0x1dd   :  { %v2335_v17 = vpop.f32.mrf.mxu1  ;;  %v2156_v61 = vadd.f32 %v2062_v6, %v1963_v43  ;;  %v2428_v56 = vadd.f32 %v2333_v55, %v2155_v3  ;;  %v1967_v43 = vadd.f32 %v8088_v48, %v1721_v30  ;;  %v8217_v55 = vld [vmem:[%s10116_s2] ss:$0 sm:$0xff]  ;;  %v1731_v48 = vadd.f32 %v8098_v13, %v7840_v37 }
 0x1de   :  { %v2066_v15 = vpop.f32.mrf.mxu0 }
 0x1df   :  { %v2339_v11 = vpop.f32.mrf.mxu1  ;;  %v2429_v7 = vadd.f32 %v2335_v17, %v2156_v61  ;;  %v2157_v35 = vadd.f32 %v2066_v15, %v1964_v58  ;;  %v10534_v17 = vld [vmem:[#allocation34_spill] sm:$0xff]  ;;  %v1969_v58 = vadd.f32 %v8096_v44, %v1727_v40  ;;  %v1970_v24 = vadd.f32 %v8100_v49, %v1731_v48  ;;  %v10539_v49 = vld [vmem:[#allocation5_spill] sm:$0xff] }
 0x1e0   :  { %v2068_v63 = vpop.f32.mrf.mxu0  ;;  %v10535_v32 = vmax.f32 %v7707_v52, %v10534_v17  ;;  %v1733_v52 = vadd.f32 %v8102_v28, %v7859_v8  ;;  %v1737_v44 = vadd.f32 %v8106_v12, %v7876_v54  ;;  %v1743_v12 = vadd.f32 %v8114_v5, %v7912_v27  ;;  %v10543_v27 = vld [vmem:[#allocation41_spill] sm:$0xff] }
 0x1e1   :  { %v2341_v16 = vpop.f32.mrf.mxu1  ;;  %v2460_v9 = vmax.f32 %v2428_v56, %v2429_v7  ;;  %v2158_v38 = vadd.f32 %v2068_v63, %v1965_v4  ;;  %v2430_v1 = vadd.f32 %v2339_v11, %v2157_v35  ;;  %v10536_v11 = vld [vmem:[#allocation4_spill] sm:$0xff] }
 0x1e2   :  { %v2072_v61 = vpop.f32.mrf.mxu0  ;;  %v10537_v4 = vld [vmem:[#allocation36_spill] sm:$0xff]  ;;  %v1971_v53 = vadd.f32 %v8104_v46, %v1733_v52  ;;  %v1972_v46 = vadd.f32 %v8108_v19, %v1737_v44 }
 0x1e3   :  { %v2345_v6 = vpop.f32.mrf.mxu1  ;;  %v2476_v2 = vmax.f32 %v10535_v32, %v2460_v9  ;;  %v2431_v59 = vadd.f32 %v2341_v16, %v2158_v38  ;;  %v2159_v22 = vadd.f32 %v2072_v61, %v1966_v14  ;;  %v10538_v37 = vmax.f32 %v10536_v11, %v10537_v4 }
 0x1e4   :  { %v2074_v25 = vpop.f32.mrf.mxu0  ;;  %v1739_v9 = vadd.f32 %v8110_v29, %v7895_v0  ;;  %v1751_v4 = vadd.f32 %v8126_v34, %v7947_v42  ;;  %v8267_v42 = vld [vmem:[%s10115_s3 + $0x2f0] sm:$0xff] }
 0x1e5   :  { %v2347_v31 = vpop.f32.mrf.mxu1  ;;  %v2499_v20 = vadd.f32 %v8217_v55, %v2476_v2  ;;  %v2461_v33 = vmax.f32 %v2430_v1, %v2431_v59  ;;  %v2160_v3 = vadd.f32 %v2074_v25, %v1967_v43  ;;  %v2432_v21 = vadd.f32 %v2345_v6, %v2159_v22  ;;  %v10540_v6 = vld [vmem:[#allocation39_spill] sm:$0xff] }
 0x1e6   :  { %v2078_v35 = vpop.f32.mrf.mxu0  ;;  %v10541_v17 = vmax.f32 %v10539_v49, %v10540_v6  ;;  %v1973_v48 = vadd.f32 %v8112_v18, %v1739_v9  ;;  %v1745_v25 = vadd.f32 %v8118_v23, %v7931_v60  ;;  %v1749_v18 = vadd.f32 %v8122_v41, %v7937_v39 }
 0x1e7   :  { %v2351_v30 = vpop.f32.mrf.mxu1  ;;  %v2515_v15 = vmax.f32 %v2499_v20, 0.0  ;;  %v2477_v13 = vmax.f32 %v10538_v37, %v2461_v33  ;;  %v2433_v56 = vadd.f32 %v2347_v31, %v2160_v3  ;;  %v2161_v7 = vadd.f32 %v2078_v35, %v1968_v62  ;;  %v10542_v3 = vld [vmem:[#allocation6_spill] sm:$0xff] }
 0x1e8   :  { %v2080_v63 = vpop.f32.mrf.mxu0  ;;  %v10544_v5 = vmax.f32 %v10542_v3, %v10543_v27  ;;  %v1975_v11 = vadd.f32 %v8120_v10, %v1745_v25  ;;  %v1755_v41 = vadd.f32 %v8130_v51, %v7952_v50  ;;  %v1976_v34 = vadd.f32 %v8124_v57, %v1749_v18  ;;  %v5197_v50 = vld [vmem:[%s10115_s3 + $0x3f0] sm:$0xff]  ;;  %v8277_v51 = vld [vmem:[%s10115_s3 + $0x2e8] sm:$0xff]  ;;  %v5194_v25 = vld [vmem:[%s10115_s3 + $0x3d8] sm:$0xff] }
 0x1e9   :  { %v2353_v16 = vpop.f32.mrf.mxu1  ;;  %2531 = vst [vmem:[#allocation2] sm:$0xff] %v2515_v15  ;;  %v2500_v8 = vadd.f32 %v8217_v55, %v2477_v13  ;;  %v2462_v28 = vmax.f32 %v2432_v21, %v2433_v56  ;;  %v2162_v14 = vadd.f32 %v2080_v63, %v1969_v58  ;;  %v2434_v38 = vadd.f32 %v2351_v30, %v2161_v7 }
 0x1ea   :  { %v2084_v43 = vpop.f32.mrf.mxu0  ;;  %v1974_v21 = vadd.f32 %v8116_v45, %v1743_v12  ;;  %v10545_v45 = vld [vmem:[#allocation7_spill] sm:$0xff]  ;;  %v1757_v57 = vadd.f32 %v8134_v47, %v7962_v26  ;;  %v10548_v6 = vmov 0.0   ;;  %v8294_v26 = vld [vmem:[%s10115_s3 + $0x2e0] sm:$0xff] }
 0x1eb   :  { %v2357_v40 = vpop.f32.mrf.mxu1  ;;  %v2516_v61 = vmax.f32 %v2500_v8, 0.0  ;;  %v2478_v32 = vmax.f32 %v10541_v17, %v2462_v28  ;;  %v2435_v2 = vadd.f32 %v2353_v16, %v2162_v14  ;;  %v2163_v54 = vadd.f32 %v2084_v43, %v1970_v24  ;;  %v10546_v24 = vld [vmem:[#allocation44_spill] sm:$0xff]  ;;  %v5196_v17 = vld [vmem:[%s10115_s3 + $0x3e8] sm:$0xff] }
 0x1ec   :  { %v2086_v1 = vpop.f32.mrf.mxu0  ;;  %v10547_v63 = vmax.f32 %v10545_v45, %v10546_v24  ;;  %v1977_v43 = vadd.f32 %v8128_v36, %v1751_v4  ;;  %v5195_v47 = vld [vmem:[%s10115_s3 + $0x3e0] sm:$0xff]  ;;  %v10559_v4 = vld [vmem:[#allocation10_spill] sm:$0xff]  ;;  %v10561_v45 = vld [vmem:[#allocation15_spill] sm:$0xff] }
 0x1ed   :  { %v2359_v59 = vpop.f32.mrf.mxu1  ;;  %2532 = vst [vmem:[#allocation2 + $0x8] sm:$0xff] %v2516_v61  ;;  %v2501_v0 = vadd.f32 %v8217_v55, %v2478_v32  ;;  %v2463_v29 = vmax.f32 %v2434_v38, %v2435_v2  ;;  %v2164_v22 = vadd.f32 %v2086_v1, %v1971_v53  ;;  %v2436_v31 = vadd.f32 %v2357_v40, %v2163_v54  ;;  %v10549_v2 = vld [vmem:[#allocation8_spill] sm:$0xff]  ;;  %v10550_v54 = vld [vmem:[#allocation46_spill] sm:$0xff] }
 0x1ee   :  { %v2090_v62 = vpop.f32.mrf.mxu0  ;;  %v10551_v12 = vmax.f32 %v10549_v2, %v10550_v54  ;;  %v10562_v24 = vld [vmem:[#allocation32_spill] sm:$0xff] }
 0x1ef   :  { %v2363_v20 = vpop.f32.mrf.mxu1  ;;  %v2517_v33 = vmax.f32 %v2501_v0, 0.0  ;;  %v2479_v58 = vmax.f32 %v10544_v5, %v2463_v29  ;;  %v2437_v52 = vadd.f32 %v2359_v59, %v2164_v22  ;;  %v2165_v19 = vadd.f32 %v2090_v62, %v1972_v46  ;;  %v10552_v46 = vld [vmem:[#allocation31_spill] sm:$0xff]  ;;  %v8315_v5 = vld [vmem:[%s10115_s3 + $0x2d0] sm:$0xff]  ;;  %v5191_v2 = vld [vmem:[%s10115_s3 + $0x3c0] sm:$0xff] }
 0x1f0   :  { %v2092_v35 = vpop.f32.mrf.mxu0  ;;  %v1978_v0 = vadd.f32 %v10552_v46, %v1755_v41  ;;  %v10554_v62 = vld [vmem:[#allocation71_spill] sm:$0xff] }
 0x1f1   :  { %v2365_v30 = vpop.f32.mrf.mxu1  ;;  %2533 = vst [vmem:[#allocation2 + $0x10] sm:$0xff] %v2517_v33  ;;  %v2502_v60 = vadd.f32 %v8217_v55, %v2479_v58  ;;  %v2464_v23 = vmax.f32 %v2436_v31, %v2437_v52  ;;  %v2166_v15 = vadd.f32 %v2092_v35, %v1973_v48  ;;  %v2438_v37 = vadd.f32 %v2363_v20, %v2165_v19  ;;  %v8304_v48 = vld [vmem:[%s10115_s3 + $0x2d8] sm:$0xff]  ;;  %v10553_v31 = vld [vmem:[#allocation14_spill] sm:$0xff]  ;;  %v10555_v52 = vld [vmem:[#allocation29_spill] sm:$0xff] }
 0x1f2   :  { %v2096_v13 = vpop.f32.mrf.mxu0  ;;  %v1761_v20 = vadd.f32 %v10554_v62, %v10553_v31  ;;  %v5193_v58 = vld [vmem:[%s10115_s3 + $0x3d0] sm:$0xff]  ;;  %v1979_v19 = vadd.f32 %v10555_v52, %v1757_v57  ;;  %v10557_v35 = vld [vmem:[#allocation72_spill] sm:$0xff] }
 0x1f3   :  { %v2369_v56 = vpop.f32.mrf.mxu1  ;;  %v2518_v7 = vmax.f32 %v2502_v60, 0.0  ;;  %v2480_v16 = vmax.f32 %v10547_v63, %v2464_v23  ;;  %v2439_v44 = vadd.f32 %v2365_v30, %v2166_v15  ;;  %v2167_v39 = vadd.f32 %v2096_v13, %v1974_v21  ;;  %v10556_v21 = vld [vmem:[#allocation16_spill] sm:$0xff]  ;;  %v10565_v57 = vld [vmem:[#allocation18_spill] sm:$0xff] }
 0x1f4   :  { %v2098_v8 = vpop.f32.mrf.mxu0  ;;  %v2595_v14 = vld [vmem:[#allocation2 + $0x1] ss:$2 sm:$0xff]  ;;  %v2547_v10 = vld [vmem:[#allocation2] ss:$2 sm:$0xff]  ;;  %v1763_v30 = vadd.f32 %v10557_v35, %v10556_v21  ;;  %v1767_v63 = vadd.f32 %v10562_v24, %v10561_v45 }
 0x1f5   :  { %v2371_v28 = vpop.f32.mrf.mxu1  ;;  %2534 = vst [vmem:[#allocation2 + $0x18] sm:$0xff] %v2518_v7  ;;  %v2503_v53 = vadd.f32 %v8217_v55, %v2480_v16  ;;  %v2465_v9 = vmax.f32 %v2438_v37, %v2439_v44  ;;  %v2168_v38 = vadd.f32 %v2098_v8, %v1975_v11  ;;  %2708 = vmatmul.mubr.f32.vlgmr.msra.gmra.mxu0 %v2595_v14  ;;  %v10558_v11 = vld [vmem:[#allocation9_spill] sm:$0xff]  ;;  %v10577_v45 = vld [vmem:[#allocation12_spill] sm:$0xff] }
 0x1f6   :  { %v2440_v40 = vadd.f32 %v2369_v56, %v2167_v39  ;;  %2821 = vmatmul.mubr.f32.vlgmr.msra.gmra.mxu1 %v2547_v10  ;;  %v2102_v61 = vpop.f32.mrf.mxu0  ;;  %2713 = vmatprep.mubr.f32.mxu0 %v10548_v6  ;;  %v10560_v37 = vmax.f32 %v10558_v11, %v10559_v4  ;;  %v8334_v8 = vld [vmem:[%s10115_s3 + $0x2c8] sm:$0xff] }
 0x1f7   :  { %v2375_v49 = vpop.f32.mrf.mxu1  ;;  %v2519_v32 = vmax.f32 %v2503_v53, 0.0  ;;  %v2481_v1 = vmax.f32 %v10551_v12, %v2465_v9  ;;  %v2441_v59 = vadd.f32 %v2371_v28, %v2168_v38  ;;  %v2169_v36 = vadd.f32 %v2102_v61, %v1976_v34  ;;  %2826 = vmatprep.mubr.f32.mxu1 %v10548_v6  ;;  %2919 = vmatpush1.msra.mxu0 %v8267_v42  ;;  %v10563_v28 = vld [vmem:[#allocation33_spill] sm:$0xff]  ;;  %v8344_v38 = vld [vmem:[%s10115_s3 + $0x2c0] sm:$0xff]  ;;  %v10567_v12 = vld [vmem:[#allocation50_spill] sm:$0xff] }
 0x1f8   :  { %v2104_v29 = vpop.f32.mrf.mxu0  ;;  %3097 = vmatpush1.msra.mxu1 %v5197_v50  ;;  %2920 = vmatprep.subr.mxu0 %v8277_v51  ;;  %v1980_v14 = vadd.f32 %v10563_v28, %v1761_v20  ;;  %v5192_v9 = vld [vmem:[%s10115_s3 + $0x3c8] sm:$0xff]  ;;  %v10564_v50 = vld [vmem:[#allocation35_spill] sm:$0xff]  ;;  %v8371_v20 = vld [vmem:[%s10115_s3 + $0x2b0] sm:$0xff] }
 0x1f9   :  { %v2377_v22 = vpop.f32.mrf.mxu1  ;;  %2535 = vst [vmem:[#allocation2 + $0x20] sm:$0xff] %v2519_v32  ;;  %v2504_v33 = vadd.f32 %v8217_v55, %v2481_v1  ;;  %v2466_v3 = vmax.f32 %v2440_v40, %v2441_v59  ;;  %v2170_v27 = vadd.f32 %v2104_v29, %v1977_v43  ;;  %3098 = vmatprep.subr.mxu1 %v5196_v17  ;;  %v10566_v40 = vld [vmem:[#allocation38_spill] sm:$0xff]  ;;  %v10568_v1 = vld [vmem:[#allocation11_spill] sm:$0xff]  ;;  %v8382_v35 = vld [vmem:[%s10115_s3 + $0x2a8] sm:$0xff] }
 0x1fa   :  { %v2442_v18 = vadd.f32 %v2375_v49, %v2169_v36  ;;  %v2108_v60 = vpop.f32.mrf.mxu0  ;;  %2921 = vmatpush1.msra.mxu0 %v8294_v26  ;;  %3099 = vmatpush1.msra.mxu1 %v5195_v47  ;;  %v1981_v43 = vadd.f32 %v10564_v50, %v1763_v30  ;;  %v1769_v61 = vadd.f32 %v10566_v40, %v10565_v57  ;;  %v5190_v29 = vld [vmem:[%s10115_s3 + $0x3b8] sm:$0xff]  ;;  %v5188_v30 = vld [vmem:[%s10115_s3 + $0x3a8] sm:$0xff] }
 0x1fb   :  { %v2381_v23 = vpop.f32.mrf.mxu1  ;;  %v2520_v15 = vmax.f32 %v2504_v33, 0.0  ;;  %v2482_v13 = vmax.f32 %v10560_v37, %v2466_v3  ;;  %v2443_v56 = vadd.f32 %v2377_v22, %v2170_v27  ;;  %v2171_v7 = vadd.f32 %v2108_v60, %v1978_v0  ;;  %2922 = vmatprep.subr.mxu0 %v8304_v48  ;;  %3100 = vmatprep.subr.mxu1 %v5194_v25  ;;  %v8361_v0 = vld [vmem:[%s10115_s3 + $0x2b8] sm:$0xff]  ;;  %v10570_v22 = vld [vmem:[#allocation73_spill] sm:$0xff]  ;;  %v5189_v33 = vld [vmem:[%s10115_s3 + $0x3b0] sm:$0xff] }
 0x1fc   :  { %v2110_v16 = vpop.f32.mrf.mxu0  ;;  %v2597_v39 = vld [vmem:[#allocation2 + $0x11] ss:$2 sm:$0xff]  ;;  %v2549_v41 = vld [vmem:[#allocation2 + $0x10] ss:$2 sm:$0xff]  ;;  %2923 = vmatpush1.msra.mxu0 %v8315_v5  ;;  %3101 = vmatpush1.msra.mxu1 %v5193_v58  ;;  %v10569_v59 = vmax.f32 %v10567_v12, %v10568_v1  ;;  %v1982_v25 = vadd.f32 %v10570_v22, %v1767_v63  ;;  %v10572_v27 = vld [vmem:[#allocation40_spill] sm:$0xff] }
 0x1fd   :  { %v2383_v44 = vpop.f32.mrf.mxu1  ;;  %2536 = vst [vmem:[#allocation2 + $0x28] sm:$0xff] %v2520_v15  ;;  %v2505_v10 = vadd.f32 %v8217_v55, %v2482_v13  ;;  %v2467_v34 = vmax.f32 %v2442_v18, %v2443_v56  ;;  %v2172_v53 = vadd.f32 %v2110_v16, %v1979_v19  ;;  %2714 = vmatmul.mubr.f32.gmra.mxu0 %v2597_v39  ;;  %v10571_v3 = vld [vmem:[#allocation19_spill] sm:$0xff]  ;;  %v10573_v18 = vld [vmem:[#allocation74_spill] sm:$0xff]  ;;  %v10579_v39 = vld [vmem:[#allocation64_spill] sm:$0xff] }
 0x1fe   :  { %v2444_v49 = vadd.f32 %v2381_v23, %v2171_v7  ;;  %2827 = vmatmul.mubr.f32.gmra.mxu1 %v2549_v41  ;;  %v2114_v17 = vpop.f32.mrf.mxu0  ;;  %2719 = vmatprep.mubr.f32.mxu0 %v10548_v6  ;;  %v1773_v58 = vadd.f32 %v10572_v27, %v10571_v3  ;;  %v1983_v60 = vadd.f32 %v10573_v18, %v1769_v61  ;;  %v10574_v23 = vld [vmem:[#allocation63_spill] sm:$0xff]  ;;  %v10576_v7 = vld [vmem:[#allocation13_spill] sm:$0xff]  ;;  %v10580_v41 = vld [vmem:[#allocation76_spill] sm:$0xff] }
 0x1ff   :  { %v2387_v32 = vpop.f32.mrf.mxu1  ;;  %v2521_v54 = vmax.f32 %v2505_v10, 0.0  ;;  %v2483_v36 = vmax.f32 %v10569_v59, %v2467_v34  ;;  %v2445_v47 = vadd.f32 %v2383_v44, %v2172_v53  ;;  %v2173_v46 = vadd.f32 %v2114_v17, %v1980_v14  ;;  %2832 = vmatprep.mubr.f32.mxu1 %v10548_v6  ;;  %2924 = vmatprep.subr.mxu0 %v8334_v8  ;;  %v10575_v15 = vld [vmem:[#allocation75_spill] sm:$0xff]  ;;  %v10581_v50 = vld [vmem:[#allocation37_spill] sm:$0xff]  ;;  %v10584_v12 = vld [vmem:[#allocation42_spill] sm:$0xff] }
 0x200   :  { %v2116_v31 = vpop.f32.mrf.mxu0  ;;  %3102 = vmatprep.subr.mxu1 %v5192_v9  ;;  %2925 = vmatpush1.msra.mxu0 %v8344_v38  ;;  %v1775_v11 = vadd.f32 %v10575_v15, %v10574_v23  ;;  %v10578_v24 = vmax.f32 %v10576_v7, %v10577_v45  ;;  %v1779_v28 = vadd.f32 %v10580_v41, %v10579_v39  ;;  %v8403_v9 = vld [vmem:[%s10115_s3 + $0x2a0] sm:$0xff]  ;;  %v8416_v17 = vld [vmem:[%s10115_s3 + $0x298] sm:$0xff]  ;;  %v8435_v27 = vld [vmem:[%s10115_s3 + $0x290] sm:$0xff] }
 0x201   :  { %v2389_v62 = vpop.f32.mrf.mxu1  ;;  %2537 = vst [vmem:[#allocation2 + $0x30] sm:$0xff] %v2521_v54  ;;  %v2506_v52 = vadd.f32 %v8217_v55, %v2483_v36  ;;  %v2468_v19 = vmax.f32 %v2444_v49, %v2445_v47  ;;  %v2174_v21 = vadd.f32 %v2116_v31, %v1981_v43  ;;  %3103 = vmatpush1.msra.mxu1 %v5191_v2  ;;  %v8411_v49 = vld [vmem:[%s10115_s3 + $0x3a0] sm:$0xff]  ;;  %v10586_v22 = vld [vmem:[#allocation59_spill] sm:$0xff]  ;;  %v8448_v18 = vld [vmem:[%s10115_s3 + $0x288] sm:$0xff] }
 0x202   :  { %v2446_v4 = vadd.f32 %v2387_v32, %v2173_v46  ;;  %v2120_v37 = vpop.f32.mrf.mxu0  ;;  %2926 = vmatprep.subr.mxu0 %v8361_v0  ;;  %3104 = vmatprep.subr.mxu1 %v5190_v29  ;;  %v1984_v43 = vadd.f32 %v10581_v50, %v1773_v58  ;;  %v10582_v32 = vld [vmem:[#allocation43_spill] sm:$0xff]  ;;  %v10583_v54 = vld [vmem:[#allocation20_spill] sm:$0xff]  ;;  %v8440_v58 = vld [vmem:[%s10115_s3 + $0x390] sm:$0xff] }
 0x203   :  { %v2393_v13 = vpop.f32.mrf.mxu1  ;;  %v2522_v56 = vmax.f32 %v2506_v52, 0.0  ;;  %v2484_v63 = vmax.f32 %v10578_v24, %v2468_v19  ;;  %v2447_v16 = vadd.f32 %v2389_v62, %v2174_v21  ;;  %v2175_v44 = vadd.f32 %v2120_v37, %v1982_v25  ;;  %2927 = vmatpush1.msra.mxu0 %v8371_v20  ;;  %3105 = vmatpush1.msra.mxu1 %v5189_v33  ;;  %v8425_v46 = vld [vmem:[%s10115_s3 + $0x398] sm:$0xff]  ;;  %v10587_v25 = vld [vmem:[#allocation60_spill] sm:$0xff]  ;;  %v10590_v52 = vld [vmem:[#allocation45_spill] sm:$0xff] }
 0x204   :  { %v2122_v14 = vpop.f32.mrf.mxu0  ;;  %v8397_v34 = vld [vmem:[#allocation2 + $0x21] ss:$2 sm:$0xff]  ;;  %v2551_v53 = vld [vmem:[#allocation2 + $0x20] ss:$2 sm:$0xff]  ;;  %2928 = vmatprep.subr.mxu0 %v8382_v35  ;;  %3106 = vmatprep.subr.mxu1 %v5188_v30  ;;  %v1985_v2 = vadd.f32 %v10582_v32, %v1775_v11  ;;  %v1781_v1 = vadd.f32 %v10584_v12, %v10583_v54  ;;  %10585 = vst [vmem:[#allocation56_spill] sm:$0xff] %v8425_v46  ;;  %10589 = vst [vmem:[#allocation82_spill] sm:$0xff] %v8440_v58 }
 0x205   :  { %v2395_v10 = vpop.f32.mrf.mxu1  ;;  %2538 = vst [vmem:[#allocation2 + $0x38] sm:$0xff] %v2522_v56  ;;  %v2507_v57 = vadd.f32 %v8217_v55, %v2484_v63  ;;  %v2469_v40 = vmax.f32 %v2446_v4, %v2447_v16  ;;  %v2176_v61 = vadd.f32 %v2122_v14, %v1983_v60  ;;  %2720 = vmatmul.mubr.f32.gmra.mxu0 %v8397_v34  ;;  %v8453_v60 = vld [vmem:[%s10115_s3 + $0x388] sm:$0xff]  ;;  %v10592_v23 = vld [vmem:[#allocation24_spill] sm:$0xff]  ;;  %v10602_v32 = vld [vmem:[#allocation79_spill] sm:$0xff] }
 0x206   :  { %v2448_v59 = vadd.f32 %v2393_v13, %v2175_v44  ;;  %2833 = vmatmul.mubr.f32.gmra.mxu1 %v2551_v53  ;;  %v2126_v36 = vpop.f32.mrf.mxu0  ;;  %2725 = vmatprep.mubr.f32.mxu0 %v10548_v6  ;;  %v10588_v31 = vmax.f32 %v10586_v22, %v10587_v25  ;;  %v1986_v19 = vadd.f32 %v10590_v52, %v1779_v28  ;;  %v10593_v15 = vld [vmem:[#allocation48_spill] sm:$0xff]  ;;  %v10595_v45 = vld [vmem:[#allocation77_spill] sm:$0xff]  ;;  %v10599_v53 = vld [vmem:[#allocation62_spill] sm:$0xff] }
 0x207   :  { %v2399_v47 = vpop.f32.mrf.mxu1  ;;  %v2523_v29 = vmax.f32 %v2507_v57, 0.0  ;;  %v2449_v33 = vadd.f32 %v2395_v10, %v2176_v61  ;;  %v2177_v3 = vadd.f32 %v2126_v36, %v1984_v43  ;;  %2838 = vmatprep.mubr.f32.mxu1 %v10548_v6  ;;  %2929 = vmatpush1.msra.mxu0 %v8403_v9  ;;  %10591 = vst [vmem:[#allocation57_spill] sm:$0xff] %v8453_v60  ;;  %v8462_v56 = vld [vmem:[%s10115_s3 + $0x280] sm:$0xff]  ;;  %v10596_v63 = vld [vmem:[#allocation25_spill] sm:$0xff]  ;;  %v10601_v61 = vld [vmem:[#allocation67_spill] sm:$0xff] }
 0x208   :  { %v2485_v62 = vmax.f32 %v10588_v31, %v2469_v40  ;;  %v2128_v21 = vpop.f32.mrf.mxu0  ;;  %3107 = vmatpush1.msra.mxu1 %v8411_v49  ;;  %2930 = vmatprep.subr.mxu0 %v8416_v17  ;;  %v1785_v11 = vadd.f32 %v10593_v15, %v10592_v23  ;;  %v8467_v7 = vld [vmem:[%s10115_s3 + $0x380] sm:$0xff]  ;;  %v1987_v24 = vadd.f32 %v10595_v45, %v1781_v1  ;;  %v10597_v16 = vld [vmem:[#allocation49_spill] sm:$0xff]  ;;  %v8488_v36 = vld [vmem:[%s10115_s3 + $0x278] sm:$0xff] }
 0x209   :  { %v2401_v30 = vpop.f32.mrf.mxu1  ;;  %2539 = vst [vmem:[#allocation2 + $0x40] sm:$0xff] %v2523_v29  ;;  %v2470_v37 = vmax.f32 %v2448_v59, %v2449_v33  ;;  %v2178_v13 = vadd.f32 %v2128_v21, %v1985_v2  ;;  %3108 = vmatprep.subr.mxu1 %v8425_v46  ;;  %10594 = vst [vmem:[#allocation83_spill] sm:$0xff] %v8467_v7  ;;  %v1787_v44 = vadd.f32 %v10597_v16, %v10596_v63  ;;  %v10598_v10 = vld [vmem:[#allocation61_spill] sm:$0xff]  ;;  %v8501_v33 = vld [vmem:[%s10115_s3 + $0x270] sm:$0xff] }
 0x20a   :  { %v2508_v4 = vadd.f32 %v8217_v55, %v2485_v62  ;;  %v2450_v39 = vadd.f32 %v2399_v47, %v2177_v3  ;;  %v2132_v41 = vpop.f32.mrf.mxu0  ;;  %2931 = vmatpush1.msra.mxu0 %v8435_v27  ;;  %3109 = vmatpush1.msra.mxu1 %v8440_v58  ;;  %v10600_v50 = vmax.f32 %v10598_v10, %v10599_v53  ;;  %v10603_v47 = vld [vmem:[#allocation78_spill] sm:$0xff]  ;;  %v8496_v62 = vld [vmem:[%s10115_s3 + $0x378] sm:$0xff]  ;;  %v10607_v21 = vld [vmem:[#allocation53_spill] sm:$0xff] }
 0x20b   :  { %v2405_v28 = vpop.f32.mrf.mxu1  ;;  %v2451_v57 = vadd.f32 %v2401_v30, %v2178_v13  ;;  %v2179_v40 = vadd.f32 %v2132_v41, %v1986_v19  ;;  %2932 = vmatprep.subr.mxu0 %v8448_v18  ;;  %3110 = vmatprep.subr.mxu1 %v8453_v60  ;;  %v1791_v2 = vadd.f32 %v10602_v32, %v10601_v61  ;;  %v10605_v3 = vld [vmem:[#allocation47_spill] sm:$0xff]  ;;  %v10606_v19 = vld [vmem:[#allocation68_spill] sm:$0xff]  ;;  %v10609_v13 = vld [vmem:[#allocation17_spill] sm:$0xff] }
 0x20c   :  { %v2524_v14 = vmax.f32 %v2508_v4, 0.0  ;;  %v2486_v43 = vmax.f32 %v10600_v50, %v2470_v37  ;;  %v2134_v54 = vpop.f32.mrf.mxu0  ;;  %v8481_v1 = vld [vmem:[#allocation2 + $0x31] ss:$2 sm:$0xff]  ;;  %v2553_v59 = vld [vmem:[#allocation2 + $0x30] ss:$2 sm:$0xff]  ;;  %2933 = vmatpush1.msra.mxu0 %v8462_v56  ;;  %3111 = vmatpush1.msra.mxu1 %v8467_v7  ;;  %v1988_v29 = vadd.f32 %v10603_v47, %v1785_v11  ;;  %10604 = vst [vmem:[#allocation58_spill] sm:$0xff] %v8496_v62 }
 0x20d   :  { %v2407_v12 = vpop.f32.mrf.mxu1  ;;  %v2471_v25 = vmax.f32 %v2450_v39, %v2451_v57  ;;  %v2180_v31 = vadd.f32 %v2134_v54, %v1987_v24  ;;  %2726 = vmatmul.mubr.f32.gmra.mxu0 %v8481_v1  ;;  %v1989_v52 = vadd.f32 %v10605_v3, %v1787_v44  ;;  %v1793_v30 = vadd.f32 %v10607_v21, %v10606_v19  ;;  %v8510_v4 = vld [vmem:[%s10115_s3 + $0x370] sm:$0xff]  ;;  %v10610_v45 = vld [vmem:[#allocation21_spill] sm:$0xff]  ;;  %v8533_v50 = vld [vmem:[%s10115_s3 + $0x260] sm:$0xff] }
 0x20e   :  { %2540 = vst [vmem:[#allocation2 + $0x48] sm:$0xff] %v2524_v14  ;;  %v2509_v22 = vadd.f32 %v8217_v55, %v2486_v43  ;;  %v2452_v23 = vadd.f32 %v2405_v28, %v2179_v40  ;;  %2839 = vmatmul.mubr.f32.gmra.mxu1 %v2553_v59  ;;  %v2138_v15 = vpop.f32.mrf.mxu0  ;;  %2731 = vmatprep.mubr.f32.mxu0 %v10548_v6  ;;  %10608 = vst [vmem:[#allocation84_spill] sm:$0xff] %v8510_v4  ;;  %v8520_v39 = vld [vmem:[%s10115_s3 + $0x268] sm:$0xff]  ;;  %v10613_v28 = vld [vmem:[#allocation52_spill] sm:$0xff] }
 0x20f   :  { %v2411_v11 = vpop.f32.mrf.mxu1  ;;  %v10611_v24 = vmax.f32 %v10609_v13, %v10610_v45  ;;  %v2453_v16 = vadd.f32 %v2407_v12, %v2180_v31  ;;  %v2181_v44 = vadd.f32 %v2138_v15, %v1988_v29  ;;  %2844 = vmatprep.mubr.f32.mxu1 %v10548_v6  ;;  %2934 = vmatprep.subr.mxu0 %v8488_v36  ;;  %v8525_v41 = vld [vmem:[%s10115_s3 + $0x368] sm:$0xff]  ;;  %v8538_v43 = vld [vmem:[%s10115_s3 + $0x360] sm:$0xff]  ;;  %v10615_v57 = vld [vmem:[#allocation26_spill] sm:$0xff] }
 0x210   :  { %v2525_v37 = vmax.f32 %v2509_v22, 0.0  ;;  %10612 = vst [vmem:[#allocation34_spill] sm:$0xff] %v8525_v41  ;;  %v1990_v14 = vadd.f32 %v10613_v28, %v1791_v2  ;;  %v2140_v10 = vpop.f32.mrf.mxu0  ;;  %3112 = vmatprep.subr.mxu1 %v8496_v62  ;;  %2935 = vmatpush1.msra.mxu0 %v8501_v33  ;;  %10614 = vst [vmem:[#allocation4_spill] sm:$0xff] %v8538_v43  ;;  %v10616_v40 = vld [vmem:[#allocation51_spill] sm:$0xff]  ;;  %v10618_v47 = vld [vmem:[#allocation80_spill] sm:$0xff] }
 0x211   :  { %v2487_v63 = vmax.f32 %v10611_v24, %v2471_v25  ;;  %v2413_v53 = vpop.f32.mrf.mxu1  ;;  %v1797_v61 = vadd.f32 %v10616_v40, %v10615_v57  ;;  %v2472_v2 = vmax.f32 %v2452_v23, %v2453_v16  ;;  %v2182_v54 = vadd.f32 %v2140_v10, %v1989_v52  ;;  %3113 = vmatpush1.msra.mxu1 %v8510_v4  ;;  %v8547_v12 = vld [vmem:[%s10115_s3 + $0x258] sm:$0xff]  ;;  %v10619_v22 = vld [vmem:[#allocation30_spill] sm:$0xff]  ;;  %v10622_v15 = vld [vmem:[#allocation65_spill] sm:$0xff] }
 0x212   :  { %2541 = vst [vmem:[#allocation2 + $0x50] sm:$0xff] %v2525_v37  ;;  %v8552_v59 = vld [vmem:[%s10115_s3 + $0x358] sm:$0xff]  ;;  %v1991_v29 = vadd.f32 %v10618_v47, %v1793_v30  ;;  %v10620_v25 = vld [vmem:[#allocation54_spill] sm:$0xff]  ;;  %v2454_v3 = vadd.f32 %v2411_v11, %v2181_v44  ;;  %v2144_v19 = vpop.f32.mrf.mxu0  ;;  %2936 = vmatprep.subr.mxu0 %v8520_v39  ;;  %3114 = vmatprep.subr.mxu1 %v8525_v41  ;;  %v8884_v62 = vld [vmem:[%s10115_s3 + $0x488] sm:$0xff] }
 0x213   :  { %v2510_v32 = vadd.f32 %v8217_v55, %v2487_v63  ;;  %10617 = vst [vmem:[#allocation36_spill] sm:$0xff] %v8552_v59  ;;  %v1799_v31 = vadd.f32 %v10620_v25, %v10619_v22  ;;  %v2417_v52 = vpop.f32.mrf.mxu1  ;;  %v10621_v23 = vld [vmem:[#allocation22_spill] sm:$0xff]  ;;  %v2455_v45 = vadd.f32 %v2413_v53, %v2182_v54  ;;  %v2183_v24 = vadd.f32 %v2144_v19, %v1990_v14  ;;  %v10625_v28 = vld [vmem:[#allocation55_spill] sm:$0xff]  ;;  %v8897_v7 = vld [vmem:[%s10115_s3 + $0x480] sm:$0xff] }
 0x214   :  { %v10623_v37 = vmax.f32 %v10621_v23, %v10622_v15  ;;  %2937 = vmatpush1.msra.mxu0 %v8533_v50  ;;  %3115 = vmatpush1.msra.mxu1 %v8538_v43  ;;  %v2146_v30 = vpop.f32.mrf.mxu0  ;;  %v8571_v44 = vld [vmem:[%s10115_s3 + $0x250] sm:$0xff]  ;;  %v1992_v14 = vadd.f32 %v10625_v28, %v1797_v61  ;;  %v10630_v19 = vld [vmem:[#allocation23_spill] sm:$0xff]  ;;  %v5660_v43 = vld [vmem:[%s10115_s3 + $0x1a8] sm:$0xff]  ;;  %10653 = vst [vmem:[#allocation33_spill] sm:$0xff] %v8884_v62 }
 0x215   :  { %v2526_v21 = vmax.f32 %v2510_v32, 0.0  ;;  %v2419_v63 = vpop.f32.mrf.mxu1  ;;  %v8564_v11 = vld [vmem:[#allocation2 + $0x41] ss:$2 sm:$0xff]  ;;  %v2555_v16 = vld [vmem:[#allocation2 + $0x40] ss:$2 sm:$0xff]  ;;  %2938 = vmatprep.subr.mxu0 %v8547_v12  ;;  %3116 = vmatprep.subr.mxu1 %v8552_v59  ;;  %v2473_v53 = vmax.f32 %v2454_v3, %v2455_v45  ;;  %v2184_v57 = vadd.f32 %v2146_v30, %v1991_v29  ;;  %v8579_v40 = vld [vmem:[%s10115_s3 + $0x350] sm:$0xff]  ;;  %v2456_v61 = vadd.f32 %v2417_v52, %v2183_v24 }
 0x216   :  { %v2488_v13 = vmax.f32 %v10623_v37, %v2472_v2  ;;  %10624 = vst [vmem:[#allocation5_spill] sm:$0xff] %v8564_v11  ;;  %2732 = vmatmul.mubr.f32.gmra.mxu0 %v8564_v11  ;;  %10626 = vst [vmem:[#allocation39_spill] sm:$0xff] %v8579_v40  ;;  %v8584_v32 = vld [vmem:[%s10115_s3 + $0x248] sm:$0xff]  ;;  %2845 = vmatmul.mubr.f32.gmra.mxu1 %v2555_v16  ;;  %v2150_v47 = vpop.f32.mrf.mxu0  ;;  %v10629_v3 = vld [vmem:[#allocation66_spill] sm:$0xff] }
 0x217   :  { %2542 = vst [vmem:[#allocation2 + $0x58] sm:$0xff] %v2526_v21  ;;  %v10627_v2 = vld [vmem:[#allocation81_spill] sm:$0xff]  ;;  %v2423_v22 = vpop.f32.mrf.mxu1  ;;  %2737 = vmatprep.mubr.f32.mxu0 %v10548_v6  ;;  %v10631_v21 = vmax.f32 %v10629_v3, %v10630_v19  ;;  %v2457_v15 = vadd.f32 %v2419_v63, %v2184_v57  ;;  %v2185_v37 = vadd.f32 %v2150_v47, %v1992_v14  ;;  %v8606_v52 = vld [vmem:[%s10115_s3 + $0x340] sm:$0xff]  ;;  %v8613_v45 = vld [vmem:[%s10115_s3 + $0x238] sm:$0xff] }
 0x218   :  { %v2511_v10 = vadd.f32 %v8217_v55, %v2488_v13  ;;  %v1993_v54 = vadd.f32 %v10627_v2, %v1799_v31  ;;  %v8591_v29 = vld [vmem:[%s10115_s3 + $0x348] sm:$0xff]  ;;  %2850 = vmatprep.mubr.f32.mxu1 %v10548_v6  ;;  %2939 = vmatpush1.msra.mxu0 %v8571_v44  ;;  %v8601_v31 = vld [vmem:[%s10115_s3 + $0x240] sm:$0xff]  ;;  %10632 = vst [vmem:[#allocation41_spill] sm:$0xff] %v8606_v52  ;;  %v2152_v13 = vpop.f32.mrf.mxu0  ;;  %v8618_v24 = vld [vmem:[%s10115_s3 + $0x338] sm:$0xff] }
 0x219   :  { %10628 = vst [vmem:[#allocation6_spill] sm:$0xff] %v8591_v29  ;;  %v2489_v23 = vmax.f32 %v10631_v21, %v2473_v53  ;;  %3117 = vmatpush1.msra.mxu1 %v8579_v40  ;;  %2940 = vmatprep.subr.mxu0 %v8584_v32  ;;  %10633 = vst [vmem:[#allocation7_spill] sm:$0xff] %v8618_v24  ;;  %v2474_v63 = vmax.f32 %v2456_v61, %v2457_v15  ;;  %v8625_v28 = vld [vmem:[%s10115_s3 + $0x230] sm:$0xff]  ;;  %v10635_v57 = vld [vmem:[#allocation27_spill] sm:$0xff] }
 0x21a   :  { %v2527_v25 = vmax.f32 %v2511_v10, 0.0  ;;  %v2186_v16 = vadd.f32 %v2152_v13, %v1993_v54  ;;  %3118 = vmatprep.subr.mxu1 %v8591_v29  ;;  %v8630_v14 = vld [vmem:[%s10115_s3 + $0x330] sm:$0xff]  ;;  %v2425_v10 = vpop.f32.mrf.mxu1  ;;  %2941 = vmatpush1.msra.mxu0 %v8601_v31  ;;  %v10636_v2 = vld [vmem:[#allocation28_spill] sm:$0xff]  ;;  %v2458_v47 = vadd.f32 %v2423_v22, %v2185_v37  ;;  %v8642_v3 = vld [vmem:[%s10115_s3 + $0x228] sm:$0xff]  ;;  %10654 = vst [vmem:[#allocation35_spill] sm:$0xff] %v8897_v7 }
 0x21b   :  { %v2512_v30 = vadd.f32 %v8217_v55, %v2489_v23  ;;  %10634 = vst [vmem:[#allocation44_spill] sm:$0xff] %v8630_v14  ;;  %3119 = vmatpush1.msra.mxu1 %v8606_v52  ;;  %v10637_v54 = vmax.f32 %v10635_v57, %v10636_v2  ;;  %2942 = vmatprep.subr.mxu0 %v8613_v45  ;;  %v8651_v22 = vld [vmem:[%s10115_s3 + $0x328] sm:$0xff]  ;;  %v8658_v37 = vld [vmem:[%s10115_s3 + $0x220] sm:$0xff]  ;;  %v5659_v59 = vld [vmem:[%s10115_s3 + $0x1b0] sm:$0xff] }
 0x21c   :  { %2543 = vst [vmem:[#allocation2 + $0x60] sm:$0xff] %v2527_v25  ;;  %v2459_v25 = vadd.f32 %v2425_v10, %v2186_v16  ;;  %3120 = vmatprep.subr.mxu1 %v8618_v24  ;;  %2943 = vmatpush1.msra.mxu0 %v8625_v28  ;;  %10639 = vst [vmem:[#allocation46_spill] sm:$0xff] %v8651_v22  ;;  %v8663_v13 = vld [vmem:[%s10115_s3 + $0x320] sm:$0xff]  ;;  %v10642_v10 = vld [vmem:[#allocation69_spill] sm:$0xff] }
 0x21d   :  { %v2528_v53 = vmax.f32 %v2512_v30, 0.0  ;;  %v2490_v61 = vmax.f32 %v10637_v54, %v2474_v63  ;;  %3121 = vmatpush1.msra.mxu1 %v8630_v14  ;;  %10640 = vst [vmem:[#allocation31_spill] sm:$0xff] %v8663_v13  ;;  %v8670_v30 = vld [vmem:[%s10115_s3 + $0x218] sm:$0xff]  ;;  %2944 = vmatprep.subr.mxu0 %v8642_v3  ;;  %v8685_v54 = vld [vmem:[%s10115_s3 + $0x210] sm:$0xff]  ;;  %v8809_v24 = vld [vmem:[%s10115_s3 + $0x4c0] sm:$0xff] }
 0x21e   :  { %v8644_v19 = vld [vmem:[#allocation2 + $0x51] ss:$2 sm:$0xff]  ;;  %v2557_v21 = vld [vmem:[#allocation2 + $0x50] ss:$2 sm:$0xff]  ;;  %v2475_v15 = vmax.f32 %v2458_v47, %v2459_v25  ;;  %3122 = vmatprep.subr.mxu1 %v8651_v22  ;;  %2945 = vmatpush1.msra.mxu0 %v8658_v37  ;;  %v8697_v47 = vld [vmem:[%s10115_s3 + $0x208] sm:$0xff] }
 0x21f   :  { %10638 = vst [vmem:[#allocation8_spill] sm:$0xff] %v8644_v19  ;;  %2544 = vst [vmem:[#allocation2 + $0x68] sm:$0xff] %v2528_v53  ;;  %v2513_v23 = vadd.f32 %v8217_v55, %v2490_v61  ;;  %2738 = vmatmul.mubr.f32.gmra.mxu0 %v8644_v19  ;;  %2851 = vmatmul.mubr.f32.gmra.mxu1 %v2557_v21  ;;  %v8675_v63 = vld [vmem:[%s10115_s3 + $0x318] sm:$0xff]  ;;  %v10643_v53 = vld [vmem:[#allocation70_spill] sm:$0xff] }
 0x220   :  { %2743 = vmatprep.mubr.f32.mxu0 %v10548_v6  ;;  %2856 = vmatprep.mubr.f32.mxu1 %v10548_v6  ;;  %10641 = vst [vmem:[#allocation14_spill] sm:$0xff] %v8675_v63  ;;  %v10644_v57 = vmax.f32 %v10642_v10, %v10643_v53  ;;  %v8690_v61 = vld [vmem:[%s10115_s3 + $0x310] sm:$0xff]  ;;  %v8702_v25 = vld [vmem:[%s10115_s3 + $0x308] sm:$0xff]  ;;  %v8728_v53 = vld [vmem:[%s10115_s3 + $0x4f8] sm:$0xff] }
 0x221   :  { %v2529_v16 = vmax.f32 %v2513_v23, 0.0  ;;  %10645 = vst [vmem:[#allocation71_spill] sm:$0xff] %v8690_v61  ;;  %3123 = vmatpush1.msra.mxu1 %v8663_v13  ;;  %10646 = vst [vmem:[#allocation29_spill] sm:$0xff] %v8702_v25  ;;  %2946 = vmatprep.subr.mxu0 %v8670_v30  ;;  %v8710_v23 = vld [vmem:[%s10115_s3 + $0x200] sm:$0xff]  ;;  %v8796_v22 = vld [vmem:[%s10115_s3 + $0x4c8] sm:$0xff] }
 0x222   :  { %v2491_v2 = vmax.f32 %v10644_v57, %v2475_v15  ;;  %3124 = vmatprep.subr.mxu1 %v8675_v63  ;;  %v8715_v15 = vld [vmem:[%s10115_s3 + $0x300] sm:$0xff]  ;;  %2947 = vmatpush1.msra.mxu0 %v8685_v54  ;;  %v5650_v57 = vld [vmem:[%s10115_s3 + $0x1f8] sm:$0xff]  ;;  %v5655_v14 = vld [vmem:[%s10115_s3 + $0x1d0] sm:$0xff] }
 0x223   :  { %2545 = vst [vmem:[#allocation2 + $0x70] sm:$0xff] %v2529_v16  ;;  %10647 = vst [vmem:[#allocation16_spill] sm:$0xff] %v8715_v15  ;;  %3125 = vmatpush1.msra.mxu1 %v8690_v61  ;;  %2948 = vmatprep.subr.mxu0 %v8697_v47  ;;  %v5652_v61 = vld [vmem:[%s10115_s3 + $0x1e8] sm:$0xff]  ;;  %v5653_v63 = vld [vmem:[%s10115_s3 + $0x1e0] sm:$0xff] }
 0x224   :  { %v2514_v21 = vadd.f32 %v8217_v55, %v2491_v2  ;;  %3126 = vmatprep.subr.mxu1 %v8702_v25  ;;  %2949 = vmatpush1.msra.mxu0 %v8710_v23  ;;  %v8765_v25 = vld [vmem:[%s10115_s3 + $0x4e0] sm:$0xff]  ;;  %v8840_v40 = vld [vmem:[%s10115_s3 + $0x4a8] sm:$0xff]  ;;  %v5663_v11 = vld [vmem:[%s10115_s3 + $0x190] sm:$0xff] }
 0x225   :  { %3127 = vmatpush1.msra.mxu1 %v8715_v15  ;;  %3274 = vmatprep.subr.mxu0 %v8728_v53  ;;  %v8749_v15 = vld [vmem:[#allocation2 + $0x3] ss:$2 sm:$0xff]  ;;  %v8784_v13 = vld [vmem:[#allocation2 + $0x13] ss:$2 sm:$0xff]  ;;  %v8826_v52 = vld [vmem:[#allocation2 + $0x22] ss:$2 sm:$0xff] }
 0x226   :  { %v2530_v16 = vmax.f32 %v2514_v21, 0.0  ;;  %v8721_v55 = vld [vmem:[#allocation2 + $0x61] ss:$2 sm:$0xff]  ;;  %v2559_v10 = vld [vmem:[#allocation2 + $0x60] ss:$2 sm:$0xff]  ;;  %3411 = vmatprep.subr.mxu1 %v5650_v57  ;;  %v5667_v58 = vld [vmem:[%s10115_s3 + $0x170] sm:$0xff] }
 0x227   :  { %10648 = vst [vmem:[#allocation72_spill] sm:$0xff] %v8721_v55  ;;  %2744 = vmatmul.mubr.f32.gmra.mxu0 %v8721_v55  ;;  %2857 = vmatmul.mubr.f32.gmra.mxu1 %v2559_v10  ;;  %v8747_v10 = vld [vmem:[#allocation2 + $0x2] ss:$2 sm:$0xff]  ;;  %v8828_v29 = vld [vmem:[#allocation2 + $0x23] ss:$2 sm:$0xff] }
 0x228   :  { %2546 = vst [vmem:[#allocation2 + $0x78] sm:$0x3f] %v2530_v16  ;;  %2749 = vmatprep.mubr.f32.mxu0 %v10548_v6  ;;  %2862 = vmatprep.mubr.f32.mxu1 %v10548_v6  ;;  %v8745_v16 = vld [vmem:[%s10115_s3 + $0x4f0] sm:$0xff]  ;;  %v8754_v57 = vld [vmem:[%s10115_s3 + $0x4e8] sm:$0xff]  ;;  %v8853_v19 = vld [vmem:[%s10115_s3 + $0x4a0] sm:$0xff] }
 0x229   :  { %v5656_v55 = vld [vmem:[%s10115_s3 + $0x1c8] sm:$0xff]  ;;  %v8870_v41 = vld [vmem:[#allocation2 + $0x32] ss:$2 sm:$0xff]  ;;  %v8872_v4 = vld [vmem:[#allocation2 + $0x33] ss:$2 sm:$0xff] }
 0x22a   :  { %10651 = vst [vmem:[#allocation15_spill] sm:$0xff] %v8872_v4  ;;  %v5664_v60 = vld [vmem:[%s10115_s3 + $0x188] sm:$0xff]  ;;  %v5675_v46 = vld [vmem:[%s10115_s3 + $0x130] sm:$0xff] }
 0x22f   :  { %v8737_v2 = vld [vmem:[#allocation2 + $0x71] ss:$2 sm:$0x1f]  ;;  %v2561_v21 = vld [vmem:[#allocation2 + $0x70] ss:$2 sm:$0x1f] }
 0x230   :  { %10649 = vst [vmem:[#allocation9_spill] sm:$0xff] %v8737_v2  ;;  %2750 = vmatmul.mubr.f32.gmra.mxu0 %v8737_v2  ;;  %2863 = vmatmul.mubr.f32.gmra.mxu1 %v2561_v21  ;;  %v5651_v21 = vld [vmem:[%s10115_s3 + $0x1f0] sm:$0xff] }
 0x231   :  { %2982 = vmatprep.mubr.f32.mxu0 %v10548_v6  ;;  %3160 = vmatprep.mubr.f32.mxu1 %v10548_v6  ;;  %v8782_v2 = vld [vmem:[#allocation2 + $0x12] ss:$2 sm:$0xff] }
 0x234   :  { %2983 = vmatmul.mubr.f32.vlgmr.msra.gmra.mxu0 %v8747_v10  ;;  %3161 = vmatmul.mubr.f32.vlgmr.msra.gmra.mxu1 %v8749_v15 }
 0x235   :  { %3275 = vmatpush1.msra.mxu0 %v8745_v16  ;;  %3412 = vmatpush1.msra.mxu1 %v5651_v21  ;;  %v8776_v21 = vld [vmem:[%s10115_s3 + $0x4d8] sm:$0xff] }
 0x236   :  { %3276 = vmatprep.subr.mxu0 %v8754_v57  ;;  %3413 = vmatprep.subr.mxu1 %v5652_v61  ;;  %v8789_v61 = vld [vmem:[%s10115_s3 + $0x4d0] sm:$0xff] }
 0x237   :  { %2988 = vmatprep.mubr.f32.mxu0 %v10548_v6  ;;  %3166 = vmatprep.mubr.f32.mxu1 %v10548_v6 }
 0x238   :  { %3277 = vmatpush1.msra.mxu0 %v8765_v25  ;;  %3414 = vmatpush1.msra.mxu1 %v5653_v63  ;;  %v5654_v63 = vld [vmem:[%s10115_s3 + $0x1d8] sm:$0xff] }
 0x239   :  { %2989 = vmatmul.mubr.f32.gmra.mxu0 %v8782_v2  ;;  %3167 = vmatmul.mubr.f32.gmra.mxu1 %v8784_v13 }
 0x23a   :  { %3278 = vmatprep.subr.mxu0 %v8776_v21  ;;  %3415 = vmatprep.subr.mxu1 %v5654_v63  ;;  %v5657_v63 = vld [vmem:[%s10115_s3 + $0x1c0] sm:$0xff] }
 0x23b   :  { %3279 = vmatpush1.msra.mxu0 %v8789_v61  ;;  %3416 = vmatpush1.msra.mxu1 %v5655_v14  ;;  %v8820_v14 = vld [vmem:[%s10115_s3 + $0x4b8] sm:$0xff] }
 0x23c   :  { %3280 = vmatprep.subr.mxu0 %v8796_v22  ;;  %3417 = vmatprep.subr.mxu1 %v5656_v55  ;;  %v8833_v55 = vld [vmem:[%s10115_s3 + $0x4b0] sm:$0xff] }
 0x23d   :  { %2994 = vmatprep.mubr.f32.mxu0 %v10548_v6  ;;  %3172 = vmatprep.mubr.f32.mxu1 %v10548_v6 }
 0x23e   :  { %3281 = vmatpush1.msra.mxu0 %v8809_v24  ;;  %3418 = vmatpush1.msra.mxu1 %v5657_v63  ;;  %v5658_v63 = vld [vmem:[%s10115_s3 + $0x1b8] sm:$0xff] }
 0x23f   :  { %2995 = vmatmul.mubr.f32.gmra.mxu0 %v8826_v52  ;;  %3173 = vmatmul.mubr.f32.gmra.mxu1 %v8828_v29 }
 0x240   :  { %3282 = vmatprep.subr.mxu0 %v8820_v14  ;;  %3419 = vmatprep.subr.mxu1 %v5658_v63  ;;  %v5661_v63 = vld [vmem:[%s10115_s3 + $0x1a0] sm:$0xff] }
 0x241   :  { %3283 = vmatpush1.msra.mxu0 %v8833_v55  ;;  %3420 = vmatpush1.msra.mxu1 %v5659_v59  ;;  %v8864_v59 = vld [vmem:[%s10115_s3 + $0x498] sm:$0xff] }
 0x242   :  { %3284 = vmatprep.subr.mxu0 %v8840_v40  ;;  %3421 = vmatprep.subr.mxu1 %v5660_v43  ;;  %10650 = vst [vmem:[#allocation10_spill] sm:$0xff] %v8864_v59  ;;  %v8877_v43 = vld [vmem:[%s10115_s3 + $0x490] sm:$0xff] }
 0x243   :  { %3000 = vmatprep.mubr.f32.mxu0 %v10548_v6  ;;  %3178 = vmatprep.mubr.f32.mxu1 %v10548_v6  ;;  %10652 = vst [vmem:[#allocation32_spill] sm:$0xff] %v8877_v43 }
 0x244   :  { %3285 = vmatpush1.msra.mxu0 %v8853_v19  ;;  %3422 = vmatpush1.msra.mxu1 %v5661_v63  ;;  %v5662_v63 = vld [vmem:[%s10115_s3 + $0x198] sm:$0xff] }
 0x245   :  { %3001 = vmatmul.mubr.f32.gmra.mxu0 %v8870_v41  ;;  %3179 = vmatmul.mubr.f32.gmra.mxu1 %v8872_v4  ;;  %v9060_v4 = vld [vmem:[%s10115_s3 + $0x408] sm:$0xff] }
 0x246   :  { %3286 = vmatprep.subr.mxu0 %v8864_v59  ;;  %3423 = vmatprep.subr.mxu1 %v5662_v63  ;;  %v5665_v63 = vld [vmem:[%s10115_s3 + $0x180] sm:$0xff]  ;;  %v5671_v59 = vld [vmem:[%s10115_s3 + $0x150] sm:$0xff] }
 0x247   :  { %3287 = vmatpush1.msra.mxu0 %v8877_v43  ;;  %3424 = vmatpush1.msra.mxu1 %v5663_v11  ;;  %v8908_v11 = vld [vmem:[%s10115_s3 + $0x478] sm:$0xff]  ;;  %v8916_v43 = vld [vmem:[#allocation2 + $0x43] ss:$2 sm:$0xff] }
 0x248   :  { %3288 = vmatprep.subr.mxu0 %v8884_v62  ;;  %3425 = vmatprep.subr.mxu1 %v5664_v60  ;;  %10655 = vst [vmem:[#allocation18_spill] sm:$0xff] %v8908_v11  ;;  %v8914_v62 = vld [vmem:[#allocation2 + $0x42] ss:$2 sm:$0xff]  ;;  %10656 = vst [vmem:[#allocation38_spill] sm:$0xff] %v8916_v43 }
 0x249   :  { %3006 = vmatprep.mubr.f32.mxu0 %v10548_v6  ;;  %3184 = vmatprep.mubr.f32.mxu1 %v10548_v6  ;;  %v8921_v60 = vld [vmem:[%s10115_s3 + $0x470] sm:$0xff] }
 0x24a   :  { %3289 = vmatpush1.msra.mxu0 %v8897_v7  ;;  %3426 = vmatpush1.msra.mxu1 %v5665_v63  ;;  %10657 = vst [vmem:[#allocation50_spill] sm:$0xff] %v8921_v60  ;;  %v8928_v7 = vld [vmem:[%s10115_s3 + $0x468] sm:$0xff]  ;;  %v5666_v63 = vld [vmem:[%s10115_s3 + $0x178] sm:$0xff] }
 0x24b   :  { %3007 = vmatmul.mubr.f32.gmra.mxu0 %v8914_v62  ;;  %3185 = vmatmul.mubr.f32.gmra.mxu1 %v8916_v43  ;;  %10658 = vst [vmem:[#allocation11_spill] sm:$0xff] %v8928_v7  ;;  %v8941_v43 = vld [vmem:[%s10115_s3 + $0x460] sm:$0xff] }
 0x24c   :  { %3290 = vmatprep.subr.mxu0 %v8908_v11  ;;  %3427 = vmatprep.subr.mxu1 %v5666_v63  ;;  %10659 = vst [vmem:[#allocation73_spill] sm:$0xff] %v8941_v43  ;;  %v5668_v11 = vld [vmem:[%s10115_s3 + $0x168] sm:$0xff]  ;;  %v5669_v63 = vld [vmem:[%s10115_s3 + $0x160] sm:$0xff] }
 0x24d   :  { %3291 = vmatpush1.msra.mxu0 %v8921_v60  ;;  %3428 = vmatpush1.msra.mxu1 %v5667_v58  ;;  %v8952_v58 = vld [vmem:[%s10115_s3 + $0x458] sm:$0xff] }
 0x24e   :  { %3292 = vmatprep.subr.mxu0 %v8928_v7  ;;  %3429 = vmatprep.subr.mxu1 %v5668_v11  ;;  %10660 = vst [vmem:[#allocation19_spill] sm:$0xff] %v8952_v58  ;;  %v8958_v7 = vld [vmem:[#allocation2 + $0x52] ss:$2 sm:$0xff]  ;;  %v8960_v60 = vld [vmem:[#allocation2 + $0x53] ss:$2 sm:$0xff] }
 0x24f   :  { %3012 = vmatprep.mubr.f32.mxu0 %v10548_v6  ;;  %3190 = vmatprep.mubr.f32.mxu1 %v10548_v6  ;;  %10661 = vst [vmem:[#allocation40_spill] sm:$0xff] %v8960_v60  ;;  %v8965_v11 = vld [vmem:[%s10115_s3 + $0x450] sm:$0xff] }
 0x250   :  { %3293 = vmatpush1.msra.mxu0 %v8941_v43  ;;  %3430 = vmatpush1.msra.mxu1 %v5669_v63  ;;  %10662 = vst [vmem:[#allocation74_spill] sm:$0xff] %v8965_v11  ;;  %v8972_v43 = vld [vmem:[%s10115_s3 + $0x448] sm:$0xff]  ;;  %v5670_v63 = vld [vmem:[%s10115_s3 + $0x158] sm:$0xff] }
 0x251   :  { %3013 = vmatmul.mubr.f32.gmra.mxu0 %v8958_v7  ;;  %3191 = vmatmul.mubr.f32.gmra.mxu1 %v8960_v60  ;;  %10663 = vst [vmem:[#allocation63_spill] sm:$0xff] %v8972_v43  ;;  %v8985_v60 = vld [vmem:[%s10115_s3 + $0x440] sm:$0xff] }
 0x252   :  { %3294 = vmatprep.subr.mxu0 %v8952_v58  ;;  %3431 = vmatprep.subr.mxu1 %v5670_v63  ;;  %10664 = vst [vmem:[#allocation75_spill] sm:$0xff] %v8985_v60  ;;  %v5672_v58 = vld [vmem:[%s10115_s3 + $0x148] sm:$0xff]  ;;  %v5673_v63 = vld [vmem:[%s10115_s3 + $0x140] sm:$0xff] }
 0x253   :  { %3295 = vmatpush1.msra.mxu0 %v8965_v11  ;;  %3432 = vmatpush1.msra.mxu1 %v5671_v59  ;;  %v8996_v59 = vld [vmem:[%s10115_s3 + $0x438] sm:$0xff]  ;;  %v9004_v11 = vld [vmem:[#allocation2 + $0x63] ss:$2 sm:$0xff] }
 0x254   :  { %3296 = vmatprep.subr.mxu0 %v8972_v43  ;;  %3433 = vmatprep.subr.mxu1 %v5672_v58  ;;  %10665 = vst [vmem:[#allocation13_spill] sm:$0xff] %v8996_v59  ;;  %v9002_v43 = vld [vmem:[#allocation2 + $0x62] ss:$2 sm:$0xff]  ;;  %10666 = vst [vmem:[#allocation12_spill] sm:$0xff] %v9004_v11 }
 0x255   :  { %3018 = vmatprep.mubr.f32.mxu0 %v10548_v6  ;;  %3196 = vmatprep.mubr.f32.mxu1 %v10548_v6  ;;  %v9009_v58 = vld [vmem:[%s10115_s3 + $0x430] sm:$0xff] }
 0x256   :  { %3297 = vmatpush1.msra.mxu0 %v8985_v60  ;;  %3434 = vmatpush1.msra.mxu1 %v5673_v63  ;;  %10667 = vst [vmem:[#allocation64_spill] sm:$0xff] %v9009_v58  ;;  %v9016_v60 = vld [vmem:[%s10115_s3 + $0x428] sm:$0xff]  ;;  %v5674_v63 = vld [vmem:[%s10115_s3 + $0x138] sm:$0xff] }
 0x257   :  { %3019 = vmatmul.mubr.f32.gmra.mxu0 %v9002_v43  ;;  %3197 = vmatmul.mubr.f32.gmra.mxu1 %v9004_v11  ;;  %10668 = vst [vmem:[#allocation76_spill] sm:$0xff] %v9016_v60  ;;  %v9029_v11 = vld [vmem:[%s10115_s3 + $0x420] sm:$0xff] }
 0x258   :  { %3298 = vmatprep.subr.mxu0 %v8996_v59  ;;  %3435 = vmatprep.subr.mxu1 %v5674_v63  ;;  %10669 = vst [vmem:[#allocation37_spill] sm:$0xff] %v9029_v11  ;;  %v5676_v59 = vld [vmem:[%s10115_s3 + $0x128] sm:$0xff]  ;;  %v9045_v63 = vld [vmem:[%s10115_s3 + $0x410] sm:$0xff] }
 0x259   :  { %3299 = vmatpush1.msra.mxu0 %v9009_v58  ;;  %3436 = vmatpush1.msra.mxu1 %v5675_v46  ;;  %v9040_v46 = vld [vmem:[%s10115_s3 + $0x418] sm:$0xff]  ;;  %10671 = vst [vmem:[#allocation20_spill] sm:$0xff] %v9045_v63 }
 0x25a   :  { %3300 = vmatprep.subr.mxu0 %v9016_v60  ;;  %3437 = vmatprep.subr.mxu1 %v5676_v59  ;;  %10670 = vst [vmem:[#allocation43_spill] sm:$0xff] %v9040_v46  ;;  %v5677_v59 = vld [vmem:[%s10115_s3 + $0x120] sm:$0xff]  ;;  %v9051_v60 = vld [vmem:[#allocation2 + $0x72] ss:$2 sm:$0x1f] }
 0x25b   :  { %3024 = vmatprep.mubr.f32.mxu0 %v10548_v6  ;;  %3202 = vmatprep.mubr.f32.mxu1 %v10548_v6  ;;  %v9053_v58 = vld [vmem:[#allocation2 + $0x73] ss:$2 sm:$0x1f] }
 0x25c   :  { %3301 = vmatpush1.msra.mxu0 %v9029_v11  ;;  %3438 = vmatpush1.msra.mxu1 %v5677_v59  ;;  %10672 = vst [vmem:[#allocation42_spill] sm:$0xff] %v9053_v58  ;;  %v5678_v11 = vld [vmem:[%s10115_s3 + $0x118] sm:$0xff]  ;;  %v9069_v59 = vld [vmem:[%s10115_s3 + $0x400] sm:$0xff] }
 0x25d   :  { %3025 = vmatmul.mubr.f32.gmra.mxu0 %v9051_v60  ;;  %3203 = vmatmul.mubr.f32.gmra.mxu1 %v9053_v58  ;;  %v5679_v58 = vld [vmem:[%s10115_s3 + $0x110] sm:$0xff] }
 0x25e   :  { %3302 = vmatprep.subr.mxu0 %v9040_v46  ;;  %3439 = vmatprep.subr.mxu1 %v5678_v11  ;;  %v5680_v46 = vld [vmem:[%s10115_s3 + $0x108] sm:$0xff]  ;;  %v5681_v11 = vld [vmem:[%s10115_s3 + $0x100] sm:$0xff] }
 0x25f   :  { %3303 = vmatpush1.msra.mxu0 %v9045_v63  ;;  %3440 = vmatpush1.msra.mxu1 %v5679_v58  ;;  %v9085_v63 = vld [vmem:[#allocation2 + $0x4] ss:$2 sm:$0xff]  ;;  %v5682_v58 = vld [vmem:[%s10115_s3 + $0xf8] sm:$0xff] }
 0x260   :  { %3304 = vmatprep.subr.mxu0 %v9060_v4  ;;  %3441 = vmatprep.subr.mxu1 %v5680_v46  ;;  %v5683_v46 = vld [vmem:[%s10115_s3 + $0x2f8] sm:$0xff] }
 0x261   :  { %3305 = vmatpush1.msra.mxu0 %v9069_v59  ;;  %3338 = vmatprep.mubr.f32.mxu0 %v10548_v6 }
 0x262   :  { %3442 = vmatpush1.msra.mxu1 %v5681_v11  ;;  %3475 = vmatprep.mubr.f32.mxu1 %v10548_v6  ;;  %v5684_v11 = vld [vmem:[%s10115_s3 + $0xf0] sm:$0xff] }
 0x263   :  { %3339 = vmatmul.mubr.f32.vlgmr.msra.gmra.mxu0 %v9085_v63  ;;  %3476 = vmatmul.mubr.f32.vlgmr.msra.gmra.mxu1 %v8747_v10  ;;  %v5685_v10 = vld [vmem:[%s10115_s3 + $0xe8] sm:$0xff] }
 0x264   :  { %3524 = vmatprep.subr.mxu0 %v5682_v58  ;;  %3637 = vmatprep.subr.mxu1 %v5683_v46  ;;  %v5686_v58 = vld [vmem:[%s10115_s3 + $0xe0] sm:$0xff] }
 0x265   :  { %3525 = vmatpush1.msra.mxu0 %v5684_v11  ;;  %3638 = vmatpush1.msra.mxu1 %v8267_v42  ;;  %v9109_v46 = vld [vmem:[#allocation2 + $0x14] ss:$2 sm:$0xff]  ;;  %v10679_v11 = vld [vmem:[#allocation33_spill] sm:$0xff] }
 0x266   :  { %3526 = vmatprep.subr.mxu0 %v5685_v10  ;;  %3639 = vmatprep.subr.mxu1 %v8277_v51  ;;  %v5687_v42 = vld [vmem:[%s10115_s3 + $0xd8] sm:$0xff]  ;;  %v5688_v51 = vld [vmem:[%s10115_s3 + $0xd0] sm:$0xff] }
 0x267   :  { %3344 = vmatprep.mubr.f32.mxu0 %v10548_v6  ;;  %3481 = vmatprep.mubr.f32.mxu1 %v10548_v6  ;;  %v10683_v10 = vld [vmem:[#allocation38_spill] sm:$0xff] }
 0x268   :  { %3527 = vmatpush1.msra.mxu0 %v5686_v58  ;;  %3640 = vmatpush1.msra.mxu1 %v8294_v26  ;;  %v5689_v26 = vld [vmem:[%s10115_s3 + $0xc8] sm:$0xff]  ;;  %v10684_v58 = vld [vmem:[#allocation58_spill] sm:$0xff] }
 0x269   :  { %3345 = vmatmul.mubr.f32.gmra.mxu0 %v9109_v46  ;;  %3482 = vmatmul.mubr.f32.gmra.mxu1 %v8782_v2  ;;  %v9131_v2 = vld [vmem:[#allocation2 + $0x24] ss:$2 sm:$0xff] }
 0x26a   :  { %3528 = vmatprep.subr.mxu0 %v5687_v42  ;;  %3641 = vmatprep.subr.mxu1 %v8304_v48  ;;  %v5690_v48 = vld [vmem:[%s10115_s3 + $0xc0] sm:$0xff]  ;;  %v10685_v42 = vld [vmem:[#allocation18_spill] sm:$0xff] }
 0x26b   :  { %3529 = vmatpush1.msra.mxu0 %v5688_v51  ;;  %3642 = vmatpush1.msra.mxu1 %v8315_v5  ;;  %v5691_v5 = vld [vmem:[%s10115_s3 + $0xb8] sm:$0xff]  ;;  %v10686_v51 = vld [vmem:[#allocation84_spill] sm:$0xff] }
 0x26c   :  { %3530 = vmatprep.subr.mxu0 %v5689_v26  ;;  %3643 = vmatprep.subr.mxu1 %v8334_v8  ;;  %v5692_v8 = vld [vmem:[%s10115_s3 + $0xb0] sm:$0xff] }
 0x26d   :  { %3350 = vmatprep.mubr.f32.mxu0 %v10548_v6  ;;  %3487 = vmatprep.mubr.f32.mxu1 %v10548_v6  ;;  %v10687_v26 = vld [vmem:[#allocation50_spill] sm:$0xff] }
 0x26e   :  { %3531 = vmatpush1.msra.mxu0 %v5690_v48  ;;  %3644 = vmatpush1.msra.mxu1 %v8344_v38  ;;  %v5693_v38 = vld [vmem:[%s10115_s3 + $0xa8] sm:$0xff]  ;;  %v10688_v48 = vld [vmem:[#allocation34_spill] sm:$0xff] }
 0x26f   :  { %3351 = vmatmul.mubr.f32.gmra.mxu0 %v9131_v2  ;;  %3488 = vmatmul.mubr.f32.gmra.mxu1 %v8826_v52  ;;  %v9153_v52 = vld [vmem:[#allocation2 + $0x34] ss:$2 sm:$0xff] }
 0x270   :  { %3532 = vmatprep.subr.mxu0 %v5691_v5  ;;  %3645 = vmatprep.subr.mxu1 %v8361_v0  ;;  %v5694_v0 = vld [vmem:[%s10115_s3 + $0xa0] sm:$0xff]  ;;  %v10689_v5 = vld [vmem:[#allocation11_spill] sm:$0xff] }
 0x271   :  { %3533 = vmatpush1.msra.mxu0 %v5692_v8  ;;  %3646 = vmatpush1.msra.mxu1 %v8371_v20  ;;  %v5695_v20 = vld [vmem:[%s10115_s3 + $0x98] sm:$0xff]  ;;  %v10690_v8 = vld [vmem:[#allocation4_spill] sm:$0xff] }
 0x272   :  { %3534 = vmatprep.subr.mxu0 %v5693_v38  ;;  %3647 = vmatprep.subr.mxu1 %v8382_v35  ;;  %v5696_v35 = vld [vmem:[%s10115_s3 + $0x90] sm:$0xff]  ;;  %v10691_v38 = vld [vmem:[#allocation73_spill] sm:$0xff] }
 0x273   :  { %3356 = vmatprep.mubr.f32.mxu0 %v10548_v6  ;;  %3493 = vmatprep.mubr.f32.mxu1 %v10548_v6 }
 0x274   :  { %3535 = vmatpush1.msra.mxu0 %v5694_v0  ;;  %3648 = vmatpush1.msra.mxu1 %v8403_v9  ;;  %v5697_v9 = vld [vmem:[%s10115_s3 + $0x88] sm:$0xff]  ;;  %v10692_v0 = vld [vmem:[#allocation8_spill] sm:$0xff] }
 0x275   :  { %3357 = vmatmul.mubr.f32.gmra.mxu0 %v9153_v52  ;;  %3494 = vmatmul.mubr.f32.gmra.mxu1 %v8870_v41  ;;  %v9175_v41 = vld [vmem:[#allocation2 + $0x44] ss:$2 sm:$0xff] }
 0x276   :  { %3536 = vmatprep.subr.mxu0 %v5695_v20  ;;  %3649 = vmatprep.subr.mxu1 %v8416_v17  ;;  %v5698_v17 = vld [vmem:[%s10115_s3 + $0x80] sm:$0xff] }
 0x277   :  { %3537 = vmatpush1.msra.mxu0 %v5696_v35  ;;  %3650 = vmatpush1.msra.mxu1 %v8435_v27  ;;  %v5699_v27 = vld [vmem:[%s10115_s3 + $0x78] sm:$0xff]  ;;  %v10693_v20 = vld [vmem:[#allocation40_spill] sm:$0xff] }
 0x278   :  { %3538 = vmatprep.subr.mxu0 %v5697_v9  ;;  %3651 = vmatprep.subr.mxu1 %v8448_v18  ;;  %v5700_v18 = vld [vmem:[%s10115_s3 + $0x70] sm:$0xff]  ;;  %v10694_v35 = vld [vmem:[#allocation36_spill] sm:$0xff]  ;;  %v10695_v9 = vld [vmem:[#allocation19_spill] sm:$0xff] }
 0x279   :  { %3362 = vmatprep.mubr.f32.mxu0 %v10548_v6  ;;  %3499 = vmatprep.mubr.f32.mxu1 %v10548_v6 }
 0x27a   :  { %3539 = vmatpush1.msra.mxu0 %v5698_v17  ;;  %3652 = vmatpush1.msra.mxu1 %v8462_v56  ;;  %v5701_v56 = vld [vmem:[%s10115_s3 + $0x68] sm:$0xff]  ;;  %v10696_v17 = vld [vmem:[#allocation39_spill] sm:$0xff] }
 0x27b   :  { %3363 = vmatmul.mubr.f32.gmra.mxu0 %v9175_v41  ;;  %3500 = vmatmul.mubr.f32.gmra.mxu1 %v8914_v62  ;;  %v9197_v62 = vld [vmem:[#allocation2 + $0x54] ss:$2 sm:$0xff] }
 0x27c   :  { %3540 = vmatprep.subr.mxu0 %v5699_v27  ;;  %3653 = vmatprep.subr.mxu1 %v8488_v36  ;;  %v5702_v36 = vld [vmem:[%s10115_s3 + $0x60] sm:$0xff]  ;;  %v10697_v27 = vld [vmem:[#allocation74_spill] sm:$0xff] }
 0x27d   :  { %3541 = vmatpush1.msra.mxu0 %v5700_v18  ;;  %3654 = vmatpush1.msra.mxu1 %v8501_v33  ;;  %v5703_v33 = vld [vmem:[%s10115_s3 + $0x58] sm:$0xff]  ;;  %v10698_v18 = vld [vmem:[#allocation6_spill] sm:$0xff] }
 0x27e   :  { %3542 = vmatprep.subr.mxu0 %v5701_v56  ;;  %3655 = vmatprep.subr.mxu1 %v8520_v39  ;;  %v5704_v39 = vld [vmem:[%s10115_s3 + $0x50] sm:$0xff]  ;;  %v10699_v56 = vld [vmem:[#allocation63_spill] sm:$0xff] }
 0x27f   :  { %3368 = vmatprep.mubr.f32.mxu0 %v10548_v6  ;;  %3505 = vmatprep.mubr.f32.mxu1 %v10548_v6 }
 0x280   :  { %3543 = vmatpush1.msra.mxu0 %v5702_v36  ;;  %3656 = vmatpush1.msra.mxu1 %v8533_v50  ;;  %v5705_v50 = vld [vmem:[%s10115_s3 + $0x48] sm:$0xff] }
 0x281   :  { %3369 = vmatmul.mubr.f32.gmra.mxu0 %v9197_v62  ;;  %3506 = vmatmul.mubr.f32.gmra.mxu1 %v8958_v7  ;;  %v5706_v7 = vld [vmem:[%s10115_s3 + $0x40] sm:$0xff]  ;;  %v10700_v36 = vld [vmem:[#allocation41_spill] sm:$0xff] }
 0x282   :  { %3544 = vmatprep.subr.mxu0 %v5703_v33  ;;  %3657 = vmatprep.subr.mxu1 %v8547_v12  ;;  %v9219_v12 = vld [vmem:[#allocation2 + $0x64] ss:$2 sm:$0xff]  ;;  %v10701_v33 = vld [vmem:[#allocation75_spill] sm:$0xff] }
 0x283   :  { %3545 = vmatpush1.msra.mxu0 %v5704_v39  ;;  %3658 = vmatpush1.msra.mxu1 %v8571_v44  ;;  %v5707_v44 = vld [vmem:[%s10115_s3 + $0x38] sm:$0xff]  ;;  %v10702_v39 = vld [vmem:[#allocation72_spill] sm:$0xff] }
 0x284   :  { %3546 = vmatprep.subr.mxu0 %v5705_v50  ;;  %3659 = vmatprep.subr.mxu1 %v8584_v32  ;;  %v5708_v32 = vld [vmem:[%s10115_s3 + $0x30] sm:$0xff]  ;;  %v10703_v50 = vld [vmem:[#allocation12_spill] sm:$0xff] }
 0x285   :  { %3374 = vmatprep.mubr.f32.mxu0 %v10548_v6  ;;  %3511 = vmatprep.mubr.f32.mxu1 %v10548_v6 }
 0x286   :  { %3547 = vmatpush1.msra.mxu0 %v5706_v7  ;;  %3660 = vmatpush1.msra.mxu1 %v8601_v31  ;;  %v5709_v31 = vld [vmem:[%s10115_s3 + $0x28] sm:$0xff]  ;;  %v10704_v7 = vld [vmem:[#allocation7_spill] sm:$0xff] }
 0x287   :  { %3375 = vmatmul.mubr.f32.gmra.mxu0 %v9219_v12  ;;  %3512 = vmatmul.mubr.f32.gmra.mxu1 %v9002_v43  ;;  %v9241_v43 = vld [vmem:[#allocation2 + $0x74] ss:$2 sm:$0x1f] }
 0x288   :  { %3548 = vmatprep.subr.mxu0 %v5707_v44  ;;  %3661 = vmatprep.subr.mxu1 %v8613_v45  ;;  %v5710_v45 = vld [vmem:[%s10115_s3 + $0x20] sm:$0xff]  ;;  %v10705_v44 = vld [vmem:[#allocation13_spill] sm:$0xff] }
 0x289   :  { %3549 = vmatpush1.msra.mxu0 %v5708_v32  ;;  %3662 = vmatpush1.msra.mxu1 %v8625_v28  ;;  %v5711_v28 = vld [vmem:[%s10115_s3 + $0x18] sm:$0xff] }
 0x28a   :  { %3550 = vmatprep.subr.mxu0 %v5709_v31  ;;  %3663 = vmatprep.subr.mxu1 %v8642_v3  ;;  %v5712_v3 = vld [vmem:[%s10115_s3 + $0x10] sm:$0xff]  ;;  %v10706_v31 = vld [vmem:[#allocation44_spill] sm:$0xff] }
 0x28b   :  { %3380 = vmatprep.mubr.f32.mxu0 %v10548_v6  ;;  %3517 = vmatprep.mubr.f32.mxu1 %v10548_v6 }
 0x28c   :  { %3551 = vmatpush1.msra.mxu0 %v5710_v45  ;;  %3664 = vmatpush1.msra.mxu1 %v8658_v37  ;;  %v5713_v37 = vld [vmem:[%s10115_s3 + $0x8] sm:$0xff]  ;;  %v10707_v45 = vld [vmem:[#allocation64_spill] sm:$0xff] }
 0x28d   :  { %3381 = vmatmul.mubr.f32.gmra.mxu0 %v9241_v43  ;;  %3518 = vmatmul.mubr.f32.gmra.mxu1 %v9051_v60  ;;  %v5714_v60 = vld [vmem:[%s10115_s3] sm:$0xff] }
 0x28e   :  { %3552 = vmatprep.subr.mxu0 %v5711_v28  ;;  %3665 = vmatprep.subr.mxu1 %v8670_v30  ;;  %v5715_v30 = vld [vmem:[#allocation2 + $0x1] ss:$2 sm:$0xff] }
 0x28f   :  { %3553 = vmatpush1.msra.mxu0 %v5712_v3  ;;  %3666 = vmatpush1.msra.mxu1 %v8685_v54  ;;  %v5716_v54 = vld [vmem:[%s10115_s3 + $0x3f8] sm:$0xff]  ;;  %v10708_v3 = vld [vmem:[#allocation46_spill] sm:$0xff] }
 0x290   :  { %3554 = vmatprep.subr.mxu0 %v5713_v37  ;;  %3667 = vmatprep.subr.mxu1 %v8697_v47  ;;  %v5717_v47 = vld [vmem:[%s10115_s3 + $0x3f0] sm:$0xff]  ;;  %v10709_v37 = vld [vmem:[#allocation76_spill] sm:$0xff] }
 0x291   :  { %3555 = vmatpush1.msra.mxu0 %v5714_v60  ;;  %3588 = vmatprep.mubr.f32.mxu0 %v10548_v6 }
 0x292   :  { %3668 = vmatpush1.msra.mxu1 %v8710_v23  ;;  %3701 = vmatprep.mubr.f32.mxu1 %v10548_v6  ;;  %v5718_v23 = vld [vmem:[%s10115_s3 + $0x3e8] sm:$0xff] }
 0x293   :  { %3589 = vmatmul.mubr.f32.vlgmr.msra.gmra.mxu0 %v5715_v30  ;;  %3702 = vmatmul.mubr.f32.vlgmr.msra.gmra.mxu1 %v8749_v15  ;;  %v5719_v15 = vld [vmem:[%s10115_s3 + $0x3e0] sm:$0xff] }
 0x294   :  { %3766 = vmatprep.subr.mxu0 %v5716_v54  ;;  %3911 = vmatprep.subr.mxu1 %v8728_v53  ;;  %v5720_v53 = vld [vmem:[#allocation2 + $0x11] ss:$2 sm:$0xff] }
 0x295   :  { %3767 = vmatpush1.msra.mxu0 %v5717_v47  ;;  %3912 = vmatpush1.msra.mxu1 %v8745_v16  ;;  %v5721_v16 = vld [vmem:[%s10115_s3 + $0x3d8] sm:$0xff] }
 0x296   :  { %3768 = vmatprep.subr.mxu0 %v5718_v23  ;;  %3913 = vmatprep.subr.mxu1 %v8754_v57  ;;  %v5722_v57 = vld [vmem:[%s10115_s3 + $0x3d0] sm:$0xff]  ;;  %v10710_v47 = vld [vmem:[#allocation31_spill] sm:$0xff]  ;;  %v10711_v23 = vld [vmem:[#allocation37_spill] sm:$0xff] }
 0x297   :  { %3594 = vmatprep.mubr.f32.mxu0 %v10548_v6  ;;  %3707 = vmatprep.mubr.f32.mxu1 %v10548_v6 }
 0x298   :  { %3769 = vmatpush1.msra.mxu0 %v5719_v15  ;;  %3914 = vmatpush1.msra.mxu1 %v8765_v25  ;;  %v5723_v25 = vld [vmem:[%s10115_s3 + $0x3c8] sm:$0xff] }
 0x299   :  { %3595 = vmatmul.mubr.f32.gmra.mxu0 %v5720_v53  ;;  %3708 = vmatmul.mubr.f32.gmra.mxu1 %v8784_v13  ;;  %v5724_v13 = vld [vmem:[%s10115_s3 + $0x3c0] sm:$0xff]  ;;  %v10712_v53 = vld [vmem:[#allocation9_spill] sm:$0xff] }
 0x29a   :  { %3770 = vmatprep.subr.mxu0 %v5721_v16  ;;  %3915 = vmatprep.subr.mxu1 %v8776_v21  ;;  %v5725_v21 = vld [vmem:[%s10115_s3 + $0x3b8] sm:$0xff]  ;;  %v10713_v16 = vld [vmem:[#allocation42_spill] sm:$0xff] }
 0x29b   :  { %3771 = vmatpush1.msra.mxu0 %v5722_v57  ;;  %3916 = vmatpush1.msra.mxu1 %v8789_v61  ;;  %v10675_v61 = vld [vmem:[#allocation10_spill] sm:$0xff] }
 0x29c   :  { %3772 = vmatprep.subr.mxu0 %v5723_v25  ;;  %3917 = vmatprep.subr.mxu1 %v8796_v22  ;;  %v5726_v22 = vld [vmem:[%s10115_s3 + $0x3b0] sm:$0xff]  ;;  %v10715_v25 = vld [vmem:[#allocation43_spill] sm:$0xff] }
 0x29d   :  { %3600 = vmatprep.mubr.f32.mxu0 %v10548_v6  ;;  %3713 = vmatprep.mubr.f32.mxu1 %v10548_v6  ;;  %v10714_v57 = vld [vmem:[#allocation14_spill] sm:$0xff] }
 0x29e   :  { %3773 = vmatpush1.msra.mxu0 %v5724_v13  ;;  %3918 = vmatpush1.msra.mxu1 %v8809_v24  ;;  %v10674_v24 = vld [vmem:[#allocation56_spill] sm:$0xff]  ;;  %v10716_v13 = vld [vmem:[#allocation71_spill] sm:$0xff] }
 0x29f   :  { %3601 = vmatmul.mubr.f32.gmra.mxu0 %v8397_v34  ;;  %3714 = vmatmul.mubr.f32.gmra.mxu1 %v8828_v29  ;;  %v5727_v34 = vld [vmem:[%s10115_s3 + $0x3a8] sm:$0xff]  ;;  %v10673_v29 = vld [vmem:[#allocation15_spill] sm:$0xff] }
 0x2a0   :  { %3774 = vmatprep.subr.mxu0 %v5725_v21  ;;  %3919 = vmatprep.subr.mxu1 %v8820_v14  ;;  %v10676_v14 = vld [vmem:[#allocation82_spill] sm:$0xff]  ;;  %v10717_v21 = vld [vmem:[#allocation20_spill] sm:$0xff] }
 0x2a1   :  { %3775 = vmatpush1.msra.mxu0 %v5726_v22  ;;  %3920 = vmatpush1.msra.mxu1 %v8833_v55  ;;  %v10677_v55 = vld [vmem:[#allocation32_spill] sm:$0xff]  ;;  %v10718_v22 = vld [vmem:[#allocation29_spill] sm:$0xff] }
 0x2a2   :  { %3776 = vmatprep.subr.mxu0 %v5727_v34  ;;  %3921 = vmatprep.subr.mxu1 %v8840_v40  ;;  %v10678_v40 = vld [vmem:[#allocation57_spill] sm:$0xff] }
 0x2a3   :  { %3606 = vmatprep.mubr.f32.mxu0 %v10548_v6  ;;  %3719 = vmatprep.mubr.f32.mxu1 %v10548_v6 }
 0x2a4   :  { %3777 = vmatpush1.msra.mxu0 %v8411_v49  ;;  %3922 = vmatpush1.msra.mxu1 %v8853_v19  ;;  %v10680_v49 = vld [vmem:[#allocation83_spill] sm:$0xff]  ;;  %v10682_v19 = vld [vmem:[#allocation5_spill] sm:$0xff] }
 0x2a5   :  { %3607 = vmatmul.mubr.f32.gmra.mxu0 %v8481_v1  ;;  %3720 = vmatmul.mubr.f32.gmra.mxu1 %v10673_v29  ;;  %v10681_v1 = vld [vmem:[#allocation35_spill] sm:$0xff]  ;;  %v10719_v29 = vld [vmem:[#allocation16_spill] sm:$0xff] }
 0x2a6   :  { %3778 = vmatprep.subr.mxu0 %v10674_v24  ;;  %3923 = vmatprep.subr.mxu1 %v10675_v61  ;;  %v3896_v61 = vld [vmem:[#allocation2 + $0x5] ss:$2 sm:$0xff] }
 0x2a7   :  { %3779 = vmatpush1.msra.mxu0 %v10676_v14  ;;  %3924 = vmatpush1.msra.mxu1 %v10677_v55 }
 0x2a8   :  { %3780 = vmatprep.subr.mxu0 %v10678_v40  ;;  %3925 = vmatprep.subr.mxu1 %v10679_v11 }
 0x2a9   :  { %3612 = vmatprep.mubr.f32.mxu0 %v10548_v6  ;;  %3725 = vmatprep.mubr.f32.mxu1 %v10548_v6 }
 0x2aa   :  { %3781 = vmatpush1.msra.mxu0 %v10680_v49  ;;  %3926 = vmatpush1.msra.mxu1 %v10681_v1  ;;  %v3900_v49 = vld [vmem:[#allocation2 + $0x25] ss:$2 sm:$0xff] }
 0x2ab   :  { %3613 = vmatmul.mubr.f32.gmra.mxu0 %v10682_v19  ;;  %3726 = vmatmul.mubr.f32.gmra.mxu1 %v10683_v10 }
 0x2ac   :  { %3782 = vmatprep.subr.mxu0 %v10684_v58  ;;  %3927 = vmatprep.subr.mxu1 %v10685_v42  ;;  %v3902_v58 = vld [vmem:[#allocation2 + $0x35] ss:$2 sm:$0xff] }
 0x2ad   :  { %3783 = vmatpush1.msra.mxu0 %v10686_v51  ;;  %3928 = vmatpush1.msra.mxu1 %v10687_v26  ;;  %v3904_v26 = vld [vmem:[#allocation2 + $0x45] ss:$2 sm:$0xff] }
 0x2ae   :  { %3784 = vmatprep.subr.mxu0 %v10688_v48  ;;  %3929 = vmatprep.subr.mxu1 %v10689_v5 }
 0x2af   :  { %3618 = vmatprep.mubr.f32.mxu0 %v10548_v6  ;;  %3731 = vmatprep.mubr.f32.mxu1 %v10548_v6 }
 0x2b0   :  { %3785 = vmatpush1.msra.mxu0 %v10690_v8  ;;  %3930 = vmatpush1.msra.mxu1 %v10691_v38  ;;  %v3906_v8 = vld [vmem:[#allocation2 + $0x55] ss:$2 sm:$0xff] }
 0x2b1   :  { %3619 = vmatmul.mubr.f32.gmra.mxu0 %v10692_v0  ;;  %3732 = vmatmul.mubr.f32.gmra.mxu1 %v10693_v20  ;;  %v3908_v20 = vld [vmem:[#allocation2 + $0x65] ss:$2 sm:$0xff] }
 0x2b2   :  { %3786 = vmatprep.subr.mxu0 %v10694_v35  ;;  %3931 = vmatprep.subr.mxu1 %v10695_v9 }
 0x2b3   :  { %3787 = vmatpush1.msra.mxu0 %v10696_v17  ;;  %3932 = vmatpush1.msra.mxu1 %v10697_v27  ;;  %v3910_v17 = vld [vmem:[#allocation2 + $0x75] ss:$2 sm:$0x1f] }
 0x2b4   :  { %3788 = vmatprep.subr.mxu0 %v10698_v18  ;;  %3933 = vmatprep.subr.mxu1 %v10699_v56 }
 0x2b5   :  { %3624 = vmatprep.mubr.f32.mxu0 %v10548_v6  ;;  %3737 = vmatprep.mubr.f32.mxu1 %v10548_v6  ;;  %v2709_v32 = vpop.f32.mrf.mxu0 }
 0x2b6   :  { %3789 = vmatpush1.msra.mxu0 %v10700_v36  ;;  %3934 = vmatpush1.msra.mxu1 %v10701_v33  ;;  %v2822_v28 = vpop.f32.mrf.mxu1 }
 0x2b7   :  { %3625 = vmatmul.mubr.f32.gmra.mxu0 %v10702_v39  ;;  %3738 = vmatmul.mubr.f32.gmra.mxu1 %v10703_v50  ;;  %v9363_v60 = vadd.f32 %v2822_v28, %v2709_v32  ;;  %v2711_v30 = vpop.f32.mrf.mxu0 }
 0x2b8   :  { %3790 = vmatprep.subr.mxu0 %v10704_v7  ;;  %3935 = vmatprep.subr.mxu1 %v10705_v44  ;;  %v2824_v54 = vpop.f32.mrf.mxu1 }
 0x2b9   :  { %3791 = vmatpush1.msra.mxu0 %v10706_v31  ;;  %3936 = vmatpush1.msra.mxu1 %v10707_v45  ;;  %v9369_v15 = vadd.f32 %v2824_v54, %v2711_v30 }
 0x2ba   :  { %3792 = vmatprep.subr.mxu0 %v10708_v3  ;;  %3937 = vmatprep.subr.mxu1 %v10709_v37 }
 0x2bb   :  { %3630 = vmatprep.mubr.f32.mxu0 %v10548_v6  ;;  %3743 = vmatprep.mubr.f32.mxu1 %v10548_v6 }
 0x2bc   :  { %3793 = vmatpush1.msra.mxu0 %v10710_v47  ;;  %3938 = vmatpush1.msra.mxu1 %v10711_v23 }
 0x2bd   :  { %3631 = vmatmul.mubr.f32.gmra.mxu0 %v10712_v53  ;;  %3744 = vmatmul.mubr.f32.gmra.mxu1 %v10713_v16  ;;  %v2715_v34 = vpop.f32.mrf.mxu0 }
 0x2be   :  { %3794 = vmatprep.subr.mxu0 %v10714_v57  ;;  %3939 = vmatprep.subr.mxu1 %v10715_v25  ;;  %v2828_v24 = vpop.f32.mrf.mxu1 }
 0x2bf   :  { %3795 = vmatpush1.msra.mxu0 %v10716_v13  ;;  %3940 = vmatpush1.msra.mxu1 %v10717_v21  ;;  %v9383_v14 = vadd.f32 %v2828_v24, %v2715_v34  ;;  %v2717_v55 = vpop.f32.mrf.mxu0 }
 0x2c0   :  { %3796 = vmatprep.subr.mxu0 %v10718_v22  ;;  %3941 = vmatprep.subr.mxu1 %v9060_v4  ;;  %v2830_v40 = vpop.f32.mrf.mxu1 }
 0x2c1   :  { %3797 = vmatpush1.msra.mxu0 %v10719_v29  ;;  %3830 = vmatprep.mubr.f32.mxu0 %v10548_v6  ;;  %v9388_v4 = vadd.f32 %v2830_v40, %v2717_v55 }
 0x2c2   :  { %3942 = vmatpush1.msra.mxu1 %v9069_v59  ;;  %3975 = vmatprep.mubr.f32.mxu1 %v10548_v6  ;;  %v3898_v59 = vld [vmem:[#allocation2 + $0x15] ss:$2 sm:$0xff] }
 0x2c3   :  { %3831 = vmatmul.mubr.f32.vlgmr.msra.gmra.mxu0 %v9085_v63  ;;  %3976 = vmatmul.mubr.f32.vlgmr.msra.gmra.mxu1 %v3896_v61 }
 0x2c4   :  { %3836 = vmatprep.mubr.f32.mxu0 %v10548_v6  ;;  %3981 = vmatprep.mubr.f32.mxu1 %v10548_v6 }
 0x2c5   :  { %5415 = vmatprep.subr.mxu0 %v10548_v6  ;;  %5450 = vmatprep.subr.mxu1 %v10548_v6  ;;  %v2721_v63 = vpop.f32.mrf.mxu0 }
 0x2c6   :  { %v2834_v11 = vpop.f32.mrf.mxu1 }
 0x2c7   :  { %3837 = vmatmul.mubr.f32.gmra.mxu0 %v9109_v46  ;;  %3982 = vmatmul.mubr.f32.gmra.mxu1 %v3898_v59  ;;  %v9395_v1 = vadd.f32 %v2834_v11, %v2721_v63  ;;  %v2723_v19 = vpop.f32.mrf.mxu0 }
 0x2c8   :  { %3842 = vmatprep.mubr.f32.mxu0 %v10548_v6  ;;  %3987 = vmatprep.mubr.f32.mxu1 %v10548_v6  ;;  %v2836_v10 = vpop.f32.mrf.mxu1 }
 0x2c9   :  { %v9400_v46 = vadd.f32 %v2836_v10, %v2723_v19 }
 0x2cb   :  { %3843 = vmatmul.mubr.f32.gmra.mxu0 %v9131_v2  ;;  %3988 = vmatmul.mubr.f32.gmra.mxu1 %v3900_v49 }
 0x2cc   :  { %3848 = vmatprep.mubr.f32.mxu0 %v10548_v6  ;;  %3993 = vmatprep.mubr.f32.mxu1 %v10548_v6 }
 0x2cd   :  { %v2727_v42 = vpop.f32.mrf.mxu0 }
 0x2ce   :  { %v2840_v51 = vpop.f32.mrf.mxu1 }
 0x2cf   :  { %3849 = vmatmul.mubr.f32.gmra.mxu0 %v9153_v52  ;;  %3994 = vmatmul.mubr.f32.gmra.mxu1 %v3902_v58  ;;  %v9405_v2 = vadd.f32 %v2840_v51, %v2727_v42  ;;  %v2729_v48 = vpop.f32.mrf.mxu0 }
 0x2d0   :  { %3854 = vmatprep.mubr.f32.mxu0 %v10548_v6  ;;  %3999 = vmatprep.mubr.f32.mxu1 %v10548_v6  ;;  %v2842_v5 = vpop.f32.mrf.mxu1 }
 0x2d1   :  { %v9410_v52 = vadd.f32 %v2842_v5, %v2729_v48 }
 0x2d3   :  { %3855 = vmatmul.mubr.f32.gmra.mxu0 %v9175_v41  ;;  %4000 = vmatmul.mubr.f32.gmra.mxu1 %v3904_v26 }
 0x2d4   :  { %3860 = vmatprep.mubr.f32.mxu0 %v10548_v6  ;;  %4005 = vmatprep.mubr.f32.mxu1 %v10548_v6 }
 0x2d6   :  { %v2733_v38 = vpop.f32.mrf.mxu0  ;;  %v2846_v0 = vpop.f32.mrf.mxu1 }
 0x2d7   :  { %3861 = vmatmul.mubr.f32.gmra.mxu0 %v9197_v62  ;;  %4006 = vmatmul.mubr.f32.gmra.mxu1 %v3906_v8  ;;  %v9415_v41 = vadd.f32 %v2846_v0, %v2733_v38 }
 0x2d8   :  { %3866 = vmatprep.mubr.f32.mxu0 %v10548_v6  ;;  %4011 = vmatprep.mubr.f32.mxu1 %v10548_v6  ;;  %v2735_v35 = vpop.f32.mrf.mxu0  ;;  %v2848_v9 = vpop.f32.mrf.mxu1 }
 0x2d9   :  { %v2849_v62 = vadd.f32 %v2848_v9, %v2735_v35 }
 0x2db   :  { %3867 = vmatmul.mubr.f32.gmra.mxu0 %v9219_v12  ;;  %4012 = vmatmul.mubr.f32.gmra.mxu1 %v3908_v20 }
 0x2dc   :  { %3872 = vmatprep.mubr.f32.mxu0 %v10548_v6  ;;  %4017 = vmatprep.mubr.f32.mxu1 %v10548_v6 }
 0x2df   :  { %3873 = vmatmul.mubr.f32.gmra.mxu0 %v9241_v43  ;;  %4018 = vmatmul.mubr.f32.gmra.mxu1 %v3910_v17  ;;  %v2739_v27 = vpop.f32.mrf.mxu0  ;;  %v2852_v18 = vpop.f32.mrf.mxu1 }
 0x2e0   :  { %v2853_v56 = vadd.f32 %v2852_v18, %v2739_v27  ;;  %5447 = vmatprep.mubr.msk.f32.mxu0 %vm5729_vm1, %v10548_v6  ;;  %5482 = vmatprep.mubr.msk.f32.mxu1 %vm5729_vm1, %v10548_v6 }
 0x2e1   :  { %v2741_v36 = vpop.f32.mrf.mxu0  ;;  %v2854_v33 = vpop.f32.mrf.mxu1 }
 0x2e2   :  { %v2855_v39 = vadd.f32 %v2854_v33, %v2741_v36 }
 0x2e7   :  { %v2745_v50 = vpop.f32.mrf.mxu0  ;;  %v2858_v7 = vpop.f32.mrf.mxu1 }
 0x2e8   :  { %v9421_v12 = vadd.f32 %v2858_v7, %v2745_v50 }
 0x2e9   :  { %v2747_v44 = vpop.f32.mrf.mxu0  ;;  %v2860_v32 = vpop.f32.mrf.mxu1 }
 0x2ea   :  { %v9423_v31 = vadd.f32 %v2860_v32, %v2747_v44 }
 0x2f0   :  { %v2751_v45 = vpop.f32.mrf.mxu0  ;;  %v2864_v28 = vpop.f32.mrf.mxu1 }
 0x2f1   :  { %v9425_v3 = vadd.f32 %v2864_v28, %v2751_v45  ;;  %v4104_v28 = vld [vmem:[%s10117_s5 + $0x70] sm:$0xff] }
 0x2f2   :  { %v2753_v43 = vpop.f32.mrf.mxu0  ;;  %v2866_v37 = vpop.f32.mrf.mxu1 }
 0x2f3   :  { %v9427_v30 = vadd.f32 %v2866_v37, %v2753_v43  ;;  %v5245_v37 = vld [vmem:[%s10117_s5 + $0xe8] sm:$0xff] }
 0x2f4   :  { %v2984_v54 = vpop.f32.mrf.mxu0  ;;  %v3162_v47 = vpop.f32.mrf.mxu1 }
 0x2f5   :  { %v3031_v23 = vadd.f32 %v2984_v54, %v9363_v60  ;;  %v4103_v54 = vld [vmem:[%s10117_s5 + $0x68] sm:$0xff] }
 0x2f6   :  { %v2986_v53 = vpop.f32.mrf.mxu0  ;;  %v3164_v16 = vpop.f32.mrf.mxu1 }
 0x2f7   :  { %v9430_v57 = vadd.f32 %v3162_v47, %v3031_v23  ;;  %v3032_v25 = vadd.f32 %v2986_v53, %v9369_v15  ;;  %v5244_v53 = vld [vmem:[%s10117_s5 + $0xe0] sm:$0xff] }
 0x2f9   :  { %v9433_v13 = vadd.f32 %v3164_v16, %v3032_v25  ;;  %v2990_v21 = vpop.f32.mrf.mxu0  ;;  %v3168_v22 = vpop.f32.mrf.mxu1  ;;  %v4102_v16 = vld [vmem:[%s10117_s5 + $0x60] sm:$0xff] }
 0x2fa   :  { %v3033_v34 = vadd.f32 %v2990_v21, %v9383_v14 }
 0x2fb   :  { %v2992_v29 = vpop.f32.mrf.mxu0  ;;  %v3170_v24 = vpop.f32.mrf.mxu1 }
 0x2fc   :  { %v9436_v61 = vadd.f32 %v3168_v22, %v3033_v34  ;;  %v3034_v55 = vadd.f32 %v2992_v29, %v9388_v4  ;;  %v5243_v34 = vld [vmem:[%s10117_s5 + $0xd8] sm:$0xff] }
 0x2fd   :  { %v4101_v29 = vld [vmem:[%s10117_s5 + $0x58] sm:$0xff] }
 0x2fe   :  { %v9439_v40 = vadd.f32 %v3170_v24, %v3034_v55  ;;  %v5242_v55 = vld [vmem:[%s10117_s5 + $0xd0] sm:$0xff] }
 0x2ff   :  { %v2996_v60 = vpop.f32.mrf.mxu0  ;;  %v3174_v59 = vpop.f32.mrf.mxu1 }
 0x300   :  { %v3035_v63 = vadd.f32 %v2996_v60, %v9395_v1  ;;  %v4100_v60 = vld [vmem:[%s10117_s5 + $0x50] sm:$0xff] }
 0x301   :  { %v2998_v11 = vpop.f32.mrf.mxu0  ;;  %v3176_v15 = vpop.f32.mrf.mxu1 }
 0x302   :  { %v9442_v49 = vadd.f32 %v3174_v59, %v3035_v63  ;;  %v3036_v19 = vadd.f32 %v2998_v11, %v9400_v46  ;;  %v5241_v11 = vld [vmem:[%s10117_s5 + $0xc8] sm:$0xff] }
 0x304   :  { %v9445_v10 = vadd.f32 %v3176_v15, %v3036_v19  ;;  %v4099_v15 = vld [vmem:[%s10117_s5 + $0x48] sm:$0xff] }
 0x305   :  { %v3002_v14 = vpop.f32.mrf.mxu0  ;;  %v3180_v58 = vpop.f32.mrf.mxu1 }
 0x306   :  { %v3037_v42 = vadd.f32 %v3002_v14, %v9405_v2 }
 0x307   :  { %v3004_v51 = vpop.f32.mrf.mxu0  ;;  %v3182_v4 = vpop.f32.mrf.mxu1 }
 0x308   :  { %v9448_v26 = vadd.f32 %v3180_v58, %v3037_v42  ;;  %v3038_v48 = vadd.f32 %v3004_v51, %v9410_v52  ;;  %v5240_v42 = vld [vmem:[%s10117_s5 + $0xc0] sm:$0xff] }
 0x309   :  { %v4098_v51 = vld [vmem:[%s10117_s5 + $0x40] sm:$0xff] }
 0x30a   :  { %v9451_v5 = vadd.f32 %v3182_v4, %v3038_v48  ;;  %v5239_v4 = vld [vmem:[%s10117_s5 + $0xb8] sm:$0xff] }
 0x30b   :  { %v3008_v1 = vpop.f32.mrf.mxu0  ;;  %v3186_v8 = vpop.f32.mrf.mxu1  ;;  %v4097_v48 = vld [vmem:[%s10117_s5 + $0x38] sm:$0xff] }
 0x30c   :  { %v3039_v38 = vadd.f32 %v3008_v1, %v9415_v41  ;;  %v5247_v41 = vld [vmem:[%s10117_s5 + $0xf8] sm:$0xff] }
 0x30d   :  { %v3010_v0 = vpop.f32.mrf.mxu0  ;;  %v3188_v46 = vpop.f32.mrf.mxu1  ;;  %5416 = vmatpush3.msra.mxu0 %v5247_v41 }
 0x30e   :  { %v9454_v20 = vadd.f32 %v3186_v8, %v3039_v38  ;;  %v3040_v35 = vadd.f32 %v3010_v0, %v2849_v62  ;;  %v4105_v62 = vld [vmem:[%s10117_s5 + $0x78] sm:$0xff]  ;;  %5417 = vmatprep.subr.mxu0 %v10548_v6  ;;  %v5238_v38 = vld [vmem:[%s10117_s5 + $0xb0] sm:$0xff] }
 0x30f   :  { %5451 = vmatpush3.msra.mxu1 %v4105_v62  ;;  %v4096_v0 = vld [vmem:[%s10117_s5 + $0x30] sm:$0xff] }
 0x310   :  { %v9456_v9 = vadd.f32 %v3188_v46, %v3040_v35  ;;  %5452 = vmatprep.subr.mxu1 %v10548_v6  ;;  %v5234_v62 = vld [vmem:[%s10117_s5 + $0x90] sm:$0xff] }
 0x311   :  { %v3014_v2 = vpop.f32.mrf.mxu0  ;;  %v3192_v17 = vpop.f32.mrf.mxu1  ;;  %5453 = vmatpush3.msra.mxu1 %v4104_v28  ;;  %v5233_v28 = vld [vmem:[%s10117_s5 + $0x88] sm:$0xff] }
 0x312   :  { %v3041_v27 = vadd.f32 %v3014_v2, %v2853_v56  ;;  %5454 = vmatprep.subr.mxu1 %v10548_v6 }
 0x313   :  { %v3016_v18 = vpop.f32.mrf.mxu0  ;;  %v3194_v36 = vpop.f32.mrf.mxu1  ;;  %5455 = vmatpush3.msra.mxu1 %v4103_v54  ;;  %v4090_v54 = vld [vmem:[%s10117_s5] sm:$0xff] }
 0x314   :  { %v9458_v33 = vadd.f32 %v3192_v17, %v3041_v27  ;;  %v3042_v52 = vadd.f32 %v3016_v18, %v2855_v39  ;;  %v5246_v39 = vld [vmem:[%s10117_s5 + $0xf0] sm:$0xff]  ;;  %5456 = vmatprep.subr.mxu1 %v10548_v6  ;;  %v5237_v17 = vld [vmem:[%s10117_s5 + $0xa8] sm:$0xff]  ;;  %v5236_v18 = vld [vmem:[%s10117_s5 + $0xa0] sm:$0xff] }
 0x315   :  { %5418 = vmatpush3.msra.mxu0 %v5246_v39  ;;  %5457 = vmatpush3.msra.mxu1 %v4102_v16  ;;  %v4095_v27 = vld [vmem:[%s10117_s5 + $0x28] sm:$0xff] }
 0x316   :  { %v9460_v50 = vadd.f32 %v3194_v36, %v3042_v52  ;;  %5419 = vmatprep.subr.mxu0 %v10548_v6  ;;  %5458 = vmatprep.subr.mxu1 %v10548_v6  ;;  %v4094_v36 = vld [vmem:[%s10117_s5 + $0x20] sm:$0xff] }
 0x317   :  { %v3020_v7 = vpop.f32.mrf.mxu0  ;;  %v3198_v44 = vpop.f32.mrf.mxu1  ;;  %5420 = vmatpush3.msra.mxu0 %v5245_v37  ;;  %5459 = vmatpush3.msra.mxu1 %v4101_v29  ;;  %v5232_v37 = vld [vmem:[%s10117_s5 + $0x80] sm:$0xff] }
 0x318   :  { %v3043_v32 = vadd.f32 %v3020_v7, %v9421_v12  ;;  %5421 = vmatprep.subr.mxu0 %v10548_v6  ;;  %5460 = vmatprep.subr.mxu1 %v10548_v6  ;;  %v4093_v7 = vld [vmem:[%s10117_s5 + $0x18] sm:$0xff] }
 0x319   :  { %v3022_v56 = vpop.f32.mrf.mxu0  ;;  %v3200_v45 = vpop.f32.mrf.mxu1  ;;  %5422 = vmatpush3.msra.mxu0 %v5244_v53  ;;  %5461 = vmatpush3.msra.mxu1 %v4100_v60 }
 0x31a   :  { %v9477_v43 = vadd.f32 %v3198_v44, %v3043_v32  ;;  %v3044_v12 = vadd.f32 %v3022_v56, %v9423_v31  ;;  %5423 = vmatprep.subr.mxu0 %v10548_v6  ;;  %5462 = vmatprep.subr.mxu1 %v10548_v6  ;;  %v4092_v32 = vld [vmem:[%s10117_s5 + $0x10] sm:$0xff] }
 0x31b   :  { %5424 = vmatpush3.msra.mxu0 %v5243_v34  ;;  %5463 = vmatpush3.msra.mxu1 %v4099_v15 }
 0x31c   :  { %v9488_v47 = vadd.f32 %v3200_v45, %v3044_v12  ;;  %5425 = vmatprep.subr.mxu0 %v10548_v6  ;;  %5464 = vmatprep.subr.mxu1 %v10548_v6  ;;  %v4091_v12 = vld [vmem:[%s10117_s5 + $0x8] sm:$0xff] }
 0x31d   :  { %v3026_v23 = vpop.f32.mrf.mxu0  ;;  %v3204_v31 = vpop.f32.mrf.mxu1  ;;  %5426 = vmatpush3.msra.mxu0 %v5242_v55  ;;  %5465 = vmatpush3.msra.mxu1 %v4098_v51 }
 0x31e   :  { %v3045_v25 = vadd.f32 %v3026_v23, %v9425_v3  ;;  %5427 = vmatprep.subr.mxu0 %v10548_v6  ;;  %5466 = vmatprep.subr.mxu1 %v10548_v6 }
 0x31f   :  { %v3028_v21 = vpop.f32.mrf.mxu0  ;;  %v3206_v22 = vpop.f32.mrf.mxu1  ;;  %5428 = vmatpush3.msra.mxu0 %v5241_v11  ;;  %5467 = vmatpush3.msra.mxu1 %v4097_v48 }
 0x320   :  { %v9507_v24 = vadd.f32 %v3204_v31, %v3045_v25  ;;  %v3046_v3 = vadd.f32 %v3028_v21, %v9427_v30  ;;  %5429 = vmatprep.subr.mxu0 %v10548_v6  ;;  %5468 = vmatprep.subr.mxu1 %v10548_v6 }
 0x321   :  { %5430 = vmatpush3.msra.mxu0 %v5240_v42  ;;  %5469 = vmatpush3.msra.mxu1 %v4096_v0 }
 0x322   :  { %v9518_v59 = vadd.f32 %v3206_v22, %v3046_v3  ;;  %5431 = vmatprep.subr.mxu0 %v10548_v6  ;;  %5470 = vmatprep.subr.mxu1 %v10548_v6 }
 0x323   :  { %v3340_v63 = vpop.f32.mrf.mxu0  ;;  %v9520_v30 = vpop.f32.mrf.mxu1  ;;  %5432 = vmatpush3.msra.mxu0 %v5239_v4  ;;  %5471 = vmatpush3.msra.mxu1 %v4095_v27 }
 0x324   :  { %v9531_v19 = vadd.f32 %v3340_v63, %v9430_v57  ;;  %5433 = vmatprep.subr.mxu0 %v10548_v6  ;;  %5472 = vmatprep.subr.mxu1 %v10548_v6 }
 0x325   :  { %v3342_v14 = vpop.f32.mrf.mxu0  ;;  %v9533_v58 = vpop.f32.mrf.mxu1  ;;  %5434 = vmatpush3.msra.mxu0 %v5238_v38  ;;  %5473 = vmatpush3.msra.mxu1 %v4094_v36 }
 0x326   :  { %v9544_v57 = vadd.f32 %v3342_v14, %v9433_v13  ;;  %5435 = vmatprep.subr.mxu0 %v10548_v6  ;;  %5474 = vmatprep.subr.mxu1 %v10548_v6 }
 0x327   :  { %5436 = vmatpush3.msra.mxu0 %v5237_v17  ;;  %5475 = vmatpush3.msra.mxu1 %v4093_v7 }
 0x328   :  { %5437 = vmatprep.subr.mxu0 %v10548_v6  ;;  %5476 = vmatprep.subr.mxu1 %v10548_v6 }
 0x329   :  { %v3346_v13 = vpop.f32.mrf.mxu0  ;;  %v9556_v8 = vpop.f32.mrf.mxu1  ;;  %5438 = vmatpush3.msra.mxu0 %v5236_v18  ;;  %5477 = vmatpush3.msra.mxu1 %v4092_v32 }
 0x32a   :  { %v9567_v46 = vadd.f32 %v3346_v13, %v9436_v61  ;;  %5439 = vmatprep.subr.mxu0 %v10548_v6  ;;  %5478 = vmatprep.subr.mxu1 %v10548_v6 }
 0x32b   :  { %v3348_v35 = vpop.f32.mrf.mxu0  ;;  %v9569_v2 = vpop.f32.mrf.mxu1  ;;  %5479 = vmatpush3.msra.mxu1 %v4091_v12 }
 0x32c   :  { %v9580_v61 = vadd.f32 %v3348_v35, %v9439_v40  ;;  %v5235_v40 = vld [vmem:[%s10117_s5 + $0x98] sm:$0xff]  ;;  %5480 = vmatprep.subr.mxu1 %v10548_v6 }
 0x32d   :  { %5440 = vmatpush3.msra.mxu0 %v5235_v40  ;;  %5481 = vmatpush3.msra.mxu1 %v4090_v54 }
 0x32e   :  { %5441 = vmatprep.subr.mxu0 %v10548_v6  ;;  %5520 = vmatprep.subr.mxu1 %v10548_v6 }
 0x32f   :  { %v3352_v44 = vpop.f32.mrf.mxu0  ;;  %v9598_v41 = vpop.f32.mrf.mxu1  ;;  %5442 = vmatpush3.msra.mxu0 %v5234_v62 }
 0x330   :  { %v9609_v56 = vadd.f32 %v3352_v44, %v9442_v49  ;;  %5443 = vmatprep.subr.mxu0 %v10548_v6 }
 0x331   :  { %v3354_v45 = vpop.f32.mrf.mxu0  ;;  %v9611_v39 = vpop.f32.mrf.mxu1  ;;  %5444 = vmatpush3.msra.mxu0 %v5233_v28 }
 0x332   :  { %v9622_v49 = vadd.f32 %v3354_v45, %v9445_v10  ;;  %5445 = vmatprep.subr.mxu0 %v10548_v6 }
 0x333   :  { %5446 = vmatpush3.msra.mxu0 %v5232_v37 }
 0x334   :  { %5485 = vmatprep.subr.mxu0 %v10548_v6 }
 0x335   :  { %v3358_v10 = vpop.f32.mrf.mxu0  ;;  %v9634_v31 = vpop.f32.mrf.mxu1 }
 0x336   :  { %v9639_v53 = vadd.f32 %v3358_v10, %v9448_v26 }
 0x337   :  { %v3360_v16 = vpop.f32.mrf.mxu0  ;;  %v9641_v25 = vpop.f32.mrf.mxu1 }
 0x338   :  { %v9648_v21 = vadd.f32 %v3360_v16, %v9451_v5 }
 0x33b   :  { %v3364_v22 = vpop.f32.mrf.mxu0  ;;  %v9654_v34 = vpop.f32.mrf.mxu1 }
 0x33c   :  { %v9657_v29 = vadd.f32 %v3364_v22, %v9454_v20 }
 0x33d   :  { %v3366_v3 = vpop.f32.mrf.mxu0  ;;  %v9659_v55 = vpop.f32.mrf.mxu1 }
 0x33e   :  { %10720 = vst [vmem:[#allocation59_spill] sm:$0xff] %v9657_v29  ;;  %v9662_v60 = vadd.f32 %v3366_v3, %v9456_v9 }
 0x340   :  { %10721 = vst [vmem:[#allocation60_spill] sm:$0xff] %v9662_v60 }
 0x341   :  { %v3370_v63 = vpop.f32.mrf.mxu0  ;;  %v9666_v11 = vpop.f32.mrf.mxu1 }
 0x342   :  { %v9669_v15 = vadd.f32 %v3370_v63, %v9458_v33 }
 0x343   :  { %v3372_v14 = vpop.f32.mrf.mxu0  ;;  %v9671_v42 = vpop.f32.mrf.mxu1 }
 0x344   :  { %10722 = vst [vmem:[#allocation45_spill] sm:$0xff] %v9669_v15  ;;  %v9674_v20 = vadd.f32 %v3372_v14, %v9460_v50 }
 0x346   :  { %10723 = vst [vmem:[#allocation24_spill] sm:$0xff] %v9674_v20 }
 0x347   :  { %v3376_v9 = vpop.f32.mrf.mxu0  ;;  %v9678_v4 = vpop.f32.mrf.mxu1 }
 0x348   :  { %v9681_v48 = vadd.f32 %v3376_v9, %v9477_v43 }
 0x349   :  { %v3378_v13 = vpop.f32.mrf.mxu0  ;;  %v9683_v38 = vpop.f32.mrf.mxu1 }
 0x34a   :  { %10724 = vst [vmem:[#allocation48_spill] sm:$0xff] %v9681_v48  ;;  %v9686_v33 = vadd.f32 %v3378_v13, %v9488_v47 }
 0x34c   :  { %10725 = vst [vmem:[#allocation77_spill] sm:$0xff] %v9686_v33 }
 0x34d   :  { %v3382_v50 = vpop.f32.mrf.mxu0  ;;  %v9690_v35 = vpop.f32.mrf.mxu1 }
 0x34e   :  { %10726 = vst [vmem:[#allocation25_spill] sm:$0xff] %v9690_v35  ;;  %v9693_v17 = vadd.f32 %v3382_v50, %v9507_v24 }
 0x34f   :  { %v3384_v27 = vpop.f32.mrf.mxu0  ;;  %v9695_v18 = vpop.f32.mrf.mxu1 }
 0x350   :  { %10727 = vst [vmem:[#allocation49_spill] sm:$0xff] %v9693_v17  ;;  %10728 = vst [vmem:[#allocation61_spill] sm:$0xff] %v9695_v18  ;;  %v9698_v43 = vadd.f32 %v3384_v27, %v9518_v59 }
 0x352   :  { %10729 = vst [vmem:[#allocation62_spill] sm:$0xff] %v9698_v43 }
 0x353   :  { %v3590_v47 = vpop.f32.mrf.mxu0  ;;  %v3703_v40 = vpop.f32.mrf.mxu1 }
 0x354   :  { %v3591_v1 = vadd.f32 %v3590_v47, %v9520_v30 }
 0x355   :  { %v3592_v7 = vpop.f32.mrf.mxu0  ;;  %v3705_v44 = vpop.f32.mrf.mxu1 }
 0x356   :  { %v3593_v17 = vadd.f32 %v3592_v7, %v9533_v58  ;;  %v3750_v33 = vadd.f32 %v3703_v40, %v3591_v1 }
 0x358   :  { %v3751_v60 = vadd.f32 %v3705_v44, %v3593_v17 }
 0x359   :  { %v3596_v62 = vpop.f32.mrf.mxu0  ;;  %v3709_v32 = vpop.f32.mrf.mxu1 }
 0x35a   :  { %v3597_v48 = vadd.f32 %v3596_v62, %v9556_v8 }
 0x35b   :  { %v3598_v45 = vpop.f32.mrf.mxu0  ;;  %v3711_v28 = vpop.f32.mrf.mxu1 }
 0x35c   :  { %v3599_v29 = vadd.f32 %v3598_v45, %v9569_v2 }
 0x35e   :  { %v3753_v58 = vadd.f32 %v3711_v28, %v3599_v29 }
 0x35f   :  { %v3602_v12 = vpop.f32.mrf.mxu0  ;;  %v3715_v24 = vpop.f32.mrf.mxu1 }
 0x360   :  { %v3603_v30 = vadd.f32 %v3602_v12, %v9598_v41  ;;  %v9741_v41 = vld [vmem:[%s10118_s4] ss:$0 sm:$0xff] }
 0x361   :  { %v3604_v37 = vpop.f32.mrf.mxu0  ;;  %v3717_v54 = vpop.f32.mrf.mxu1 }
 0x362   :  { %v3754_v17 = vadd.f32 %v3715_v24, %v3603_v30 }
 0x365   :  { %v3608_v10 = vpop.f32.mrf.mxu0  ;;  %v3721_v16 = vpop.f32.mrf.mxu1 }
 0x366   :  { %v3609_v2 = vadd.f32 %v3608_v10, %v9634_v31 }
 0x367   :  { %v3610_v22 = vpop.f32.mrf.mxu0  ;;  %v3723_v59 = vpop.f32.mrf.mxu1 }
 0x36b   :  { %v3614_v3 = vpop.f32.mrf.mxu0  ;;  %v9702_v63 = vpop.f32.mrf.mxu1 }
 0x36c   :  { %v3615_v31 = vadd.f32 %v3614_v3, %v9654_v34 }
 0x36d   :  { %v3616_v14 = vpop.f32.mrf.mxu0  ;;  %v9704_v9 = vpop.f32.mrf.mxu1 }
 0x36e   :  { %v3617_v12 = vadd.f32 %v3616_v14, %v9659_v55 }
 0x371   :  { %v9706_v13 = vpop.f32.mrf.mxu0  ;;  %v9708_v50 = vpop.f32.mrf.mxu1 }
 0x372   :  { %v3621_v30 = vadd.f32 %v9706_v13, %v9666_v11 }
 0x373   :  { %v9710_v27 = vpop.f32.mrf.mxu0  ;;  %v9712_v36 = vpop.f32.mrf.mxu1 }
 0x377   :  { %v9714_v0 = vpop.f32.mrf.mxu0  ;;  %v9716_v51 = vpop.f32.mrf.mxu1 }
 0x378   :  { %v3627_v13 = vadd.f32 %v9714_v0, %v9678_v4  ;;  %v10738_v4 = vmax.f32 %v9639_v53, %v9648_v21 }
 0x379   :  { %v9718_v5 = vpop.f32.mrf.mxu0  ;;  %v9720_v26 = vpop.f32.mrf.mxu1 }
 0x37a   :  { %10730 = vst [vmem:[#allocation67_spill] sm:$0xff] %v9720_v26 }
 0x37d   :  { %v9722_v23 = vpop.f32.mrf.mxu0  ;;  %v9724_v52 = vpop.f32.mrf.mxu1 }
 0x37e   :  { %10731 = vst [vmem:[#allocation79_spill] sm:$0xff] %v9722_v23  ;;  %10732 = vst [vmem:[#allocation78_spill] sm:$0xff] %v9724_v52  ;;  %v3752_v52 = vadd.f32 %v3709_v32, %v3597_v48  ;;  %v3611_v48 = vadd.f32 %v3610_v22, %v9641_v25  ;;  %v3758_v22 = vadd.f32 %v9702_v63, %v3615_v31 }
 0x37f   :  { %v9727_v6 = vpop.f32.mrf.mxu0  ;;  %v9729_v43 = vpop.f32.mrf.mxu1  ;;  %v10737_v63 = vmax.f32 %v9609_v56, %v9622_v49  ;;  %v3629_v56 = vadd.f32 %v9718_v5, %v9683_v38 }
 0x380   :  { %10733 = vst [vmem:[#allocation47_spill] sm:$0xff] %v9727_v6  ;;  %10734 = vst [vmem:[#allocation68_spill] sm:$0xff] %v9729_v43  ;;  %v3605_v6 = vadd.f32 %v3604_v37, %v9611_v39  ;;  %v3757_v28 = vadd.f32 %v3723_v59, %v3611_v48 }
 0x381   :  { %v10741_v31 = vld [vmem:[#allocation67_spill] sm:$0xff] }
 0x382   :  { %v3755_v44 = vadd.f32 %v3717_v54, %v3605_v6 }
 0x383   :  { %v3832_v20 = vpop.f32.mrf.mxu0  ;;  %v3977_v15 = vpop.f32.mrf.mxu1 }
 0x384   :  { %v3879_v18 = vadd.f32 %v3832_v20, %v3750_v33 }
 0x385   :  { %v3834_v26 = vpop.f32.mrf.mxu0  ;;  %v3979_v23 = vpop.f32.mrf.mxu1 }
 0x386   :  { %v3880_v47 = vadd.f32 %v3834_v26, %v3751_v60  ;;  %v4024_v1 = vadd.f32 %v3977_v15, %v3879_v18 }
 0x387   :  { %v3838_v43 = vpop.f32.mrf.mxu0  ;;  %v3983_v35 = vpop.f32.mrf.mxu1 }
 0x388   :  { %v4025_v40 = vadd.f32 %v3979_v23, %v3880_v47  ;;  %v3881_v8 = vadd.f32 %v3838_v43, %v3752_v52  ;;  %v10735_v52 = vmax.f32 %v9531_v19, %v9544_v57  ;;  %v3756_v43 = vadd.f32 %v3721_v16, %v3609_v2 }
 0x389   :  { %v3840_v7 = vpop.f32.mrf.mxu0  ;;  %v3985_v62 = vpop.f32.mrf.mxu1  ;;  %v10736_v57 = vmax.f32 %v9567_v46, %v9580_v61  ;;  %v3759_v47 = vadd.f32 %v9704_v9, %v3617_v12  ;;  %v3623_v46 = vadd.f32 %v9710_v27, %v9671_v42  ;;  %v3760_v9 = vadd.f32 %v9708_v50, %v3621_v30 }
 0x38a   :  { %v4040_v20 = vmax.f32 %v4024_v1, %v4025_v40  ;;  %v3882_v33 = vadd.f32 %v3840_v7, %v3753_v58  ;;  %v4026_v29 = vadd.f32 %v3983_v35, %v3881_v8 }
 0x38b   :  { %v3844_v39 = vpop.f32.mrf.mxu0  ;;  %v3989_v26 = vpop.f32.mrf.mxu1 }
 0x38c   :  { %v4048_v23 = vmax.f32 %v10735_v52, %v4040_v20  ;;  %v4027_v60 = vadd.f32 %v3985_v62, %v3882_v33  ;;  %v3883_v15 = vadd.f32 %v3844_v39, %v3754_v17  ;;  %v3761_v20 = vadd.f32 %v9712_v36, %v3623_v46  ;;  %v10749_v46 = vld [vmem:[#allocation45_spill] sm:$0xff] }
 0x38d   :  { %v3846_v18 = vpop.f32.mrf.mxu0  ;;  %v3991_v6 = vpop.f32.mrf.mxu1 }
 0x38e   :  { %v4063_v25 = vadd.f32 %v9741_v41, %v4048_v23  ;;  %v4041_v32 = vmax.f32 %v4026_v29, %v4027_v60  ;;  %v3884_v45 = vadd.f32 %v3846_v18, %v3755_v44  ;;  %v4028_v24 = vadd.f32 %v3989_v26, %v3883_v15  ;;  %v10739_v29 = vld [vmem:[#allocation25_spill] sm:$0xff]  ;;  %v10740_v60 = vld [vmem:[#allocation79_spill] sm:$0xff] }
 0x38f   :  { %v3850_v37 = vpop.f32.mrf.mxu0  ;;  %v3995_v54 = vpop.f32.mrf.mxu1  ;;  %v3762_v26 = vadd.f32 %v9716_v51, %v3627_v13  ;;  %v3633_v36 = vadd.f32 %v10740_v60, %v10739_v29  ;;  %v3763_v18 = vadd.f32 %v10741_v31, %v3629_v56  ;;  %v10744_v51 = vld [vmem:[#allocation59_spill] sm:$0xff]  ;;  %v5278_v31 = vld [vmem:[%s10117_s5 + $0x1f0] sm:$0xff] }
 0x390   :  { %v4071_v19 = vmax.f32 %v4063_v25, 0.0  ;;  %v4049_v35 = vmax.f32 %v10736_v57, %v4041_v32  ;;  %v4029_v10 = vadd.f32 %v3991_v6, %v3884_v45  ;;  %v3885_v34 = vadd.f32 %v3850_v37, %v3756_v43  ;;  %v10742_v6 = vld [vmem:[#allocation61_spill] sm:$0xff]  ;;  %v10743_v43 = vld [vmem:[#allocation47_spill] sm:$0xff] }
 0x391   :  { %v3852_v16 = vpop.f32.mrf.mxu0  ;;  %v3997_v3 = vpop.f32.mrf.mxu1  ;;  %v3635_v53 = vadd.f32 %v10743_v43, %v10742_v6  ;;  %v5261_v6 = vld [vmem:[%s10117_s5 + $0x168] sm:$0xff] }
 0x392   :  { %4079 = vst [vmem:[#allocation3] sm:$0xff] %v4071_v19  ;;  %v4064_v55 = vadd.f32 %v9741_v41, %v4049_v35  ;;  %v4042_v59 = vmax.f32 %v4028_v24, %v4029_v10  ;;  %v3886_v14 = vadd.f32 %v3852_v16, %v3757_v28  ;;  %v4030_v61 = vadd.f32 %v3995_v54, %v3885_v34  ;;  %v10745_v28 = vld [vmem:[#allocation60_spill] sm:$0xff]  ;;  %v10747_v35 = vld [vmem:[#allocation78_spill] sm:$0xff]  ;;  %v5277_v43 = vld [vmem:[%s10117_s5 + $0x1e8] sm:$0xff] }
 0x393   :  { %v3856_v58 = vpop.f32.mrf.mxu0  ;;  %v4001_v1 = vpop.f32.mrf.mxu1  ;;  %v10746_v12 = vmax.f32 %v10744_v51, %v10745_v28  ;;  %v3764_v10 = vadd.f32 %v10747_v35, %v3633_v36  ;;  %v5274_v51 = vld [vmem:[%s10117_s5 + $0x1d0] sm:$0xff]  ;;  %v5257_v28 = vld [vmem:[%s10117_s5 + $0x148] sm:$0xff] }
 0x394   :  { %v4072_v40 = vmax.f32 %v4064_v55, 0.0  ;;  %v4050_v8 = vmax.f32 %v10737_v63, %v4042_v59  ;;  %v4031_v7 = vadd.f32 %v3997_v3, %v3886_v14  ;;  %v3887_v11 = vadd.f32 %v3856_v58, %v3758_v22  ;;  %v10748_v3 = vld [vmem:[#allocation68_spill] sm:$0xff]  ;;  %v5270_v35 = vld [vmem:[%s10117_s5 + $0x1b0] sm:$0xff] }
 0x395   :  { %v3858_v62 = vpop.f32.mrf.mxu0  ;;  %v4003_v17 = vpop.f32.mrf.mxu1  ;;  %v3765_v30 = vadd.f32 %v10748_v3, %v3635_v53  ;;  %v5260_v53 = vld [vmem:[%s10117_s5 + $0x160] sm:$0xff]  ;;  %v5251_v3 = vld [vmem:[%s10117_s5 + $0x118] sm:$0xff] }
 0x396   :  { %4080 = vst [vmem:[#allocation3 + $0x8] sm:$0xff] %v4072_v40  ;;  %v4065_v42 = vadd.f32 %v9741_v41, %v4050_v8  ;;  %v4043_v27 = vmax.f32 %v4030_v61, %v4031_v7  ;;  %v3888_v2 = vadd.f32 %v3858_v62, %v3759_v47  ;;  %v4032_v49 = vadd.f32 %v4001_v1, %v3887_v11  ;;  %v10750_v61 = vld [vmem:[#allocation24_spill] sm:$0xff] }
 0x397   :  { %v3862_v33 = vpop.f32.mrf.mxu0  ;;  %v4007_v44 = vpop.f32.mrf.mxu1  ;;  %v10751_v58 = vmax.f32 %v10749_v46, %v10750_v61  ;;  %v5248_v46 = vld [vmem:[%s10117_s5 + $0x100] sm:$0xff] }
 0x398   :  { %v4073_v48 = vmax.f32 %v4065_v42, 0.0  ;;  %v4051_v0 = vmax.f32 %v10738_v4, %v4043_v27  ;;  %v4033_v39 = vadd.f32 %v4003_v17, %v3888_v2  ;;  %v3889_v50 = vadd.f32 %v3862_v33, %v3760_v9  ;;  %v10752_v9 = vld [vmem:[#allocation48_spill] sm:$0xff]  ;;  %v10753_v42 = vld [vmem:[#allocation77_spill] sm:$0xff]  ;;  %v10756_v4 = vld [vmem:[#allocation62_spill] sm:$0xff] }
 0x399   :  { %v3864_v52 = vpop.f32.mrf.mxu0  ;;  %v4009_v23 = vpop.f32.mrf.mxu1  ;;  %v10754_v27 = vmax.f32 %v10752_v9, %v10753_v42  ;;  %v5291_v9 = vld [vmem:[%s10117_s5 + $0x258] sm:$0xff]  ;;  %v5290_v42 = vld [vmem:[%s10117_s5 + $0x250] sm:$0xff] }
 0x39a   :  { %4081 = vst [vmem:[#allocation3 + $0x10] sm:$0xff] %v4073_v48  ;;  %v4066_v5 = vadd.f32 %v9741_v41, %v4051_v0  ;;  %v4044_v38 = vmax.f32 %v4032_v49, %v4033_v39  ;;  %v3890_v15 = vadd.f32 %v3864_v52, %v3761_v20  ;;  %v4034_v21 = vadd.f32 %v4007_v44, %v3889_v50  ;;  %v10755_v48 = vld [vmem:[#allocation49_spill] sm:$0xff] }
 0x39b   :  { %v3868_v25 = vpop.f32.mrf.mxu0  ;;  %v4013_v32 = vpop.f32.mrf.mxu1  ;;  %v10757_v0 = vmax.f32 %v10755_v48, %v10756_v4  ;;  %v5282_v48 = vld [vmem:[%s10117_s5 + $0x210] sm:$0xff]  ;;  %v5281_v4 = vld [vmem:[%s10117_s5 + $0x208] sm:$0xff] }
 0x39c   :  { %v4074_v45 = vmax.f32 %v4066_v5, 0.0  ;;  %v4052_v24 = vmax.f32 %v10746_v12, %v4044_v38  ;;  %v4035_v37 = vadd.f32 %v4009_v23, %v3890_v15  ;;  %v3891_v54 = vadd.f32 %v3868_v25, %v3762_v26  ;;  %v5263_v38 = vld [vmem:[%s10117_s5 + $0x178] sm:$0xff]  ;;  %v5273_v12 = vld [vmem:[%s10117_s5 + $0x1c8] sm:$0xff] }
 0x39d   :  { %v3870_v19 = vpop.f32.mrf.mxu0  ;;  %v4015_v57 = vpop.f32.mrf.mxu1  ;;  %v5279_v15 = vld [vmem:[%s10117_s5 + $0x1f8] sm:$0xff] }
 0x39e   :  { %4082 = vst [vmem:[#allocation3 + $0x18] sm:$0xff] %v4074_v45  ;;  %v4067_v34 = vadd.f32 %v9741_v41, %v4052_v24  ;;  %v4045_v22 = vmax.f32 %v4034_v21, %v4035_v37  ;;  %v3892_v16 = vadd.f32 %v3870_v19, %v3763_v18  ;;  %v4036_v55 = vadd.f32 %v4013_v32, %v3891_v54  ;;  %v5276_v21 = vld [vmem:[%s10117_s5 + $0x1e0] sm:$0xff]  ;;  %v5259_v25 = vld [vmem:[%s10117_s5 + $0x158] sm:$0xff]  ;;  %v5258_v45 = vld [vmem:[%s10117_s5 + $0x150] sm:$0xff] }
 0x39f   :  { %v3874_v59 = vpop.f32.mrf.mxu0  ;;  %v4019_v14 = vpop.f32.mrf.mxu1  ;;  %v10758_v18 = vmov 0.0   ;;  %v5275_v32 = vld [vmem:[%s10117_s5 + $0x1d8] sm:$0xff]  ;;  %v5256_v24 = vld [vmem:[%s10117_s5 + $0x140] sm:$0xff] }
 0x3a0   :  { %v4075_v47 = vmax.f32 %v4067_v34, 0.0  ;;  %v4053_v1 = vmax.f32 %v10751_v58, %v4045_v22  ;;  %v4037_v40 = vadd.f32 %v4015_v57, %v3892_v16  ;;  %v3893_v63 = vadd.f32 %v3874_v59, %v3764_v10  ;;  %v5272_v37 = vld [vmem:[%s10117_s5 + $0x1c0] sm:$0xff]  ;;  %v5255_v54 = vld [vmem:[%s10117_s5 + $0x138] sm:$0xff]  ;;  %v5254_v57 = vld [vmem:[%s10117_s5 + $0x130] sm:$0xff] }
 0x3a1   :  { %v3876_v8 = vpop.f32.mrf.mxu0  ;;  %v4021_v62 = vpop.f32.mrf.mxu1  ;;  %v5271_v19 = vld [vmem:[%s10117_s5 + $0x1b8] sm:$0xff]  ;;  %v5253_v10 = vld [vmem:[%s10117_s5 + $0x128] sm:$0xff]  ;;  %v5252_v22 = vld [vmem:[%s10117_s5 + $0x120] sm:$0xff] }
 0x3a2   :  { %4083 = vst [vmem:[#allocation3 + $0x20] sm:$0xff] %v4075_v47  ;;  %v4068_v7 = vadd.f32 %v9741_v41, %v4053_v1  ;;  %v4046_v11 = vmax.f32 %v4036_v55, %v4037_v40  ;;  %v3894_v13 = vadd.f32 %v3876_v8, %v3765_v30  ;;  %v4038_v20 = vadd.f32 %v4019_v14, %v3893_v63  ;;  %v5269_v34 = vld [vmem:[%s10117_s5 + $0x1a8] sm:$0xff]  ;;  %v5268_v16 = vld [vmem:[%s10117_s5 + $0x1a0] sm:$0xff]  ;;  %v5267_v30 = vld [vmem:[%s10117_s5 + $0x198] sm:$0xff] }
 0x3a3   :  { %v5250_v55 = vld [vmem:[%s10117_s5 + $0x110] sm:$0xff]  ;;  %v5249_v14 = vld [vmem:[%s10117_s5 + $0x108] sm:$0xff]  ;;  %v5264_v1 = vld [vmem:[%s10117_s5 + $0x180] sm:$0xff] }
 0x3a4   :  { %v4076_v17 = vmax.f32 %v4068_v7, 0.0  ;;  %v4054_v2 = vmax.f32 %v10754_v27, %v4046_v11  ;;  %v4039_v56 = vadd.f32 %v4021_v62, %v3894_v13  ;;  %v5266_v59 = vld [vmem:[%s10117_s5 + $0x190] sm:$0xff]  ;;  %v5265_v47 = vld [vmem:[%s10117_s5 + $0x188] sm:$0xff]  ;;  %v5295_v11 = vld [vmem:[%s10117_s5 + $0x278] sm:$0xff] }
 0x3a5   :  { %v4107_v52 = vld [vmem:[#allocation3 + $0x1] ss:$8 sm:$0xf]  ;;  %v4087_v23 = vld [vmem:[#allocation3] ss:$8 sm:$0xf] }
 0x3a6   :  { %4084 = vst [vmem:[#allocation3 + $0x28] sm:$0xff] %v4076_v17  ;;  %v4069_v49 = vadd.f32 %v9741_v41, %v4054_v2  ;;  %v4047_v33 = vmax.f32 %v4038_v20, %v4039_v56  ;;  %v4268_v40 = vld [vmem:[#allocation3 + $0x2] ss:$8 sm:$0xf] }
 0x3a7   :  { %v4360_v63 = vld [vmem:[#allocation3 + $0x3] ss:$8 sm:$0xf] }
 0x3a8   :  { %v4077_v44 = vmax.f32 %v4069_v49, 0.0  ;;  %v4055_v39 = vmax.f32 %v10757_v0, %v4047_v33  ;;  %v5294_v13 = vld [vmem:[%s10117_s5 + $0x270] sm:$0xff]  ;;  %v5293_v62 = vld [vmem:[%s10117_s5 + $0x268] sm:$0xff]  ;;  %v5292_v17 = vld [vmem:[%s10117_s5 + $0x260] sm:$0xff] }
 0x3a9   :  { %v5289_v27 = vld [vmem:[%s10117_s5 + $0x248] sm:$0xff]  ;;  %v5288_v2 = vld [vmem:[%s10117_s5 + $0x240] sm:$0xff]  ;;  %v5287_v20 = vld [vmem:[%s10117_s5 + $0x238] sm:$0xff] }
 0x3aa   :  { %4085 = vst [vmem:[#allocation3 + $0x30] sm:$0xff] %v4077_v44  ;;  %v4070_v50 = vadd.f32 %v9741_v41, %v4055_v39  ;;  %v5262_v41 = vld [vmem:[%s10117_s5 + $0x170] sm:$0xff]  ;;  %v5285_v49 = vld [vmem:[%s10117_s5 + $0x228] sm:$0xff]  ;;  %v5284_v33 = vld [vmem:[%s10117_s5 + $0x220] sm:$0xff] }
 0x3ab   :  { %v5286_v56 = vld [vmem:[%s10117_s5 + $0x230] sm:$0xff]  ;;  %v5283_v44 = vld [vmem:[%s10117_s5 + $0x218] sm:$0xff]  ;;  %v5280_v39 = vld [vmem:[%s10117_s5 + $0x200] sm:$0xff] }
 0x3ac   :  { %v4078_v26 = vmax.f32 %v4070_v50, 0.0  ;;  %v4452_v50 = vld [vmem:[#allocation3 + $0x4] ss:$8 sm:$0xf] }
 0x3ae   :  { %4086 = vst [vmem:[#allocation3 + $0x38] sm:$0x1f] %v4078_v26 }
 0x3b5   :  { %v4108_v29 = vld [vmem:[#allocation3 + $0x1] ss:$8 sm:$0xf0]  ;;  %v4088_v60 = vld [vmem:[#allocation3] ss:$8 sm:$0xf0] }
 0x3b6   :  { %v4109_v36 = vor.u32 %v4108_v29, %v4107_v52  ;;  %v4089_v5 = vor.u32 %v4088_v60, %v4087_v23  ;;  %v4269_v61 = vld [vmem:[#allocation3 + $0x2] ss:$8 sm:$0xf0]  ;;  %v4361_v58 = vld [vmem:[#allocation3 + $0x3] ss:$8 sm:$0xf0] }
 0x3b7   :  { %v4270_v8 = vor.u32 %v4269_v61, %v4268_v40  ;;  %v4362_v7 = vor.u32 %v4361_v58, %v4360_v63  ;;  %v4453_v0 = vld [vmem:[#allocation3 + $0x4] ss:$8 sm:$0xf0] }
 0x3b8   :  { %5448 = vmatmul.mubr.f32.vlgmr.msra.gmra.mxu0 %v4109_v36  ;;  %5483 = vmatmul.mubr.f32.vlgmr.msra.gmra.mxu1 %v4089_v5  ;;  %v4454_v26 = vor.u32 %v4453_v0, %v4452_v50  ;;  %v4566_v52 = vld [vmem:[%s10119_s7 + $0x70] sm:$0xff]  ;;  %v4565_v23 = vld [vmem:[%s10119_s7 + $0x68] sm:$0xff]  ;;  %v4564_v29 = vld [vmem:[%s10119_s7 + $0x60] sm:$0xff] }
 0x3b9   :  { %5486 = vmatpush3.msra.mxu0 %v5263_v38  ;;  %5521 = vmatpush3.msra.mxu1 %v5279_v15  ;;  %v4563_v60 = vld [vmem:[%s10119_s7 + $0x58] sm:$0xff]  ;;  %v4562_v36 = vld [vmem:[%s10119_s7 + $0x50] sm:$0xff]  ;;  %v4561_v5 = vld [vmem:[%s10119_s7 + $0x48] sm:$0xff] }
 0x3ba   :  { %5487 = vmatprep.subr.mxu0 %v10758_v18  ;;  %5522 = vmatprep.subr.mxu1 %v10758_v18  ;;  %v4560_v38 = vld [vmem:[%s10119_s7 + $0x40] sm:$0xff]  ;;  %v4559_v15 = vld [vmem:[%s10119_s7 + $0x38] sm:$0xff]  ;;  %v4654_v61 = vld [vmem:[%s10121_s9 + $0x28] sm:$0xff] }
 0x3bb   :  { %5488 = vmatpush3.msra.mxu0 %v5262_v41  ;;  %5523 = vmatpush3.msra.mxu1 %v5278_v31  ;;  %v4558_v41 = vld [vmem:[%s10119_s7 + $0x30] sm:$0xff]  ;;  %v4557_v31 = vld [vmem:[%s10119_s7 + $0x28] sm:$0xff]  ;;  %v4653_v58 = vld [vmem:[%s10121_s9 + $0x20] sm:$0xff] }
 0x3bc   :  { %5489 = vmatprep.subr.mxu0 %v10758_v18  ;;  %5524 = vmatprep.subr.mxu1 %v10758_v18  ;;  %v4651_v40 = vld [vmem:[%s10121_s9 + $0x10] sm:$0xff]  ;;  %v4650_v63 = vld [vmem:[%s10121_s9 + $0x8] sm:$0xff] }
 0x3bd   :  { %5490 = vmatpush3.msra.mxu0 %v5261_v6  ;;  %5525 = vmatpush3.msra.mxu1 %v5277_v43  ;;  %v4556_v6 = vld [vmem:[%s10119_s7 + $0x20] sm:$0xff]  ;;  %v4555_v43 = vld [vmem:[%s10119_s7 + $0x18] sm:$0xff] }
 0x3be   :  { %5491 = vmatprep.subr.mxu0 %v10758_v18  ;;  %5526 = vmatprep.subr.mxu1 %v10758_v18 }
 0x3bf   :  { %5492 = vmatpush3.msra.mxu0 %v5260_v53  ;;  %5527 = vmatpush3.msra.mxu1 %v5276_v21  ;;  %v4554_v53 = vld [vmem:[%s10119_s7 + $0x10] sm:$0xff]  ;;  %v4553_v21 = vld [vmem:[%s10119_s7 + $0x8] sm:$0xff] }
 0x3c0   :  { %5493 = vmatprep.subr.mxu0 %v10758_v18  ;;  %5528 = vmatprep.subr.mxu1 %v10758_v18 }
 0x3c1   :  { %5494 = vmatpush3.msra.mxu0 %v5259_v25  ;;  %5529 = vmatpush3.msra.mxu1 %v5275_v32  ;;  %v4552_v25 = vld [vmem:[%s10119_s7] sm:$0xff] }
 0x3c2   :  { %5495 = vmatprep.subr.mxu0 %v10758_v18  ;;  %5530 = vmatprep.subr.mxu1 %v10758_v18 }
 0x3c3   :  { %5496 = vmatpush3.msra.mxu0 %v5258_v45  ;;  %5531 = vmatpush3.msra.mxu1 %v5274_v51 }
 0x3c4   :  { %5497 = vmatprep.subr.mxu0 %v10758_v18  ;;  %5532 = vmatprep.subr.mxu1 %v10758_v18 }
 0x3c5   :  { %5498 = vmatpush3.msra.mxu0 %v5257_v28  ;;  %5533 = vmatpush3.msra.mxu1 %v5273_v12 }
 0x3c6   :  { %5499 = vmatprep.subr.mxu0 %v10758_v18  ;;  %5534 = vmatprep.subr.mxu1 %v10758_v18 }
 0x3c7   :  { %5500 = vmatpush3.msra.mxu0 %v5256_v24  ;;  %5535 = vmatpush3.msra.mxu1 %v5272_v37 }
 0x3c8   :  { %5501 = vmatprep.subr.mxu0 %v10758_v18  ;;  %5536 = vmatprep.subr.mxu1 %v10758_v18 }
 0x3c9   :  { %5502 = vmatpush3.msra.mxu0 %v5255_v54  ;;  %5537 = vmatpush3.msra.mxu1 %v5271_v19 }
 0x3ca   :  { %5503 = vmatprep.subr.mxu0 %v10758_v18  ;;  %5538 = vmatprep.subr.mxu1 %v10758_v18 }
 0x3cb   :  { %5504 = vmatpush3.msra.mxu0 %v5254_v57  ;;  %5539 = vmatpush3.msra.mxu1 %v5270_v35 }
 0x3cc   :  { %5505 = vmatprep.subr.mxu0 %v10758_v18  ;;  %5540 = vmatprep.subr.mxu1 %v10758_v18 }
 0x3cd   :  { %5506 = vmatpush3.msra.mxu0 %v5253_v10  ;;  %5541 = vmatpush3.msra.mxu1 %v5269_v34  ;;  %v5296_v34 = vld [vmem:[%s10120_s6] ss:$0 sm:$0xff] }
 0x3ce   :  { %5507 = vmatprep.subr.mxu0 %v10758_v18  ;;  %5542 = vmatprep.subr.mxu1 %v10758_v18 }
 0x3cf   :  { %5508 = vmatpush3.msra.mxu0 %v5252_v22  ;;  %5543 = vmatpush3.msra.mxu1 %v5268_v16 }
 0x3d0   :  { %5509 = vmatprep.subr.mxu0 %v10758_v18  ;;  %5544 = vmatprep.subr.mxu1 %v10758_v18 }
 0x3d1   :  { %5510 = vmatpush3.msra.mxu0 %v5251_v3  ;;  %5545 = vmatpush3.msra.mxu1 %v5267_v30 }
 0x3d2   :  { %5511 = vmatprep.subr.mxu0 %v10758_v18  ;;  %5546 = vmatprep.subr.mxu1 %v10758_v18 }
 0x3d3   :  { %5512 = vmatpush3.msra.mxu0 %v5250_v55  ;;  %5547 = vmatpush3.msra.mxu1 %v5266_v59  ;;  %v4659_v55 = vld [vmem:[%s10121_s9 + $0x50] sm:$0xf]  ;;  %v4658_v59 = vld [vmem:[%s10121_s9 + $0x48] sm:$0xff] }
 0x3d4   :  { %5513 = vmatprep.subr.mxu0 %v10758_v18  ;;  %5548 = vmatprep.subr.mxu1 %v10758_v18 }
 0x3d5   :  { %5514 = vmatpush3.msra.mxu0 %v5249_v14  ;;  %5549 = vmatpush3.msra.mxu1 %v5265_v47  ;;  %v4657_v14 = vld [vmem:[%s10121_s9 + $0x40] sm:$0xff]  ;;  %v4656_v47 = vld [vmem:[%s10121_s9 + $0x38] sm:$0xff] }
 0x3d6   :  { %5515 = vmatprep.subr.mxu0 %v10758_v18  ;;  %5550 = vmatprep.subr.mxu1 %v10758_v18 }
 0x3d7   :  { %5516 = vmatpush3.msra.mxu0 %v5248_v46  ;;  %5517 = vmatprep.mubr.msk.f32.mxu0 %vm5729_vm1, %v10758_v18  ;;  %v4655_v46 = vld [vmem:[%s10121_s9 + $0x30] sm:$0xff] }
 0x3d8   :  { %5551 = vmatpush3.msra.mxu1 %v5264_v1  ;;  %5552 = vmatprep.mubr.msk.f32.mxu1 %vm5729_vm1, %v10758_v18  ;;  %v4652_v1 = vld [vmem:[%s10121_s9 + $0x18] sm:$0xff] }
 0x3d9   :  { %5518 = vmatmul.mubr.f32.vlgmr.msra.gmra.mxu0 %v4270_v8  ;;  %5553 = vmatmul.mubr.f32.vlgmr.msra.gmra.mxu1 %v4362_v7  ;;  %v4649_v8 = vld [vmem:[%s10121_s9] sm:$0xff] }
 0x3da   :  { %5555 = vmatprep.subr.mxu0 %v10758_v18  ;;  %5587 = vmatprep.mubr.msk.f32.mxu0 %vm5729_vm1, %v10758_v18  ;;  %v5297_v7 = vld [vmem:[%s10122_s8] ss:$0 sm:$0xff] }
 0x3db   :  { %5556 = vmatpush3.msra.mxu0 %v5295_v11  ;;  %5590 = vmatprep.subr.mxu1 %v10758_v18 }
 0x3dc   :  { %5557 = vmatprep.subr.mxu0 %v10758_v18  ;;  %5620 = vmatprep.mubr.msk.f32.mxu1 %vm5729_vm1, %v10758_v18 }
 0x3dd   :  { %5558 = vmatpush3.msra.mxu0 %v5294_v13  ;;  %5591 = vmatpush3.msra.mxu1 %v4566_v52 }
 0x3de   :  { %5559 = vmatprep.subr.mxu0 %v10758_v18  ;;  %5592 = vmatprep.subr.mxu1 %v10758_v18 }
 0x3df   :  { %5560 = vmatpush3.msra.mxu0 %v5293_v62  ;;  %5593 = vmatpush3.msra.mxu1 %v4565_v23 }
 0x3e0   :  { %5561 = vmatprep.subr.mxu0 %v10758_v18  ;;  %5594 = vmatprep.subr.mxu1 %v10758_v18 }
 0x3e1   :  { %5562 = vmatpush3.msra.mxu0 %v5292_v17  ;;  %5595 = vmatpush3.msra.mxu1 %v4564_v29 }
 0x3e2   :  { %5563 = vmatprep.subr.mxu0 %v10758_v18  ;;  %5596 = vmatprep.subr.mxu1 %v10758_v18 }
 0x3e3   :  { %5564 = vmatpush3.msra.mxu0 %v5291_v9  ;;  %5597 = vmatpush3.msra.mxu1 %v4563_v60  ;;  %v5299_v9 = vld [vmem:[%s10123_s10] ss:$0 sm:$0xff] }
 0x3e4   :  { %5565 = vmatprep.subr.mxu0 %v10758_v18  ;;  %5598 = vmatprep.subr.mxu1 %v10758_v18 }
 0x3e5   :  { %5566 = vmatpush3.msra.mxu0 %v5290_v42  ;;  %5599 = vmatpush3.msra.mxu1 %v4562_v36 }
 0x3e6   :  { %5567 = vmatprep.subr.mxu0 %v10758_v18  ;;  %5600 = vmatprep.subr.mxu1 %v10758_v18 }
 0x3e7   :  { %5568 = vmatpush3.msra.mxu0 %v5289_v27  ;;  %5601 = vmatpush3.msra.mxu1 %v4561_v5 }
 0x3e8   :  { %5569 = vmatprep.subr.mxu0 %v10758_v18  ;;  %5602 = vmatprep.subr.mxu1 %v10758_v18 }
 0x3e9   :  { %5570 = vmatpush3.msra.mxu0 %v5288_v2  ;;  %5603 = vmatpush3.msra.mxu1 %v4560_v38 }
 0x3ea   :  { %5571 = vmatprep.subr.mxu0 %v10758_v18  ;;  %5604 = vmatprep.subr.mxu1 %v10758_v18 }
 0x3eb   :  { %5572 = vmatpush3.msra.mxu0 %v5287_v20  ;;  %5605 = vmatpush3.msra.mxu1 %v4559_v15 }
 0x3ec   :  { %5573 = vmatprep.subr.mxu0 %v10758_v18  ;;  %5606 = vmatprep.subr.mxu1 %v10758_v18 }
 0x3ed   :  { %5574 = vmatpush3.msra.mxu0 %v5286_v56  ;;  %5607 = vmatpush3.msra.mxu1 %v4558_v41 }
 0x3ee   :  { %5575 = vmatprep.subr.mxu0 %v10758_v18  ;;  %5608 = vmatprep.subr.mxu1 %v10758_v18 }
 0x3ef   :  { %5576 = vmatpush3.msra.mxu0 %v5285_v49  ;;  %5609 = vmatpush3.msra.mxu1 %v4557_v31 }
 0x3f0   :  { %5577 = vmatprep.subr.mxu0 %v10758_v18  ;;  %5610 = vmatprep.subr.mxu1 %v10758_v18 }
 0x3f1   :  { %5578 = vmatpush3.msra.mxu0 %v5284_v33  ;;  %5611 = vmatpush3.msra.mxu1 %v4556_v6 }
 0x3f2   :  { %5579 = vmatprep.subr.mxu0 %v10758_v18  ;;  %5612 = vmatprep.subr.mxu1 %v10758_v18 }
 0x3f3   :  { %5580 = vmatpush3.msra.mxu0 %v5283_v44  ;;  %5613 = vmatpush3.msra.mxu1 %v4555_v43 }
 0x3f4   :  { %5581 = vmatprep.subr.mxu0 %v10758_v18  ;;  %5614 = vmatprep.subr.mxu1 %v10758_v18 }
 0x3f5   :  { %5582 = vmatpush3.msra.mxu0 %v5282_v48  ;;  %5615 = vmatpush3.msra.mxu1 %v4554_v53 }
 0x3f6   :  { %5583 = vmatprep.subr.mxu0 %v10758_v18  ;;  %5616 = vmatprep.subr.mxu1 %v10758_v18 }
 0x3f7   :  { %5584 = vmatpush3.msra.mxu0 %v5281_v4  ;;  %5617 = vmatpush3.msra.mxu1 %v4553_v21 }
 0x3f8   :  { %5585 = vmatprep.subr.mxu0 %v10758_v18  ;;  %5618 = vmatprep.subr.mxu1 %v10758_v18 }
 0x3f9   :  { %5586 = vmatpush3.msra.mxu0 %v5280_v39  ;;  %5619 = vmatpush3.msra.mxu1 %v4552_v25 }
 0x3fa   :  { %5588 = vmatmul.mubr.f32.vlgmr.msra.gmra.mxu0 %v4454_v26  ;;  %5623 = vmatprep.subr.mxu1 %v10758_v18 }
 0x478   :  { %v4193_v32 = vpop.f32.mrf.mxu0  ;;  %v4263_v45 = vpop.f32.mrf.mxu1 }
 0x479   :  { %v4264_v19 = vadd.f32 %v4263_v45, %v4193_v32 }
 0x47a   :  { %v5449_v51 = vpop.f32.mrf.mxu0  ;;  %v5484_v28 = vpop.f32.mrf.mxu1 }
 0x499   :  { %v4354_v12 = vpop.f32.mrf.mxu0  ;;  %v4446_v24 = vpop.f32.mrf.mxu1 }
 0x49a   :  { %v4358_v57 = vadd.f32 %v4354_v12, %v4264_v19 }
 0x49b   :  { %v5519_v37 = vpop.f32.mrf.mxu0  ;;  %v5554_v54 = vpop.f32.mrf.mxu1 }
 0x49c   :  { %v4450_v35 = vadd.f32 %v4446_v24, %v4358_v57 }
 0x4ba   :  { %v4538_v10 = vpop.f32.mrf.mxu0 }
 0x4bb   :  { %v4542_v22 = vadd.f32 %v4538_v10, %v4450_v35 }
 0x4bc   :  { %v5589_v16 = vpop.f32.mrf.mxu0 }
 0x4bd   :  { %v4550_v3 = vadd.f32 %v5296_v34, %v4542_v22 }
 0x4bf   :  { %v4551_v30 = vmax.f32 %v4550_v3, 0.0 }
 0x4c1   :  { %5621 = vmatmul.mubr.msk.f32.vlgmr.msra.gmra.mxu1 %vm4574_vm2, %v4551_v30 }
 0x4c2   :  { %5624 = vmatpush3.msk.msra.mxu1 %vm4671_vm3, %v4659_v55  ;;  %5645 = vmatprep.mubr.msk.f32.mxu1 %vm5729_vm1, %v10758_v18 }
 0x4c3   :  { %5625 = vmatprep.subr.mxu1 %v10758_v18 }
 0x4c4   :  { %5626 = vmatpush3.msra.mxu1 %v4658_v59 }
 0x4c5   :  { %5627 = vmatprep.subr.mxu1 %v10758_v18 }
 0x4c6   :  { %5628 = vmatpush3.msra.mxu1 %v4657_v14 }
 0x4c7   :  { %5629 = vmatprep.subr.mxu1 %v10758_v18 }
 0x4c8   :  { %5630 = vmatpush3.msra.mxu1 %v4656_v47 }
 0x4c9   :  { %5631 = vmatprep.subr.mxu1 %v10758_v18 }
 0x4ca   :  { %5632 = vmatpush3.msra.mxu1 %v4655_v46 }
 0x4cb   :  { %5633 = vmatprep.subr.mxu1 %v10758_v18 }
 0x4cc   :  { %5634 = vmatpush3.msra.mxu1 %v4654_v61 }
 0x4cd   :  { %5635 = vmatprep.subr.mxu1 %v10758_v18 }
 0x4ce   :  { %5636 = vmatpush3.msra.mxu1 %v4653_v58 }
 0x4cf   :  { %5637 = vmatprep.subr.mxu1 %v10758_v18 }
 0x4d0   :  { %5638 = vmatpush3.msra.mxu1 %v4652_v1 }
 0x4d1   :  { %5639 = vmatprep.subr.mxu1 %v10758_v18 }
 0x4d2   :  { %5640 = vmatpush3.msra.mxu1 %v4651_v40 }
 0x4d3   :  { %5641 = vmatprep.subr.mxu1 %v10758_v18 }
 0x4d4   :  { %5642 = vmatpush3.msra.mxu1 %v4650_v63 }
 0x4d5   :  { %5643 = vmatprep.subr.mxu1 %v10758_v18 }
 0x4d6   :  { %5644 = vmatpush3.msra.mxu1 %v4649_v8 }
 0x581   :  { %v4644_v11 = vpop.f32.mrf.mxu1 }
 0x582   :  { %v4645_v13 = vadd.f32 %v5297_v7, %v4644_v11 }
 0x583   :  { %v5622_v62 = vpop.f32.mrf.mxu1 }
 0x584   :  { %v4648_v17 = vmax.f32 %v4645_v13, 0.0 }
 0x586   :  { %5646 = vmatmul.mubr.msk.f32.vlgmr.msra.gmra.mxu1 %vm4667_vm4, %v4648_v17 }
 0x646   :  { %v4741_v18 = vpop.f32.mrf.mxu1 }
 0x647   :  { %v4742_v42 = vadd.f32 %v5299_v9, %v4741_v18 }
 0x648   :  { %v5647_v27 = vpop.f32.mrf.mxu1 }
 0x649   :  { %4746 = vst.msk [vmem:[%s10124_s11] sm:$0xff] %vm4745_vm5, %v4742_v42 }

</bundles_post_ra>
